<compile_context>
chip_gen: v7x
topology: tpu7x:2x2x1
jax: 0.10.0
libtpu: 0.0.40
codegen_flags: <defaults>
</compile_context>

<pallas_src>
import functools

import numpy as np

import jax
import jax.numpy as jnp
from jax.experimental import pallas as pl
from jax.experimental.pallas import tpu as pltpu


# ----------------------------- model dimensions -----------------------------

C_IN = 3
C1, C2 = 16, 32
H0 = W0 = 28          # conv1 spatial
H1 = W1 = 14          # after pool1 / conv2 spatial
H2 = W2 = 7           # after pool2
FLAT = C2 * H2 * W2   # 1568
HID = 32              # hidden width for the small example

_PARALLEL1 = pltpu.CompilerParams(dimension_semantics=("parallel",))


# ------------------------------ Pallas kernels ------------------------------

def _rowconv_kernel(x_ref, w_ref, b_ref, o_ref, *, oh, relu):
    """Fused 3x3 conv (kh row taps) + bias + optional ReLU, rows layout.

    x_ref: (1, oh+kh-1, Win*Cin)    padded activation rows (VMEM resident)
    w_ref: (kh, Win*Cin, Wout*Cout) block-Toeplitz packed weights (resident)
    b_ref: (1, Wout*Cout)           packed bias (f32)
    o_ref: (1, oh, Wout*Cout)
    """
    kh = w_ref.shape[0]
    acc = jnp.dot(x_ref[0, 0:oh, :], w_ref[0],
                  preferred_element_type=jnp.float32)
    for i in range(1, kh):
        acc = acc + jnp.dot(x_ref[0, i:i + oh, :], w_ref[i],
                            preferred_element_type=jnp.float32)
    acc = acc + b_ref[...]
    if relu:
        acc = jnp.maximum(acc, 0.0)
    o_ref[0] = acc.astype(o_ref.dtype)


def _rowdeconv_kernel(x_ref, w_ref, b_ref, o_ref, *, hin, relu):
    """Fused ConvTranspose2d(3x3, stride=2, pad=1, output_pad=1) + bias (+ReLU).

    Zero-dilation / padding in x are folded into w_ref at pack time; in y the
    stride-2 transpose reduces to a parity split of the output rows: even rows
    use kernel-row 1 of the input window, odd rows use kernel-rows 0 and 2 of
    two shifted windows.  No dilated tensor is ever materialized.

    x_ref: (1, hin+1, Win*Cin)      input rows, last row is zero padding
    w_ref: (3, Win*Cin, Wout*Cout)
    b_ref: (1, Wout*Cout)
    o_ref: (1, 2, hin, Wout*Cout)   parity-grouped output rows
    """
    lo = x_ref[0, 0:hin, :]
    hi = x_ref[0, 1:hin + 1, :]
    b = b_ref[...]
    even = jnp.dot(lo, w_ref[1], preferred_element_type=jnp.float32) + b
    odd = (jnp.dot(hi, w_ref[0], preferred_element_type=jnp.float32)
           + jnp.dot(lo, w_ref[2], preferred_element_type=jnp.float32) + b)
    if relu:
        even = jnp.maximum(even, 0.0)
        odd = jnp.maximum(odd, 0.0)
    o_ref[0, 0] = even.astype(o_ref.dtype)
    o_ref[0, 1] = odd.astype(o_ref.dtype)


def _pool_kernel(x_ref, o_ref):
    """2x2 / stride-2 max pool (one image per grid step).

    The H pool pair sits on an untiled axis, the W pool pair on the two
    contiguous lane halves, so no strided/gather access is needed.

    x_ref: (oh, 2, ow, 2*C)
    o_ref: (oh, ow, C)
    """
    c = o_ref.shape[-1]
    v = jnp.maximum(x_ref[:, 0, :, :], x_ref[:, 1, :, :])
    o_ref[...] = jnp.maximum(v[:, :, 0:c], v[:, :, c:2 * c])


def _fc_stack_kernel(h_ref, w1_ref, b1_ref, w2_ref, b2_ref,
                     w3_ref, b3_ref, w4_ref, b4_ref, o_ref):
    """enc_fc1(+ReLU) -> enc_fc2 -> dec_fc1(+ReLU) -> dec_fc2(+ReLU), fused."""
    f32 = jnp.float32
    bf16 = jnp.bfloat16
    x = h_ref[...]
    z = jnp.dot(x, w1_ref[...], preferred_element_type=f32) + b1_ref[...]
    z = jnp.maximum(z, 0.0)
    # TODO(synk): dropout is eval-mode identity (no mask applied).
    z = jnp.dot(z.astype(bf16), w2_ref[...], preferred_element_type=f32) + b2_ref[...]
    # latent (output_activation=None) -> straight into the mirrored decoder FCs
    d = jnp.dot(z.astype(bf16), w3_ref[...], preferred_element_type=f32) + b3_ref[...]
    d = jnp.maximum(d, 0.0)
    d = jnp.dot(d.astype(bf16), w4_ref[...], preferred_element_type=f32) + b4_ref[...]
    d = jnp.maximum(d, 0.0)
    o_ref[...] = d.astype(o_ref.dtype)


# ------------------------------ kernel wrappers ------------------------------

def conv_rows(x_rows, w_packed, b_packed, *, oh, relu, out_dtype=jnp.bfloat16):
    n, hp, k = x_rows.shape
    kh, k2, nout = w_packed.shape
    assert k == k2 and hp == oh + kh - 1
    kernel = functools.partial(_rowconv_kernel, oh=oh, relu=relu)
    return pl.pallas_call(
        kernel,
        grid=(n,),
        in_specs=[pl.BlockSpec((1, hp, k), lambda i: (i, 0, 0)),
                  pl.BlockSpec((kh, k, nout), lambda i: (0, 0, 0)),
                  pl.BlockSpec((1, nout), lambda i: (0, 0))],
        out_specs=pl.BlockSpec((1, oh, nout), lambda i: (i, 0, 0)),
        out_shape=jax.ShapeDtypeStruct((n, oh, nout), out_dtype),
        compiler_params=_PARALLEL1,
    )(x_rows, w_packed, b_packed)


def deconv_rows(x_rows, w_packed, b_packed, *, hin, relu, out_dtype=jnp.bfloat16):
    n, hp, k = x_rows.shape
    kh, k2, nout = w_packed.shape
    assert k == k2 and kh == 3 and hp == hin + 1  # 3x3, stride 2 only
    kernel = functools.partial(_rowdeconv_kernel, hin=hin, relu=relu)
    return pl.pallas_call(
        kernel,
        grid=(n,),
        in_specs=[pl.BlockSpec((1, hp, k), lambda i: (i, 0, 0)),
                  pl.BlockSpec((kh, k, nout), lambda i: (0, 0, 0)),
                  pl.BlockSpec((1, nout), lambda i: (0, 0))],
        out_specs=pl.BlockSpec((1, 2, hin, nout), lambda i: (i, 0, 0, 0)),
        out_shape=jax.ShapeDtypeStruct((n, 2, hin, nout), out_dtype),
        compiler_params=_PARALLEL1,
    )(x_rows, w_packed, b_packed)


def maxpool2x2_rows(x_rows, *, h, w, c):
    """x_rows: (N, H, W*C) rows layout, H and W even -> (N, H/2, (W/2)*C)."""
    n = x_rows.shape[0]
    oh, ow = h // 2, w // 2
    xr = x_rows.reshape(n * oh, 2, ow, 2 * c)          # free reshape
    out = pl.pallas_call(
        _pool_kernel,
        grid=(n,),
        in_specs=[pl.BlockSpec((oh, 2, ow, 2 * c), lambda i: (i, 0, 0, 0))],
        out_specs=pl.BlockSpec((oh, ow, c), lambda i: (i, 0, 0)),
        out_shape=jax.ShapeDtypeStruct((n * oh, ow, c), x_rows.dtype),
        compiler_params=_PARALLEL1,
    )(xr)
    return out.reshape(n, oh, ow * c)


def fc_stack(h, packed):
    n, f = h.shape
    tm = n if n < 128 else 128                          # M-tile; weights resident
    grid = (pl.cdiv(n, tm),)
    names = ("fw1", "fb1", "fw2", "fb2", "fw3", "fb3", "fw4", "fb4")
    args = [packed[k] for k in names]
    in_specs = [pl.BlockSpec((tm, f), lambda i: (i, 0))]
    in_specs += [pl.BlockSpec(a.shape, lambda i: (0, 0)) for a in args]
    return pl.pallas_call(
        _fc_stack_kernel,
        grid=grid,
        in_specs=in_specs,
        out_specs=pl.BlockSpec((tm, FLAT), lambda i: (i, 0)),
        out_shape=jax.ShapeDtypeStruct((n, FLAT), jnp.bfloat16),
        compiler_params=_PARALLEL1,
    )(h, *args)


# --------------------- one-time host-side weight packing ---------------------

def _pack_conv_rows(w_oihw, w_in, w_out, pad=1):
    """Conv2d (Cout,Cin,kh,kw), stride 1 -> (kh, w_in*Cin, w_out*Cout) Toeplitz."""
    w = np.asarray(w_oihw, np.float32)
    co, ci, kh, kw = w.shape
    t = np.zeros((kh, w_in * ci, w_out * co), np.float32)
    for i in range(kh):
        for x in range(w_out):
            for j in range(kw):
                wc = x + j - pad
                if 0 <= wc < w_in:
                    t[i, wc * ci:(wc + 1) * ci, x * co:(x + 1) * co] = w[:, :, i, j].T
    return t


def _pack_deconv_rows(w_iohw, w_in, w_out, stride=2, pad=1):
    """ConvTranspose2d (Cin,Cout,kh,kw) -> (kh, w_in*Cin, w_out*Cout) Toeplitz
    with the stride-2 zero-dilation and padding folded in (x direction)."""
    w = np.asarray(w_iohw, np.float32)
    ci, co, kh, kw = w.shape
    t = np.zeros((kh, w_in * ci, w_out * co), np.float32)
    for i in range(kh):
        for xo in range(w_out):
            for xi in range(w_in):
                j = xo - stride * xi + pad
                if 0 <= j < kw:
                    t[i, xi * ci:(xi + 1) * ci, xo * co:(xo + 1) * co] = w[:, :, i, j]
    return t


def pack_params(p):
    """Hoists all weight repacking (transposes, Toeplitz expansion, flatten
    permutation, bf16 casts) out of the jitted forward path."""
    def npf(a):
        return np.asarray(a, np.float32)

    # NHWC-flat <-> NCHW-flat permutation of the 7x7xC2 bottleneck feature map.
    idx = np.arange(FLAT)
    nchw = (idx % C2) * (H2 * W2) + idx // C2

    return {
        # encoder convs (Toeplitz row-matmul form), bf16 weights / f32 bias
        "w1": jnp.asarray(_pack_conv_rows(p["enc_conv1_w"], W0, W0), jnp.bfloat16),
        "b1": jnp.asarray(np.tile(npf(p["enc_conv1_b"]), W0)[None, :]),
        "w2": jnp.asarray(_pack_conv_rows(p["enc_conv2_w"], W1, W1), jnp.bfloat16),
        "b2": jnp.asarray(np.tile(npf(p["enc_conv2_b"]), W1)[None, :]),
        # fused FC stack (pre-transposed; NCHW flatten order folded into fw1/fw4)
        "fw1": jnp.asarray(npf(p["enc_fc1_w"])[:, nchw].T, jnp.bfloat16),
        "fb1": jnp.asarray(npf(p["enc_fc1_b"])[None, :]),
        "fw2": jnp.asarray(npf(p["enc_fc2_w"]).T, jnp.bfloat16),
        "fb2": jnp.asarray(npf(p["enc_fc2_b"])[None, :]),
        "fw3": jnp.asarray(npf(p["dec_fc1_w"]).T, jnp.bfloat16),
        "fb3": jnp.asarray(npf(p["dec_fc1_b"])[None, :]),
        "fw4": jnp.asarray(npf(p["dec_fc2_w"])[nchw, :].T, jnp.bfloat16),
        "fb4": jnp.asarray(npf(p["dec_fc2_b"])[nchw][None, :]),
        # decoder transposed convs
        "dw1": jnp.asarray(_pack_deconv_rows(p["dec_deconv1_w"], W2, W1), jnp.bfloat16),
        "db1": jnp.asarray(np.tile(npf(p["dec_deconv1_b"]), W1)[None, :]),
        "dw2": jnp.asarray(_pack_deconv_rows(p["dec_deconv2_w"], W1, W0), jnp.bfloat16),
        "db2": jnp.asarray(np.tile(npf(p["dec_deconv2_b"]), W0)[None, :]),
    }


# --------------------------------- forward ----------------------------------

def ae_conv28_forward(packed, x_nchw):
    n = x_nchw.shape[0]

    # ----- encoder -----
    x = jnp.transpose(x_nchw, (0, 2, 3, 1)).astype(jnp.bfloat16)      # NHWC
    x = jnp.pad(x, ((0, 0), (1, 1), (0, 0), (0, 0)))                  # pad H only
    x = x.reshape(n, H0 + 2, W0 * C_IN)                               # rows layout

    h1 = conv_rows(x, packed["w1"], packed["b1"], oh=H0, relu=True)   # (n,28,448)
    p1 = maxpool2x2_rows(h1, h=H0, w=W0, c=C1)                        # (n,14,224)
    p1 = jnp.pad(p1, ((0, 0), (1, 1), (0, 0)))                        # (n,16,224)

    h2 = conv_rows(p1, packed["w2"], packed["b2"], oh=H1, relu=True)  # (n,14,448)
    p2 = maxpool2x2_rows(h2, h=H1, w=W1, c=C2)                        # (n,7,224)
    h_flat = p2.reshape(n, FLAT)                                      # NHWC-flat

    # ----- fused FC head + mirrored decoder FCs -----
    d = fc_stack(h_flat, packed)                                      # (n,1568)

    # ----- decoder transposed convs -----
    d = d.reshape(n, H2, W2 * C2)                                     # (n,7,224)
    d = jnp.pad(d, ((0, 0), (0, 1), (0, 0)))                          # zero row 7
    g1 = deconv_rows(d, packed["dw1"], packed["db1"], hin=H2, relu=True)
    g1 = jnp.transpose(g1, (0, 2, 1, 3)).reshape(n, H1, W1 * C1)      # interleave rows
    g1 = jnp.pad(g1, ((0, 0), (0, 1), (0, 0)))                        # zero row 14

    g2 = deconv_rows(g1, packed["dw2"], packed["db2"], hin=H1, relu=False,
                     out_dtype=jnp.float32)                            # (n,2,14,84)
    img = jnp.transpose(g2, (0, 2, 1, 3)).reshape(n, H0, W0, C_IN)     # NHWC
    return jnp.transpose(img, (0, 3, 1, 2))                            # NCHW


# ------------------------------ parameter init -------------------------------

def init_params(key, in_ch=C_IN, hidden=HID):
    ks = jax.random.split(key, 16)
    s = 0.05
    return {
        "enc_conv1_w": s * jax.random.normal(ks[0], (C1, in_ch, 3, 3), jnp.float32),
        "enc_conv1_b": s * jax.random.normal(ks[1], (C1,), jnp.float32),
        "enc_conv2_w": s * jax.random.normal(ks[2], (C2, C1, 3, 3), jnp.float32),
        "enc_conv2_b": s * jax.random.normal(ks[3], (C2,), jnp.float32),
        "enc_fc1_w": s * jax.random.normal(ks[4], (hidden, FLAT), jnp.float32),
        "enc_fc1_b": s * jax.random.normal(ks[5], (hidden,), jnp.float32),
        "enc_fc2_w": s * jax.random.normal(ks[6], (hidden, hidden), jnp.float32),
        "enc_fc2_b": s * jax.random.normal(ks[7], (hidden,), jnp.float32),
        "dec_fc1_w": s * jax.random.normal(ks[8], (hidden, hidden), jnp.float32),
        "dec_fc1_b": s * jax.random.normal(ks[9], (hidden,), jnp.float32),
        "dec_fc2_w": s * jax.random.normal(ks[10], (FLAT, hidden), jnp.float32),
        "dec_fc2_b": s * jax.random.normal(ks[11], (FLAT,), jnp.float32),
        "dec_deconv1_w": s * jax.random.normal(ks[12], (C2, C1, 3, 3), jnp.float32),
        "dec_deconv1_b": s * jax.random.normal(ks[13], (C1,), jnp.float32),
        "dec_deconv2_w": s * jax.random.normal(ks[14], (C1, in_ch, 3, 3), jnp.float32),
        "dec_deconv2_b": s * jax.random.normal(ks[15], (in_ch,), jnp.float32),
    }


if __name__ == "__main__":
    key = jax.random.PRNGKey(0)
    k_x, k_p = jax.random.split(key)
    x = jax.random.normal(k_x, (2, 3, 28, 28), dtype=jnp.float32)

    params = init_params(k_p)
    packed = pack_params(params)          # one-time, outside the jitted forward

    fwd = jax.jit(ae_conv28_forward)
    y = fwd(packed, x)
    jax.block_until_ready(y)

    assert y.shape == (2, 3, 28, 28), y.shape
    assert bool(jnp.all(jnp.isfinite(y)))
    print("KERNEL_OK")
</pallas_src>

<mosaic_0001>
module attributes {stable_mosaic.version = 11 : i64} {
  func.func @_rowconv_kernel(%arg0: i32, %arg1: memref<1x30x84xbf16, #tpu.memory_space<vmem>>, %arg2: memref<3x84x448xbf16, #tpu.memory_space<vmem>>, %arg3: memref<1x448xf32, #tpu.memory_space<vmem>>, %arg4: memref<1x28x448xbf16, #tpu.memory_space<vmem>>) attributes {dimension_semantics = [#tpu.dimension_semantics<parallel>], iteration_bounds = array<i64: 2>, scalar_prefetch = 0 : i64, scratch_operands = 0 : i64, tpu.core_type = #tpu.core_type<tc>, window_params = [{transform_indices = @transform_0, window_bounds = array<i64: 1, 30, 84>}, {pipeline_mode = #tpu.pipeline_mode<synchronous>, transform_indices = @transform_1, window_bounds = array<i64: 3, 84, 448>}, {pipeline_mode = #tpu.pipeline_mode<synchronous>, transform_indices = @transform_2, window_bounds = array<i64: 1, 448>}, {transform_indices = @transform_3, window_bounds = array<i64: 1, 28, 448>}]} {
    %c0 = arith.constant 0 : index
    %c0_0 = arith.constant 0 : index
    %c0_1 = arith.constant 0 : index
    %0 = vector.load %arg1[%c0, %c0_0, %c0_1] : memref<1x30x84xbf16, #tpu.memory_space<vmem>>, vector<1x28x84xbf16>
    %1 = vector.shape_cast %0 : vector<1x28x84xbf16> to vector<28x84xbf16>
    %c0_2 = arith.constant 0 : index
    %c0_3 = arith.constant 0 : index
    %c0_4 = arith.constant 0 : index
    %2 = vector.load %arg2[%c0_2, %c0_3, %c0_4] : memref<3x84x448xbf16, #tpu.memory_space<vmem>>, vector<1x84x448xbf16>
    %3 = vector.shape_cast %2 : vector<1x84x448xbf16> to vector<84x448xbf16>
    %cst = arith.constant dense<0.000000e+00> : vector<28x448xf32>
    %4 = tpu.matmul %1, %3, %cst {dimension_numbers = #tpu.dot_dimension_numbers<[1], [0], [0], [1], [0, 0, 1, 1], [], []>} : vector<28x84xbf16>, vector<84x448xbf16>, vector<28x448xf32> -> vector<28x448xf32>
    %c0_5 = arith.constant 0 : index
    %c1 = arith.constant 1 : index
    %c0_6 = arith.constant 0 : index
    %5 = vector.load %arg1[%c0_5, %c1, %c0_6] : memref<1x30x84xbf16, #tpu.memory_space<vmem>>, vector<1x28x84xbf16>
    %6 = vector.shape_cast %5 : vector<1x28x84xbf16> to vector<28x84xbf16>
    %c1_7 = arith.constant 1 : index
    %c0_8 = arith.constant 0 : index
    %c0_9 = arith.constant 0 : index
    %7 = vector.load %arg2[%c1_7, %c0_8, %c0_9] : memref<3x84x448xbf16, #tpu.memory_space<vmem>>, vector<1x84x448xbf16>
    %8 = vector.shape_cast %7 : vector<1x84x448xbf16> to vector<84x448xbf16>
    %cst_10 = arith.constant dense<0.000000e+00> : vector<28x448xf32>
    %9 = tpu.matmul %6, %8, %cst_10 {dimension_numbers = #tpu.dot_dimension_numbers<[1], [0], [0], [1], [0, 0, 1, 1], [], []>} : vector<28x84xbf16>, vector<84x448xbf16>, vector<28x448xf32> -> vector<28x448xf32>
    %10 = arith.addf %4, %9 : vector<28x448xf32>
    %c0_11 = arith.constant 0 : index
    %c2 = arith.constant 2 : index
    %c0_12 = arith.constant 0 : index
    %11 = vector.load %arg1[%c0_11, %c2, %c0_12] : memref<1x30x84xbf16, #tpu.memory_space<vmem>>, vector<1x28x84xbf16>
    %12 = vector.shape_cast %11 : vector<1x28x84xbf16> to vector<28x84xbf16>
    %c2_13 = arith.constant 2 : index
    %c0_14 = arith.constant 0 : index
    %c0_15 = arith.constant 0 : index
    %13 = vector.load %arg2[%c2_13, %c0_14, %c0_15] : memref<3x84x448xbf16, #tpu.memory_space<vmem>>, vector<1x84x448xbf16>
    %14 = vector.shape_cast %13 : vector<1x84x448xbf16> to vector<84x448xbf16>
    %cst_16 = arith.constant dense<0.000000e+00> : vector<28x448xf32>
    %15 = tpu.matmul %12, %14, %cst_16 {dimension_numbers = #tpu.dot_dimension_numbers<[1], [0], [0], [1], [0, 0, 1, 1], [], []>} : vector<28x84xbf16>, vector<84x448xbf16>, vector<28x448xf32> -> vector<28x448xf32>
    %16 = arith.addf %10, %15 : vector<28x448xf32>
    %c0_17 = arith.constant 0 : index
    %c0_18 = arith.constant 0 : index
    %17 = vector.load %arg3[%c0_17, %c0_18] : memref<1x448xf32, #tpu.memory_space<vmem>>, vector<1x448xf32>
    %18 = vector.broadcast %17 : vector<1x448xf32> to vector<28x448xf32>
    %19 = arith.addf %16, %18 : vector<28x448xf32>
    %cst_19 = arith.constant 0.000000e+00 : f32
    %20 = vector.broadcast %cst_19 : f32 to vector<28x448xf32>
    %21 = arith.maximumf %19, %20 : vector<28x448xf32>
    %22 = arith.truncf %21 : vector<28x448xf32> to vector<28x448xbf16>
    %c0_20 = arith.constant 0 : index
    %c0_21 = arith.constant 0 : index
    %c0_22 = arith.constant 0 : index
    %23 = vector.load %arg4[%c0_20, %c0_21, %c0_22] : memref<1x28x448xbf16, #tpu.memory_space<vmem>>, vector<1x28x448xbf16>
    %24 = vector.shape_cast %23 : vector<1x28x448xbf16> to vector<28x448xbf16>
    %25 = vector.shape_cast %22 : vector<28x448xbf16> to vector<1x28x448xbf16>
    tpu.vector_store %arg4[%c0_20, %c0_21, %c0_22], %25 {strides = array<i32>} : memref<1x28x448xbf16, #tpu.memory_space<vmem>>, vector<1x28x448xbf16>,
    return
  }
  func.func @transform_0(%arg0: i32) -> (i32, i32, i32) {
    %c0_i32 = arith.constant 0 : i32
    %c0_i32_0 = arith.constant 0 : i32
    %c0_i32_1 = arith.constant 0 : i32
    return %arg0, %c0_i32, %c0_i32_0 : i32, i32, i32
  }
  func.func @transform_1(%arg0: i32) -> (i32, i32, i32) {
    %c0_i32 = arith.constant 0 : i32
    %c0_i32_0 = arith.constant 0 : i32
    %c0_i32_1 = arith.constant 0 : i32
    %c0_i32_2 = arith.constant 0 : i32
    return %c0_i32, %c0_i32_0, %c0_i32_1 : i32, i32, i32
  }
  func.func @transform_2(%arg0: i32) -> (i32, i32) {
    %c0_i32 = arith.constant 0 : i32
    %c0_i32_0 = arith.constant 0 : i32
    %c0_i32_1 = arith.constant 0 : i32
    return %c0_i32, %c0_i32_0 : i32, i32
  }
  func.func @transform_3(%arg0: i32) -> (i32, i32, i32) {
    %c0_i32 = arith.constant 0 : i32
    %c0_i32_0 = arith.constant 0 : i32
    %c0_i32_1 = arith.constant 0 : i32
    return %arg0, %c0_i32, %c0_i32_0 : i32, i32, i32
  }
}

module attributes {stable_mosaic.version = 11 : i64} {
  func.func @_pool_kernel(%arg0: i32, %arg1: memref<14x2x14x32xbf16, #tpu.memory_space<vmem>>, %arg2: memref<14x14x16xbf16, #tpu.memory_space<vmem>>) attributes {dimension_semantics = [#tpu.dimension_semantics<parallel>], iteration_bounds = array<i64: 2>, scalar_prefetch = 0 : i64, scratch_operands = 0 : i64, tpu.core_type = #tpu.core_type<tc>, window_params = [{transform_indices = @transform_0, window_bounds = array<i64: 14, 2, 14, 32>}, {transform_indices = @transform_1, window_bounds = array<i64: 14, 14, 16>}]} {
    %c0 = arith.constant 0 : index
    %c0_0 = arith.constant 0 : index
    %c0_1 = arith.constant 0 : index
    %c0_2 = arith.constant 0 : index
    %0 = vector.load %arg1[%c0, %c0_0, %c0_1, %c0_2] : memref<14x2x14x32xbf16, #tpu.memory_space<vmem>>, vector<14x1x14x32xbf16>
    %1 = vector.shape_cast %0 : vector<14x1x14x32xbf16> to vector<14x14x32xbf16>
    %c0_3 = arith.constant 0 : index
    %c1 = arith.constant 1 : index
    %c0_4 = arith.constant 0 : index
    %c0_5 = arith.constant 0 : index
    %2 = vector.load %arg1[%c0_3, %c1, %c0_4, %c0_5] : memref<14x2x14x32xbf16, #tpu.memory_space<vmem>>, vector<14x1x14x32xbf16>
    %3 = vector.shape_cast %2 : vector<14x1x14x32xbf16> to vector<14x14x32xbf16>
    %4 = arith.maximumf %1, %3 : vector<14x14x32xbf16>
    %5 = vector.extract_strided_slice %4 {offsets = [0, 0, 0], sizes = [14, 14, 16], strides = [1, 1, 1]} : vector<14x14x32xbf16> to vector<14x14x16xbf16>
    %6 = vector.extract_strided_slice %4 {offsets = [0, 0, 16], sizes = [14, 14, 16], strides = [1, 1, 1]} : vector<14x14x32xbf16> to vector<14x14x16xbf16>
    %7 = arith.maximumf %5, %6 : vector<14x14x16xbf16>
    %c0_6 = arith.constant 0 : index
    %c0_7 = arith.constant 0 : index
    %c0_8 = arith.constant 0 : index
    %8 = vector.load %arg2[%c0_6, %c0_7, %c0_8] : memref<14x14x16xbf16, #tpu.memory_space<vmem>>, vector<14x14x16xbf16>
    tpu.vector_store %arg2[%c0_6, %c0_7, %c0_8], %7 {strides = array<i32>} : memref<14x14x16xbf16, #tpu.memory_space<vmem>>, vector<14x14x16xbf16>,
    return
  }
  func.func @transform_0(%arg0: i32) -> (i32, i32, i32, i32) {
    %c0_i32 = arith.constant 0 : i32
    %c0_i32_0 = arith.constant 0 : i32
    %c0_i32_1 = arith.constant 0 : i32
    %c0_i32_2 = arith.constant 0 : i32
    return %arg0, %c0_i32, %c0_i32_0, %c0_i32_1 : i32, i32, i32, i32
  }
  func.func @transform_1(%arg0: i32) -> (i32, i32, i32) {
    %c0_i32 = arith.constant 0 : i32
    %c0_i32_0 = arith.constant 0 : i32
    %c0_i32_1 = arith.constant 0 : i32
    return %arg0, %c0_i32, %c0_i32_0 : i32, i32, i32
  }
}

module attributes {stable_mosaic.version = 11 : i64} {
  func.func @_rowconv_kernel(%arg0: i32, %arg1: memref<1x16x224xbf16, #tpu.memory_space<vmem>>, %arg2: memref<3x224x448xbf16, #tpu.memory_space<vmem>>, %arg3: memref<1x448xf32, #tpu.memory_space<vmem>>, %arg4: memref<1x14x448xbf16, #tpu.memory_space<vmem>>) attributes {dimension_semantics = [#tpu.dimension_semantics<parallel>], iteration_bounds = array<i64: 2>, scalar_prefetch = 0 : i64, scratch_operands = 0 : i64, tpu.core_type = #tpu.core_type<tc>, window_params = [{transform_indices = @transform_0, window_bounds = array<i64: 1, 16, 224>}, {pipeline_mode = #tpu.pipeline_mode<synchronous>, transform_indices = @transform_1, window_bounds = array<i64: 3, 224, 448>}, {pipeline_mode = #tpu.pipeline_mode<synchronous>, transform_indices = @transform_2, window_bounds = array<i64: 1, 448>}, {transform_indices = @transform_3, window_bounds = array<i64: 1, 14, 448>}]} {
    %c0 = arith.constant 0 : index
    %c0_0 = arith.constant 0 : index
    %c0_1 = arith.constant 0 : index
    %0 = vector.load %arg1[%c0, %c0_0, %c0_1] : memref<1x16x224xbf16, #tpu.memory_space<vmem>>, vector<1x14x224xbf16>
    %1 = vector.shape_cast %0 : vector<1x14x224xbf16> to vector<14x224xbf16>
    %c0_2 = arith.constant 0 : index
    %c0_3 = arith.constant 0 : index
    %c0_4 = arith.constant 0 : index
    %2 = vector.load %arg2[%c0_2, %c0_3, %c0_4] : memref<3x224x448xbf16, #tpu.memory_space<vmem>>, vector<1x224x448xbf16>
    %3 = vector.shape_cast %2 : vector<1x224x448xbf16> to vector<224x448xbf16>
    %cst = arith.constant dense<0.000000e+00> : vector<14x448xf32>
    %4 = tpu.matmul %1, %3, %cst {dimension_numbers = #tpu.dot_dimension_numbers<[1], [0], [0], [1], [0, 0, 1, 1], [], []>} : vector<14x224xbf16>, vector<224x448xbf16>, vector<14x448xf32> -> vector<14x448xf32>
    %c0_5 = arith.constant 0 : index
    %c1 = arith.constant 1 : index
    %c0_6 = arith.constant 0 : index
    %5 = vector.load %arg1[%c0_5, %c1, %c0_6] : memref<1x16x224xbf16, #tpu.memory_space<vmem>>, vector<1x14x224xbf16>
    %6 = vector.shape_cast %5 : vector<1x14x224xbf16> to vector<14x224xbf16>
    %c1_7 = arith.constant 1 : index
    %c0_8 = arith.constant 0 : index
    %c0_9 = arith.constant 0 : index
    %7 = vector.load %arg2[%c1_7, %c0_8, %c0_9] : memref<3x224x448xbf16, #tpu.memory_space<vmem>>, vector<1x224x448xbf16>
    %8 = vector.shape_cast %7 : vector<1x224x448xbf16> to vector<224x448xbf16>
    %cst_10 = arith.constant dense<0.000000e+00> : vector<14x448xf32>
    %9 = tpu.matmul %6, %8, %cst_10 {dimension_numbers = #tpu.dot_dimension_numbers<[1], [0], [0], [1], [0, 0, 1, 1], [], []>} : vector<14x224xbf16>, vector<224x448xbf16>, vector<14x448xf32> -> vector<14x448xf32>
    %10 = arith.addf %4, %9 : vector<14x448xf32>
    %c0_11 = arith.constant 0 : index
    %c2 = arith.constant 2 : index
    %c0_12 = arith.constant 0 : index
    %11 = vector.load %arg1[%c0_11, %c2, %c0_12] : memref<1x16x224xbf16, #tpu.memory_space<vmem>>, vector<1x14x224xbf16>
    %12 = vector.shape_cast %11 : vector<1x14x224xbf16> to vector<14x224xbf16>
    %c2_13 = arith.constant 2 : index
    %c0_14 = arith.constant 0 : index
    %c0_15 = arith.constant 0 : index
    %13 = vector.load %arg2[%c2_13, %c0_14, %c0_15] : memref<3x224x448xbf16, #tpu.memory_space<vmem>>, vector<1x224x448xbf16>
    %14 = vector.shape_cast %13 : vector<1x224x448xbf16> to vector<224x448xbf16>
    %cst_16 = arith.constant dense<0.000000e+00> : vector<14x448xf32>
    %15 = tpu.matmul %12, %14, %cst_16 {dimension_numbers = #tpu.dot_dimension_numbers<[1], [0], [0], [1], [0, 0, 1, 1], [], []>} : vector<14x224xbf16>, vector<224x448xbf16>, vector<14x448xf32> -> vector<14x448xf32>
    %16 = arith.addf %10, %15 : vector<14x448xf32>
    %c0_17 = arith.constant 0 : index
    %c0_18 = arith.constant 0 : index
    %17 = vector.load %arg3[%c0_17, %c0_18] : memref<1x448xf32, #tpu.memory_space<vmem>>, vector<1x448xf32>
    %18 = vector.broadcast %17 : vector<1x448xf32> to vector<14x448xf32>
    %19 = arith.addf %16, %18 : vector<14x448xf32>
    %cst_19 = arith.constant 0.000000e+00 : f32
    %20 = vector.broadcast %cst_19 : f32 to vector<14x448xf32>
    %21 = arith.maximumf %19, %20 : vector<14x448xf32>
    %22 = arith.truncf %21 : vector<14x448xf32> to vector<14x448xbf16>
    %c0_20 = arith.constant 0 : index
    %c0_21 = arith.constant 0 : index
    %c0_22 = arith.constant 0 : index
    %23 = vector.load %arg4[%c0_20, %c0_21, %c0_22] : memref<1x14x448xbf16, #tpu.memory_space<vmem>>, vector<1x14x448xbf16>
    %24 = vector.shape_cast %23 : vector<1x14x448xbf16> to vector<14x448xbf16>
    %25 = vector.shape_cast %22 : vector<14x448xbf16> to vector<1x14x448xbf16>
    tpu.vector_store %arg4[%c0_20, %c0_21, %c0_22], %25 {strides = array<i32>} : memref<1x14x448xbf16, #tpu.memory_space<vmem>>, vector<1x14x448xbf16>,
    return
  }
  func.func @transform_0(%arg0: i32) -> (i32, i32, i32) {
    %c0_i32 = arith.constant 0 : i32
    %c0_i32_0 = arith.constant 0 : i32
    %c0_i32_1 = arith.constant 0 : i32
    return %arg0, %c0_i32, %c0_i32_0 : i32, i32, i32
  }
  func.func @transform_1(%arg0: i32) -> (i32, i32, i32) {
    %c0_i32 = arith.constant 0 : i32
    %c0_i32_0 = arith.constant 0 : i32
    %c0_i32_1 = arith.constant 0 : i32
    %c0_i32_2 = arith.constant 0 : i32
    return %c0_i32, %c0_i32_0, %c0_i32_1 : i32, i32, i32
  }
  func.func @transform_2(%arg0: i32) -> (i32, i32) {
    %c0_i32 = arith.constant 0 : i32
    %c0_i32_0 = arith.constant 0 : i32
    %c0_i32_1 = arith.constant 0 : i32
    return %c0_i32, %c0_i32_0 : i32, i32
  }
  func.func @transform_3(%arg0: i32) -> (i32, i32, i32) {
    %c0_i32 = arith.constant 0 : i32
    %c0_i32_0 = arith.constant 0 : i32
    %c0_i32_1 = arith.constant 0 : i32
    return %arg0, %c0_i32, %c0_i32_0 : i32, i32, i32
  }
}

module attributes {stable_mosaic.version = 11 : i64} {
  func.func @_pool_kernel(%arg0: i32, %arg1: memref<7x2x7x64xbf16, #tpu.memory_space<vmem>>, %arg2: memref<7x7x32xbf16, #tpu.memory_space<vmem>>) attributes {dimension_semantics = [#tpu.dimension_semantics<parallel>], iteration_bounds = array<i64: 2>, scalar_prefetch = 0 : i64, scratch_operands = 0 : i64, tpu.core_type = #tpu.core_type<tc>, window_params = [{transform_indices = @transform_0, window_bounds = array<i64: 7, 2, 7, 64>}, {transform_indices = @transform_1, window_bounds = array<i64: 7, 7, 32>}]} {
    %c0 = arith.constant 0 : index
    %c0_0 = arith.constant 0 : index
    %c0_1 = arith.constant 0 : index
    %c0_2 = arith.constant 0 : index
    %0 = vector.load %arg1[%c0, %c0_0, %c0_1, %c0_2] : memref<7x2x7x64xbf16, #tpu.memory_space<vmem>>, vector<7x1x7x64xbf16>
    %1 = vector.shape_cast %0 : vector<7x1x7x64xbf16> to vector<7x7x64xbf16>
    %c0_3 = arith.constant 0 : index
    %c1 = arith.constant 1 : index
    %c0_4 = arith.constant 0 : index
    %c0_5 = arith.constant 0 : index
    %2 = vector.load %arg1[%c0_3, %c1, %c0_4, %c0_5] : memref<7x2x7x64xbf16, #tpu.memory_space<vmem>>, vector<7x1x7x64xbf16>
    %3 = vector.shape_cast %2 : vector<7x1x7x64xbf16> to vector<7x7x64xbf16>
    %4 = arith.maximumf %1, %3 : vector<7x7x64xbf16>
    %5 = vector.extract_strided_slice %4 {offsets = [0, 0, 0], sizes = [7, 7, 32], strides = [1, 1, 1]} : vector<7x7x64xbf16> to vector<7x7x32xbf16>
    %6 = vector.extract_strided_slice %4 {offsets = [0, 0, 32], sizes = [7, 7, 32], strides = [1, 1, 1]} : vector<7x7x64xbf16> to vector<7x7x32xbf16>
    %7 = arith.maximumf %5, %6 : vector<7x7x32xbf16>
    %c0_6 = arith.constant 0 : index
    %c0_7 = arith.constant 0 : index
    %c0_8 = arith.constant 0 : index
    %8 = vector.load %arg2[%c0_6, %c0_7, %c0_8] : memref<7x7x32xbf16, #tpu.memory_space<vmem>>, vector<7x7x32xbf16>
    tpu.vector_store %arg2[%c0_6, %c0_7, %c0_8], %7 {strides = array<i32>} : memref<7x7x32xbf16, #tpu.memory_space<vmem>>, vector<7x7x32xbf16>,
    return
  }
  func.func @transform_0(%arg0: i32) -> (i32, i32, i32, i32) {
    %c0_i32 = arith.constant 0 : i32
    %c0_i32_0 = arith.constant 0 : i32
    %c0_i32_1 = arith.constant 0 : i32
    %c0_i32_2 = arith.constant 0 : i32
    return %arg0, %c0_i32, %c0_i32_0, %c0_i32_1 : i32, i32, i32, i32
  }
  func.func @transform_1(%arg0: i32) -> (i32, i32, i32) {
    %c0_i32 = arith.constant 0 : i32
    %c0_i32_0 = arith.constant 0 : i32
    %c0_i32_1 = arith.constant 0 : i32
    return %arg0, %c0_i32, %c0_i32_0 : i32, i32, i32
  }
}

module attributes {stable_mosaic.version = 11 : i64} {
  func.func @_fc_stack_kernel(%arg0: i32, %arg1: memref<2x1568xbf16, #tpu.memory_space<vmem>>, %arg2: memref<1568x32xbf16, #tpu.memory_space<vmem>>, %arg3: memref<1x32xf32, #tpu.memory_space<vmem>>, %arg4: memref<32x32xbf16, #tpu.memory_space<vmem>>, %arg5: memref<1x32xf32, #tpu.memory_space<vmem>>, %arg6: memref<32x32xbf16, #tpu.memory_space<vmem>>, %arg7: memref<1x32xf32, #tpu.memory_space<vmem>>, %arg8: memref<32x1568xbf16, #tpu.memory_space<vmem>>, %arg9: memref<1x1568xf32, #tpu.memory_space<vmem>>, %arg10: memref<2x1568xbf16, #tpu.memory_space<vmem>>) attributes {dimension_semantics = [#tpu.dimension_semantics<parallel>], iteration_bounds = array<i64: 1>, scalar_prefetch = 0 : i64, scratch_operands = 0 : i64, tpu.core_type = #tpu.core_type<tc>, window_params = [{transform_indices = @transform_0, window_bounds = array<i64: 2, 1568>}, {pipeline_mode = #tpu.pipeline_mode<synchronous>, transform_indices = @transform_1, window_bounds = array<i64: 1568, 32>}, {pipeline_mode = #tpu.pipeline_mode<synchronous>, transform_indices = @transform_2, window_bounds = array<i64: 1, 32>}, {pipeline_mode = #tpu.pipeline_mode<synchronous>, transform_indices = @transform_3, window_bounds = array<i64: 32, 32>}, {pipeline_mode = #tpu.pipeline_mode<synchronous>, transform_indices = @transform_4, window_bounds = array<i64: 1, 32>}, {pipeline_mode = #tpu.pipeline_mode<synchronous>, transform_indices = @transform_5, window_bounds = array<i64: 32, 32>}, {pipeline_mode = #tpu.pipeline_mode<synchronous>, transform_indices = @transform_6, window_bounds = array<i64: 1, 32>}, {pipeline_mode = #tpu.pipeline_mode<synchronous>, transform_indices = @transform_7, window_bounds = array<i64: 32, 1568>}, {pipeline_mode = #tpu.pipeline_mode<synchronous>, transform_indices = @transform_8, window_bounds = array<i64: 1, 1568>}, {transform_indices = @transform_9, window_bounds = array<i64: 2, 1568>}]} {
    %c0 = arith.constant 0 : index
    %c0_0 = arith.constant 0 : index
    %0 = vector.load %arg1[%c0, %c0_0] : memref<2x1568xbf16, #tpu.memory_space<vmem>>, vector<2x1568xbf16>
    %c0_1 = arith.constant 0 : index
    %c0_2 = arith.constant 0 : index
    %1 = vector.load %arg2[%c0_1, %c0_2] : memref<1568x32xbf16, #tpu.memory_space<vmem>>, vector<1568x32xbf16>
    %cst = arith.constant dense<0.000000e+00> : vector<2x32xf32>
    %2 = tpu.matmul %0, %1, %cst {dimension_numbers = #tpu.dot_dimension_numbers<[1], [0], [0], [1], [0, 0, 1, 1], [], []>} : vector<2x1568xbf16>, vector<1568x32xbf16>, vector<2x32xf32> -> vector<2x32xf32>
    %c0_3 = arith.constant 0 : index
    %c0_4 = arith.constant 0 : index
    %3 = vector.load %arg3[%c0_3, %c0_4] : memref<1x32xf32, #tpu.memory_space<vmem>>, vector<1x32xf32>
    %4 = vector.broadcast %3 : vector<1x32xf32> to vector<2x32xf32>
    %5 = arith.addf %2, %4 : vector<2x32xf32>
    %cst_5 = arith.constant 0.000000e+00 : f32
    %6 = vector.broadcast %cst_5 : f32 to vector<2x32xf32>
    %7 = arith.maximumf %5, %6 : vector<2x32xf32>
    %8 = arith.truncf %7 : vector<2x32xf32> to vector<2x32xbf16>
    %c0_6 = arith.constant 0 : index
    %c0_7 = arith.constant 0 : index
    %9 = vector.load %arg4[%c0_6, %c0_7] : memref<32x32xbf16, #tpu.memory_space<vmem>>, vector<32x32xbf16>
    %cst_8 = arith.constant dense<0.000000e+00> : vector<2x32xf32>
    %10 = tpu.matmul %8, %9, %cst_8 {dimension_numbers = #tpu.dot_dimension_numbers<[1], [0], [0], [1], [0, 0, 1, 1], [], []>} : vector<2x32xbf16>, vector<32x32xbf16>, vector<2x32xf32> -> vector<2x32xf32>
    %c0_9 = arith.constant 0 : index
    %c0_10 = arith.constant 0 : index
    %11 = vector.load %arg5[%c0_9, %c0_10] : memref<1x32xf32, #tpu.memory_space<vmem>>, vector<1x32xf32>
    %12 = vector.broadcast %11 : vector<1x32xf32> to vector<2x32xf32>
    %13 = arith.addf %10, %12 : vector<2x32xf32>
    %14 = arith.truncf %13 : vector<2x32xf32> to vector<2x32xbf16>
    %c0_11 = arith.constant 0 : index
    %c0_12 = arith.constant 0 : index
    %15 = vector.load %arg6[%c0_11, %c0_12] : memref<32x32xbf16, #tpu.memory_space<vmem>>, vector<32x32xbf16>
    %cst_13 = arith.constant dense<0.000000e+00> : vector<2x32xf32>
    %16 = tpu.matmul %14, %15, %cst_13 {dimension_numbers = #tpu.dot_dimension_numbers<[1], [0], [0], [1], [0, 0, 1, 1], [], []>} : vector<2x32xbf16>, vector<32x32xbf16>, vector<2x32xf32> -> vector<2x32xf32>
    %c0_14 = arith.constant 0 : index
    %c0_15 = arith.constant 0 : index
    %17 = vector.load %arg7[%c0_14, %c0_15] : memref<1x32xf32, #tpu.memory_space<vmem>>, vector<1x32xf32>
    %18 = vector.broadcast %17 : vector<1x32xf32> to vector<2x32xf32>
    %19 = arith.addf %16, %18 : vector<2x32xf32>
    %cst_16 = arith.constant 0.000000e+00 : f32
    %20 = vector.broadcast %cst_16 : f32 to vector<2x32xf32>
    %21 = arith.maximumf %19, %20 : vector<2x32xf32>
    %22 = arith.truncf %21 : vector<2x32xf32> to vector<2x32xbf16>
    %c0_17 = arith.constant 0 : index
    %c0_18 = arith.constant 0 : index
    %23 = vector.load %arg8[%c0_17, %c0_18] : memref<32x1568xbf16, #tpu.memory_space<vmem>>, vector<32x1568xbf16>
    %cst_19 = arith.constant dense<0.000000e+00> : vector<2x1568xf32>
    %24 = tpu.matmul %22, %23, %cst_19 {dimension_numbers = #tpu.dot_dimension_numbers<[1], [0], [0], [1], [0, 0, 1, 1], [], []>} : vector<2x32xbf16>, vector<32x1568xbf16>, vector<2x1568xf32> -> vector<2x1568xf32>
    %c0_20 = arith.constant 0 : index
    %c0_21 = arith.constant 0 : index
    %25 = vector.load %arg9[%c0_20, %c0_21] : memref<1x1568xf32, #tpu.memory_space<vmem>>, vector<1x1568xf32>
    %26 = vector.broadcast %25 : vector<1x1568xf32> to vector<2x1568xf32>
    %27 = arith.addf %24, %26 : vector<2x1568xf32>
    %cst_22 = arith.constant 0.000000e+00 : f32
    %28 = vector.broadcast %cst_22 : f32 to vector<2x1568xf32>
    %29 = arith.maximumf %27, %28 : vector<2x1568xf32>
    %30 = arith.truncf %29 : vector<2x1568xf32> to vector<2x1568xbf16>
    %c0_23 = arith.constant 0 : index
    %c0_24 = arith.constant 0 : index
    %31 = vector.load %arg10[%c0_23, %c0_24] : memref<2x1568xbf16, #tpu.memory_space<vmem>>, vector<2x1568xbf16>
    tpu.vector_store %arg10[%c0_23, %c0_24], %30 {strides = array<i32>} : memref<2x1568xbf16, #tpu.memory_space<vmem>>, vector<2x1568xbf16>,
    return
  }
  func.func @transform_0(%arg0: i32) -> (i32, i32) {
    %c0_i32 = arith.constant 0 : i32
    %c0_i32_0 = arith.constant 0 : i32
    return %arg0, %c0_i32 : i32, i32
  }
  func.func @transform_1(%arg0: i32) -> (i32, i32) {
    %c0_i32 = arith.constant 0 : i32
    %c0_i32_0 = arith.constant 0 : i32
    %c0_i32_1 = arith.constant 0 : i32
    return %c0_i32, %c0_i32_0 : i32, i32
  }
  func.func @transform_2(%arg0: i32) -> (i32, i32) {
    %c0_i32 = arith.constant 0 : i32
    %c0_i32_0 = arith.constant 0 : i32
    %c0_i32_1 = arith.constant 0 : i32
    return %c0_i32, %c0_i32_0 : i32, i32
  }
  func.func @transform_3(%arg0: i32) -> (i32, i32) {
    %c0_i32 = arith.constant 0 : i32
    %c0_i32_0 = arith.constant 0 : i32
    %c0_i32_1 = arith.constant 0 : i32
    return %c0_i32, %c0_i32_0 : i32, i32
  }
  func.func @transform_4(%arg0: i32) -> (i32, i32) {
    %c0_i32 = arith.constant 0 : i32
    %c0_i32_0 = arith.constant 0 : i32
    %c0_i32_1 = arith.constant 0 : i32
    return %c0_i32, %c0_i32_0 : i32, i32
  }
  func.func @transform_5(%arg0: i32) -> (i32, i32) {
    %c0_i32 = arith.constant 0 : i32
    %c0_i32_0 = arith.constant 0 : i32
    %c0_i32_1 = arith.constant 0 : i32
    return %c0_i32, %c0_i32_0 : i32, i32
  }
  func.func @transform_6(%arg0: i32) -> (i32, i32) {
    %c0_i32 = arith.constant 0 : i32
    %c0_i32_0 = arith.constant 0 : i32
    %c0_i32_1 = arith.constant 0 : i32
    return %c0_i32, %c0_i32_0 : i32, i32
  }
  func.func @transform_7(%arg0: i32) -> (i32, i32) {
    %c0_i32 = arith.constant 0 : i32
    %c0_i32_0 = arith.constant 0 : i32
    %c0_i32_1 = arith.constant 0 : i32
    return %c0_i32, %c0_i32_0 : i32, i32
  }
  func.func @transform_8(%arg0: i32) -> (i32, i32) {
    %c0_i32 = arith.constant 0 : i32
    %c0_i32_0 = arith.constant 0 : i32
    %c0_i32_1 = arith.constant 0 : i32
    return %c0_i32, %c0_i32_0 : i32, i32
  }
  func.func @transform_9(%arg0: i32) -> (i32, i32) {
    %c0_i32 = arith.constant 0 : i32
    %c0_i32_0 = arith.constant 0 : i32
    return %arg0, %c0_i32 : i32, i32
  }
}

module attributes {stable_mosaic.version = 11 : i64} {
  func.func @_rowdeconv_kernel(%arg0: i32, %arg1: memref<1x8x224xbf16, #tpu.memory_space<vmem>>, %arg2: memref<3x224x224xbf16, #tpu.memory_space<vmem>>, %arg3: memref<1x224xf32, #tpu.memory_space<vmem>>, %arg4: memref<1x2x7x224xbf16, #tpu.memory_space<vmem>>) attributes {dimension_semantics = [#tpu.dimension_semantics<parallel>], iteration_bounds = array<i64: 2>, scalar_prefetch = 0 : i64, scratch_operands = 0 : i64, tpu.core_type = #tpu.core_type<tc>, window_params = [{transform_indices = @transform_0, window_bounds = array<i64: 1, 8, 224>}, {pipeline_mode = #tpu.pipeline_mode<synchronous>, transform_indices = @transform_1, window_bounds = array<i64: 3, 224, 224>}, {pipeline_mode = #tpu.pipeline_mode<synchronous>, transform_indices = @transform_2, window_bounds = array<i64: 1, 224>}, {transform_indices = @transform_3, window_bounds = array<i64: 1, 2, 7, 224>}]} {
    %c0 = arith.constant 0 : index
    %c0_0 = arith.constant 0 : index
    %c0_1 = arith.constant 0 : index
    %0 = vector.load %arg1[%c0, %c0_0, %c0_1] : memref<1x8x224xbf16, #tpu.memory_space<vmem>>, vector<1x7x224xbf16>
    %1 = vector.shape_cast %0 : vector<1x7x224xbf16> to vector<7x224xbf16>
    %c0_2 = arith.constant 0 : index
    %c1 = arith.constant 1 : index
    %c0_3 = arith.constant 0 : index
    %2 = vector.load %arg1[%c0_2, %c1, %c0_3] : memref<1x8x224xbf16, #tpu.memory_space<vmem>>, vector<1x7x224xbf16>
    %3 = vector.shape_cast %2 : vector<1x7x224xbf16> to vector<7x224xbf16>
    %c0_4 = arith.constant 0 : index
    %c0_5 = arith.constant 0 : index
    %4 = vector.load %arg3[%c0_4, %c0_5] : memref<1x224xf32, #tpu.memory_space<vmem>>, vector<1x224xf32>
    %c1_6 = arith.constant 1 : index
    %c0_7 = arith.constant 0 : index
    %c0_8 = arith.constant 0 : index
    %5 = vector.load %arg2[%c1_6, %c0_7, %c0_8] : memref<3x224x224xbf16, #tpu.memory_space<vmem>>, vector<1x224x224xbf16>
    %6 = vector.shape_cast %5 : vector<1x224x224xbf16> to vector<224x224xbf16>
    %cst = arith.constant dense<0.000000e+00> : vector<7x224xf32>
    %7 = tpu.matmul %1, %6, %cst {dimension_numbers = #tpu.dot_dimension_numbers<[1], [0], [0], [1], [0, 0, 1, 1], [], []>} : vector<7x224xbf16>, vector<224x224xbf16>, vector<7x224xf32> -> vector<7x224xf32>
    %8 = vector.broadcast %4 : vector<1x224xf32> to vector<7x224xf32>
    %9 = arith.addf %7, %8 : vector<7x224xf32>
    %c0_9 = arith.constant 0 : index
    %c0_10 = arith.constant 0 : index
    %c0_11 = arith.constant 0 : index
    %10 = vector.load %arg2[%c0_9, %c0_10, %c0_11] : memref<3x224x224xbf16, #tpu.memory_space<vmem>>, vector<1x224x224xbf16>
    %11 = vector.shape_cast %10 : vector<1x224x224xbf16> to vector<224x224xbf16>
    %cst_12 = arith.constant dense<0.000000e+00> : vector<7x224xf32>
    %12 = tpu.matmul %3, %11, %cst_12 {dimension_numbers = #tpu.dot_dimension_numbers<[1], [0], [0], [1], [0, 0, 1, 1], [], []>} : vector<7x224xbf16>, vector<224x224xbf16>, vector<7x224xf32> -> vector<7x224xf32>
    %c2 = arith.constant 2 : index
    %c0_13 = arith.constant 0 : index
    %c0_14 = arith.constant 0 : index
    %13 = vector.load %arg2[%c2, %c0_13, %c0_14] : memref<3x224x224xbf16, #tpu.memory_space<vmem>>, vector<1x224x224xbf16>
    %14 = vector.shape_cast %13 : vector<1x224x224xbf16> to vector<224x224xbf16>
    %cst_15 = arith.constant dense<0.000000e+00> : vector<7x224xf32>
    %15 = tpu.matmul %1, %14, %cst_15 {dimension_numbers = #tpu.dot_dimension_numbers<[1], [0], [0], [1], [0, 0, 1, 1], [], []>} : vector<7x224xbf16>, vector<224x224xbf16>, vector<7x224xf32> -> vector<7x224xf32>
    %16 = arith.addf %12, %15 : vector<7x224xf32>
    %17 = vector.broadcast %4 : vector<1x224xf32> to vector<7x224xf32>
    %18 = arith.addf %16, %17 : vector<7x224xf32>
    %cst_16 = arith.constant 0.000000e+00 : f32
    %19 = vector.broadcast %cst_16 : f32 to vector<7x224xf32>
    %20 = arith.maximumf %9, %19 : vector<7x224xf32>
    %cst_17 = arith.constant 0.000000e+00 : f32
    %21 = vector.broadcast %cst_17 : f32 to vector<7x224xf32>
    %22 = arith.maximumf %18, %21 : vector<7x224xf32>
    %23 = arith.truncf %20 : vector<7x224xf32> to vector<7x224xbf16>
    %c0_18 = arith.constant 0 : index
    %c0_19 = arith.constant 0 : index
    %c0_20 = arith.constant 0 : index
    %c0_21 = arith.constant 0 : index
    %24 = vector.load %arg4[%c0_18, %c0_19, %c0_20, %c0_21] : memref<1x2x7x224xbf16, #tpu.memory_space<vmem>>, vector<1x1x7x224xbf16>
    %25 = vector.shape_cast %24 : vector<1x1x7x224xbf16> to vector<7x224xbf16>
    %26 = vector.shape_cast %23 : vector<7x224xbf16> to vector<1x1x7x224xbf16>
    tpu.vector_store %arg4[%c0_18, %c0_19, %c0_20, %c0_21], %26 {strides = array<i32>} : memref<1x2x7x224xbf16, #tpu.memory_space<vmem>>, vector<1x1x7x224xbf16>,
    %27 = arith.truncf %22 : vector<7x224xf32> to vector<7x224xbf16>
    %c0_22 = arith.constant 0 : index
    %c1_23 = arith.constant 1 : index
    %c0_24 = arith.constant 0 : index
    %c0_25 = arith.constant 0 : index
    %28 = vector.load %arg4[%c0_22, %c1_23, %c0_24, %c0_25] : memref<1x2x7x224xbf16, #tpu.memory_space<vmem>>, vector<1x1x7x224xbf16>
    %29 = vector.shape_cast %28 : vector<1x1x7x224xbf16> to vector<7x224xbf16>
    %30 = vector.shape_cast %27 : vector<7x224xbf16> to vector<1x1x7x224xbf16>
    tpu.vector_store %arg4[%c0_22, %c1_23, %c0_24, %c0_25], %30 {strides = array<i32>} : memref<1x2x7x224xbf16, #tpu.memory_space<vmem>>, vector<1x1x7x224xbf16>,
    return
  }
  func.func @transform_0(%arg0: i32) -> (i32, i32, i32) {
    %c0_i32 = arith.constant 0 : i32
    %c0_i32_0 = arith.constant 0 : i32
    %c0_i32_1 = arith.constant 0 : i32
    return %arg0, %c0_i32, %c0_i32_0 : i32, i32, i32
  }
  func.func @transform_1(%arg0: i32) -> (i32, i32, i32) {
    %c0_i32 = arith.constant 0 : i32
    %c0_i32_0 = arith.constant 0 : i32
    %c0_i32_1 = arith.constant 0 : i32
    %c0_i32_2 = arith.constant 0 : i32
    return %c0_i32, %c0_i32_0, %c0_i32_1 : i32, i32, i32
  }
  func.func @transform_2(%arg0: i32) -> (i32, i32) {
    %c0_i32 = arith.constant 0 : i32
    %c0_i32_0 = arith.constant 0 : i32
    %c0_i32_1 = arith.constant 0 : i32
    return %c0_i32, %c0_i32_0 : i32, i32
  }
  func.func @transform_3(%arg0: i32) -> (i32, i32, i32, i32) {
    %c0_i32 = arith.constant 0 : i32
    %c0_i32_0 = arith.constant 0 : i32
    %c0_i32_1 = arith.constant 0 : i32
    %c0_i32_2 = arith.constant 0 : i32
    return %arg0, %c0_i32, %c0_i32_0, %c0_i32_1 : i32, i32, i32, i32
  }
}

module attributes {stable_mosaic.version = 11 : i64} {
  func.func @_rowdeconv_kernel(%arg0: i32, %arg1: memref<1x15x224xbf16, #tpu.memory_space<vmem>>, %arg2: memref<3x224x84xbf16, #tpu.memory_space<vmem>>, %arg3: memref<1x84xf32, #tpu.memory_space<vmem>>, %arg4: memref<1x2x14x84xf32, #tpu.memory_space<vmem>>) attributes {dimension_semantics = [#tpu.dimension_semantics<parallel>], iteration_bounds = array<i64: 2>, scalar_prefetch = 0 : i64, scratch_operands = 0 : i64, tpu.core_type = #tpu.core_type<tc>, window_params = [{transform_indices = @transform_0, window_bounds = array<i64: 1, 15, 224>}, {pipeline_mode = #tpu.pipeline_mode<synchronous>, transform_indices = @transform_1, window_bounds = array<i64: 3, 224, 84>}, {pipeline_mode = #tpu.pipeline_mode<synchronous>, transform_indices = @transform_2, window_bounds = array<i64: 1, 84>}, {transform_indices = @transform_3, window_bounds = array<i64: 1, 2, 14, 84>}]} {
    %c0 = arith.constant 0 : index
    %c0_0 = arith.constant 0 : index
    %c0_1 = arith.constant 0 : index
    %0 = vector.load %arg1[%c0, %c0_0, %c0_1] : memref<1x15x224xbf16, #tpu.memory_space<vmem>>, vector<1x14x224xbf16>
    %1 = vector.shape_cast %0 : vector<1x14x224xbf16> to vector<14x224xbf16>
    %c0_2 = arith.constant 0 : index
    %c1 = arith.constant 1 : index
    %c0_3 = arith.constant 0 : index
    %2 = vector.load %arg1[%c0_2, %c1, %c0_3] : memref<1x15x224xbf16, #tpu.memory_space<vmem>>, vector<1x14x224xbf16>
    %3 = vector.shape_cast %2 : vector<1x14x224xbf16> to vector<14x224xbf16>
    %c0_4 = arith.constant 0 : index
    %c0_5 = arith.constant 0 : index
    %4 = vector.load %arg3[%c0_4, %c0_5] : memref<1x84xf32, #tpu.memory_space<vmem>>, vector<1x84xf32>
    %c1_6 = arith.constant 1 : index
    %c0_7 = arith.constant 0 : index
    %c0_8 = arith.constant 0 : index
    %5 = vector.load %arg2[%c1_6, %c0_7, %c0_8] : memref<3x224x84xbf16, #tpu.memory_space<vmem>>, vector<1x224x84xbf16>
    %6 = vector.shape_cast %5 : vector<1x224x84xbf16> to vector<224x84xbf16>
    %cst = arith.constant dense<0.000000e+00> : vector<14x84xf32>
    %7 = tpu.matmul %1, %6, %cst {dimension_numbers = #tpu.dot_dimension_numbers<[1], [0], [0], [1], [0, 0, 1, 1], [], []>} : vector<14x224xbf16>, vector<224x84xbf16>, vector<14x84xf32> -> vector<14x84xf32>
    %8 = vector.broadcast %4 : vector<1x84xf32> to vector<14x84xf32>
    %9 = arith.addf %7, %8 : vector<14x84xf32>
    %c0_9 = arith.constant 0 : index
    %c0_10 = arith.constant 0 : index
    %c0_11 = arith.constant 0 : index
    %10 = vector.load %arg2[%c0_9, %c0_10, %c0_11] : memref<3x224x84xbf16, #tpu.memory_space<vmem>>, vector<1x224x84xbf16>
    %11 = vector.shape_cast %10 : vector<1x224x84xbf16> to vector<224x84xbf16>
    %cst_12 = arith.constant dense<0.000000e+00> : vector<14x84xf32>
    %12 = tpu.matmul %3, %11, %cst_12 {dimension_numbers = #tpu.dot_dimension_numbers<[1], [0], [0], [1], [0, 0, 1, 1], [], []>} : vector<14x224xbf16>, vector<224x84xbf16>, vector<14x84xf32> -> vector<14x84xf32>
    %c2 = arith.constant 2 : index
    %c0_13 = arith.constant 0 : index
    %c0_14 = arith.constant 0 : index
    %13 = vector.load %arg2[%c2, %c0_13, %c0_14] : memref<3x224x84xbf16, #tpu.memory_space<vmem>>, vector<1x224x84xbf16>
    %14 = vector.shape_cast %13 : vector<1x224x84xbf16> to vector<224x84xbf16>
    %cst_15 = arith.constant dense<0.000000e+00> : vector<14x84xf32>
    %15 = tpu.matmul %1, %14, %cst_15 {dimension_numbers = #tpu.dot_dimension_numbers<[1], [0], [0], [1], [0, 0, 1, 1], [], []>} : vector<14x224xbf16>, vector<224x84xbf16>, vector<14x84xf32> -> vector<14x84xf32>
    %16 = arith.addf %12, %15 : vector<14x84xf32>
    %17 = vector.broadcast %4 : vector<1x84xf32> to vector<14x84xf32>
    %18 = arith.addf %16, %17 : vector<14x84xf32>
    %c0_16 = arith.constant 0 : index
    %c0_17 = arith.constant 0 : index
    %c0_18 = arith.constant 0 : index
    %c0_19 = arith.constant 0 : index
    %19 = vector.load %arg4[%c0_16, %c0_17, %c0_18, %c0_19] : memref<1x2x14x84xf32, #tpu.memory_space<vmem>>, vector<1x1x14x84xf32>
    %20 = vector.shape_cast %19 : vector<1x1x14x84xf32> to vector<14x84xf32>
    %21 = vector.shape_cast %9 : vector<14x84xf32> to vector<1x1x14x84xf32>
    tpu.vector_store %arg4[%c0_16, %c0_17, %c0_18, %c0_19], %21 {strides = array<i32>} : memref<1x2x14x84xf32, #tpu.memory_space<vmem>>, vector<1x1x14x84xf32>,
    %c0_20 = arith.constant 0 : index
    %c1_21 = arith.constant 1 : index
    %c0_22 = arith.constant 0 : index
    %c0_23 = arith.constant 0 : index
    %22 = vector.load %arg4[%c0_20, %c1_21, %c0_22, %c0_23] : memref<1x2x14x84xf32, #tpu.memory_space<vmem>>, vector<1x1x14x84xf32>
    %23 = vector.shape_cast %22 : vector<1x1x14x84xf32> to vector<14x84xf32>
    %24 = vector.shape_cast %18 : vector<14x84xf32> to vector<1x1x14x84xf32>
    tpu.vector_store %arg4[%c0_20, %c1_21, %c0_22, %c0_23], %24 {strides = array<i32>} : memref<1x2x14x84xf32, #tpu.memory_space<vmem>>, vector<1x1x14x84xf32>,
    return
  }
  func.func @transform_0(%arg0: i32) -> (i32, i32, i32) {
    %c0_i32 = arith.constant 0 : i32
    %c0_i32_0 = arith.constant 0 : i32
    %c0_i32_1 = arith.constant 0 : i32
    return %arg0, %c0_i32, %c0_i32_0 : i32, i32, i32
  }
  func.func @transform_1(%arg0: i32) -> (i32, i32, i32) {
    %c0_i32 = arith.constant 0 : i32
    %c0_i32_0 = arith.constant 0 : i32
    %c0_i32_1 = arith.constant 0 : i32
    %c0_i32_2 = arith.constant 0 : i32
    return %c0_i32, %c0_i32_0, %c0_i32_1 : i32, i32, i32
  }
  func.func @transform_2(%arg0: i32) -> (i32, i32) {
    %c0_i32 = arith.constant 0 : i32
    %c0_i32_0 = arith.constant 0 : i32
    %c0_i32_1 = arith.constant 0 : i32
    return %c0_i32, %c0_i32_0 : i32, i32
  }
  func.func @transform_3(%arg0: i32) -> (i32, i32, i32, i32) {
    %c0_i32 = arith.constant 0 : i32
    %c0_i32_0 = arith.constant 0 : i32
    %c0_i32_1 = arith.constant 0 : i32
    %c0_i32_2 = arith.constant 0 : i32
    return %arg0, %c0_i32, %c0_i32_0, %c0_i32_1 : i32, i32, i32, i32
  }
}

</mosaic_0001>

<bundles_post_ra>
// kernel: ae_conv28_forward.8
= control target key start
LH: loop header
LB: loop body
LE: loop exit
PB: predicated region body
PF: predicated region fallthrough
CT: control target
= control target key end

     0   :  { %s507_s6 = smov 0   ;;  %s784_s0 = inlined_call_operand.vmem [shape: bf16[28,2,14,32], index: 0, kind: input, shape index: {}]   ;;  %s785_s1 = inlined_call_operand.vmem [shape: bf16[28,14,16], index: 1, kind: output, shape index: {}]  }
   0x1 LB: > { %s438_s7 = sadd.s32 4294967295, %s494_s6   ;;  %p442_p0 = scmp.ge.s32.totalorder %s494_s6, 1  ;;  %s494_s6 = sphi %s507_s6, %s11_s6  }
   0x2   : > { %p89_p1 = scmp.lt.s32.totalorder %s494_s6, 3 }
   0x4   : > { %p90_p2 = pnand %p442_p0, %p89_p1 }
   0x5   : > { %s111_s8 = smul.u32 (!%p90_p2), 14, %s438_s7  ;;  %s496_s13 = smov (!%p90_p2), 112   ;;  %vm350_vm0 = vcmask (!%p90_p2), 125952   ;;  %vm352_vm1 = vcmask (!%p90_p2), 124928  }
   0x6   : > { %93 = sbr.rel (%p90_p2) target bundleno = 190 (0xbe), region = 24 }
   0x7   : > { %p112_p3 = scmp.lt.s32.totalorder (!%p90_p2), %s111_s8, 27 }
   0xd   : > { %s787_s8 = smov (!%p112_p3, %s111_s8), 27 }
   0xe   : > { %s477_s9 = sshll.u32 %s787_s8, 4  ;;  %s478_s14 = sshll.u32 %s787_s8, 3 }
   0xf   : > { %s521_s12 = scalar_lea.vmem %s784_s0, %s477_s9  ;;  %s695_s17 = scalar_lea.vmem %s785_s1, %s478_s14 }
  0x10   : > { %v127_v0 = vld [vmem:[%s521_s12 + $0x10] sm:$0xf]  ;;  %v449_v1 = vld [vmem:[%s521_s12 + $0x18] sm:$0xf]  ;;  %v125_v2 = vld [vmem:[%s521_s12] sm:$0xf] }
  0x11   : > { %v526_v3 = vmax.bf16 %v449_v1, %v127_v0  ;;  %v447_v4 = vld [vmem:[%s521_s12 + $0x8] sm:$0xf]  ;;  %v128_v5 = vld [vmem:[%s521_s12 + $0x14] sm:$0x7]  ;;  %v450_v6 = vld [vmem:[%s521_s12 + $0x1c] sm:$0x7] }
  0x12   : > { %v531_v7 = vmax.bf16 %v447_v4, %v125_v2  ;;  %v126_v8 = vld [vmem:[%s521_s12 + $0x4] sm:$0x7]  ;;  %v448_v9 = vld [vmem:[%s521_s12 + $0xc] sm:$0x7]  ;;  %v537_v10 = vmax.bf16 %v450_v6, %v128_v5  ;;  %v129_v14 = vld [vmem:[%s521_s12 + $0x20] sm:$0xf] }
  0x13   : > { %242 = vrot.lane.b32.xlu1 %v526_v3, %s496_s13  ;;  %v541_v11 = vmax.bf16 %v448_v9, %v126_v8  ;;  %v130_v12 = vld [vmem:[%s521_s12 + $0x24] sm:$0x7]  ;;  %v452_v13 = vld [vmem:[%s521_s12 + $0x2c] sm:$0x7]  ;;  %v451_v15 = vld [vmem:[%s521_s12 + $0x28] sm:$0xf] }
  0x14   : > { %238 = vrot.lane.b32.xlu0 %v531_v7, %s496_s13  ;;  %v549_v16 = vmax.bf16 %v452_v13, %v130_v12  ;;  %v553_v17 = vmax.bf16 %v451_v15, %v129_v14  ;;  %v132_v18 = vld [vmem:[%s521_s12 + $0x34] sm:$0x7]  ;;  %v454_v19 = vld [vmem:[%s521_s12 + $0x3c] sm:$0x7]  ;;  %v131_v20 = vld [vmem:[%s521_s12 + $0x30] sm:$0xf] }
  0x15   : > { %v453_v21 = vld [vmem:[%s521_s12 + $0x38] sm:$0xf]  ;;  %v561_v22 = vmax.bf16 %v454_v19, %v132_v18  ;;  %v134_v24 = vld [vmem:[%s521_s12 + $0x44] sm:$0x7]  ;;  %v456_v25 = vld [vmem:[%s521_s12 + $0x4c] sm:$0x7] }
  0x16   : > { %v565_v23 = vmax.bf16 %v453_v21, %v131_v20  ;;  %v133_v26 = vld [vmem:[%s521_s12 + $0x40] sm:$0xf]  ;;  %v455_v27 = vld [vmem:[%s521_s12 + $0x48] sm:$0xf]  ;;  %v573_v28 = vmax.bf16 %v456_v25, %v134_v24  ;;  %v136_v30 = vld [vmem:[%s521_s12 + $0x54] sm:$0x7] }
  0x17   : > { %244 = vrot.lane.b32.xlu1 %v537_v10, %s496_s13  ;;  %v577_v29 = vmax.bf16 %v455_v27, %v133_v26  ;;  %v458_v31 = vld [vmem:[%s521_s12 + $0x5c] sm:$0x7]  ;;  %v135_v32 = vld [vmem:[%s521_s12 + $0x50] sm:$0xf]  ;;  %v457_v33 = vld [vmem:[%s521_s12 + $0x58] sm:$0xf] }
  0x18   : > { %240 = vrot.lane.b32.xlu0 %v541_v11, %s496_s13  ;;  %v585_v34 = vmax.bf16 %v458_v31, %v136_v30  ;;  %v589_v35 = vmax.bf16 %v457_v33, %v135_v32  ;;  %v138_v36 = vld [vmem:[%s521_s12 + $0x64] sm:$0x7]  ;;  %v460_v37 = vld [vmem:[%s521_s12 + $0x6c] sm:$0x7]  ;;  %v137_v38 = vld [vmem:[%s521_s12 + $0x60] sm:$0xf] }
  0x19   : > { %v459_v39 = vld [vmem:[%s521_s12 + $0x68] sm:$0xf]  ;;  %v597_v40 = vmax.bf16 %v460_v37, %v138_v36  ;;  %v140_v42 = vld [vmem:[%s521_s12 + $0x74] sm:$0x7]  ;;  %v462_v43 = vld [vmem:[%s521_s12 + $0x7c] sm:$0x7] }
  0x1a   : > { %v601_v41 = vmax.bf16 %v459_v39, %v137_v38  ;;  %v139_v44 = vld [vmem:[%s521_s12 + $0x70] sm:$0xf]  ;;  %v461_v45 = vld [vmem:[%s521_s12 + $0x78] sm:$0xf]  ;;  %v609_v46 = vmax.bf16 %v462_v43, %v140_v42  ;;  %v142_v48 = vld [vmem:[%s521_s12 + $0x84] sm:$0x7] }
  0x1b   : > { %248 = vrot.lane.b32.xlu1 %v549_v16, %s496_s13  ;;  %v613_v47 = vmax.bf16 %v461_v45, %v139_v44  ;;  %v464_v49 = vld [vmem:[%s521_s12 + $0x8c] sm:$0x7]  ;;  %v141_v50 = vld [vmem:[%s521_s12 + $0x80] sm:$0xf]  ;;  %v463_v51 = vld [vmem:[%s521_s12 + $0x88] sm:$0xf] }
  0x1c   : > { %246 = vrot.lane.b32.xlu0 %v553_v17, %s496_s13  ;;  %v621_v52 = vmax.bf16 %v464_v49, %v142_v48  ;;  %v625_v53 = vmax.bf16 %v463_v51, %v141_v50  ;;  %v144_v54 = vld [vmem:[%s521_s12 + $0x94] sm:$0x7]  ;;  %v466_v55 = vld [vmem:[%s521_s12 + $0x9c] sm:$0x7]  ;;  %v143_v56 = vld [vmem:[%s521_s12 + $0x90] sm:$0xf] }
  0x1d   : > { %v465_v57 = vld [vmem:[%s521_s12 + $0x98] sm:$0xf]  ;;  %v633_v58 = vmax.bf16 %v466_v55, %v144_v54  ;;  %v146_v60 = vld [vmem:[%s521_s12 + $0xa4] sm:$0x7]  ;;  %v468_v61 = vld [vmem:[%s521_s12 + $0xac] sm:$0x7] }
  0x1e   : > { %v637_v59 = vmax.bf16 %v465_v57, %v143_v56  ;;  %v145_v62 = vld [vmem:[%s521_s12 + $0xa0] sm:$0xf]  ;;  %v467_v63 = vld [vmem:[%s521_s12 + $0xa8] sm:$0xf]  ;;  %v645_v0 = vmax.bf16 %v468_v61, %v146_v60  ;;  %v148_v2 = vld [vmem:[%s521_s12 + $0xb4] sm:$0x7] }
  0x1f   : > { %252 = vrot.lane.b32.xlu1 %v561_v22, %s496_s13  ;;  %v649_v1 = vmax.bf16 %v467_v63, %v145_v62  ;;  %v470_v4 = vld [vmem:[%s521_s12 + $0xbc] sm:$0x7]  ;;  %v147_v5 = vld [vmem:[%s521_s12 + $0xb0] sm:$0xf]  ;;  %v469_v6 = vld [vmem:[%s521_s12 + $0xb8] sm:$0xf] }
  0x20   : > { %250 = vrot.lane.b32.xlu0 %v565_v23, %s496_s13  ;;  %v657_v8 = vmax.bf16 %v470_v4, %v148_v2  ;;  %v661_v9 = vmax.bf16 %v469_v6, %v147_v5  ;;  %v150_v12 = vld [vmem:[%s521_s12 + $0xc4] sm:$0x7]  ;;  %v472_v13 = vld [vmem:[%s521_s12 + $0xcc] sm:$0x7]  ;;  %v149_v14 = vld [vmem:[%s521_s12 + $0xc0] sm:$0xf] }
  0x21   : > { %v471_v15 = vld [vmem:[%s521_s12 + $0xc8] sm:$0xf]  ;;  %v669_v18 = vmax.bf16 %v472_v13, %v150_v12  ;;  %v152_v20 = vld [vmem:[%s521_s12 + $0xd4] sm:$0x7]  ;;  %v474_v21 = vld [vmem:[%s521_s12 + $0xdc] sm:$0x7] }
  0x22   : > { %v673_v19 = vmax.bf16 %v471_v15, %v149_v14  ;;  %v151_v24 = vld [vmem:[%s521_s12 + $0xd0] sm:$0xf]  ;;  %v473_v25 = vld [vmem:[%s521_s12 + $0xd8] sm:$0xf]  ;;  %v681_v26 = vmax.bf16 %v474_v21, %v152_v20 }
  0x23   : > { %256 = vrot.lane.b32.xlu1 %v573_v28, %s496_s13  ;;  %v685_v27 = vmax.bf16 %v473_v25, %v151_v24 }
  0x24   : > { %254 = vrot.lane.b32.xlu0 %v577_v29, %s496_s13 }
  0x27   : > { %260 = vrot.lane.b32.xlu1 %v585_v34, %s496_s13 }
  0x28   : > { %258 = vrot.lane.b32.xlu0 %v589_v35, %s496_s13 }
  0x2b   : > { %264 = vrot.lane.b32.xlu1 %v597_v40, %s496_s13 }
  0x2c   : > { %262 = vrot.lane.b32.xlu0 %v601_v41, %s496_s13 }
  0x2f   : > { %268 = vrot.lane.b32.xlu1 %v609_v46, %s496_s13 }
  0x30   : > { %266 = vrot.lane.b32.xlu0 %v613_v47, %s496_s13 }
  0x33   : > { %272 = vrot.lane.b32.xlu1 %v621_v52, %s496_s13 }
  0x34   : > { %270 = vrot.lane.b32.xlu0 %v625_v53, %s496_s13 }
  0x37   : > { %276 = vrot.lane.b32.xlu1 %v633_v58, %s496_s13 }
  0x38   : > { %274 = vrot.lane.b32.xlu0 %v637_v59, %s496_s13 }
  0x3b   : > { %280 = vrot.lane.b32.xlu1 %v645_v0, %s496_s13 }
  0x3c   : > { %278 = vrot.lane.b32.xlu0 %v649_v1, %s496_s13 }
  0x3f   : > { %284 = vrot.lane.b32.xlu1 %v657_v8, %s496_s13 }
  0x40   : > { %282 = vrot.lane.b32.xlu0 %v661_v9, %s496_s13 }
  0x43   : > { %288 = vrot.lane.b32.xlu1 %v669_v18, %s496_s13 }
  0x44   : > { %286 = vrot.lane.b32.xlu0 %v673_v19, %s496_s13 }
  0x47   : > { %292 = vrot.lane.b32.xlu1 %v681_v26, %s496_s13 }
  0x48   : > { %290 = vrot.lane.b32.xlu0 %v685_v27, %s496_s13 }
  0x85   : > { %v243_v30 = vpop.permute.xlu1 %242 }
  0x86   : > { %v324_v31 = vmax.bf16 %v243_v30, %v526_v3  ;;  %v239_v32 = vpop.permute.xlu0 %238 }
  0x87   : > { %v322_v33 = vmax.bf16 %v239_v32, %v531_v7 }
  0x88   : > { %354 = vst.msk [vmem:[%s695_s17 + $0x8] sm:$0xf] %vm350_vm0, %v324_v31 }
  0x89   : > { %351 = vst.msk [vmem:[%s695_s17] sm:$0xf] %vm350_vm0, %v322_v33  ;;  %v245_v36 = vpop.permute.xlu1 %244 }
  0x8a   : > { %v325_v37 = vmax.bf16 %v245_v36, %v537_v10  ;;  %v241_v38 = vpop.permute.xlu0 %240 }
  0x8b   : > { %v323_v39 = vmax.bf16 %v241_v38, %v541_v11 }
  0x8c   : > { %355 = vst.msk [vmem:[%s695_s17 + $0xc] sm:$0x7] %vm352_vm1, %v325_v37 }
  0x8d   : > { %353 = vst.msk [vmem:[%s695_s17 + $0x4] sm:$0x7] %vm352_vm1, %v323_v39  ;;  %v249_v3 = vpop.permute.xlu1 %248 }
  0x8e   : > { %v327_v7 = vmax.bf16 %v249_v3, %v549_v16  ;;  %v247_v42 = vpop.permute.xlu0 %246 }
  0x8f   : > { %v326_v43 = vmax.bf16 %v247_v42, %v553_v17 }
  0x90   : > { %357 = vst.msk [vmem:[%s695_s17 + $0x14] sm:$0x7] %vm352_vm1, %v327_v7 }
  0x91   : > { %356 = vst.msk [vmem:[%s695_s17 + $0x10] sm:$0xf] %vm350_vm0, %v326_v43  ;;  %v253_v10 = vpop.permute.xlu1 %252 }
  0x92   : > { %v329_v11 = vmax.bf16 %v253_v10, %v561_v22  ;;  %v251_v44 = vpop.permute.xlu0 %250 }
  0x93   : > { %v328_v45 = vmax.bf16 %v251_v44, %v565_v23 }
  0x94   : > { %359 = vst.msk [vmem:[%s695_s17 + $0x1c] sm:$0x7] %vm352_vm1, %v329_v11 }
  0x95   : > { %358 = vst.msk [vmem:[%s695_s17 + $0x18] sm:$0xf] %vm350_vm0, %v328_v45  ;;  %v257_v16 = vpop.permute.xlu1 %256 }
  0x96   : > { %v331_v17 = vmax.bf16 %v257_v16, %v573_v28  ;;  %v255_v48 = vpop.permute.xlu0 %254 }
  0x97   : > { %v330_v49 = vmax.bf16 %v255_v48, %v577_v29 }
  0x98   : > { %361 = vst.msk [vmem:[%s695_s17 + $0x24] sm:$0x7] %vm352_vm1, %v331_v17 }
  0x99   : > { %360 = vst.msk [vmem:[%s695_s17 + $0x20] sm:$0xf] %vm350_vm0, %v330_v49  ;;  %v261_v22 = vpop.permute.xlu1 %260 }
  0x9a   : > { %v333_v23 = vmax.bf16 %v261_v22, %v585_v34  ;;  %v259_v50 = vpop.permute.xlu0 %258 }
  0x9b   : > { %v332_v51 = vmax.bf16 %v259_v50, %v589_v35 }
  0x9c   : > { %363 = vst.msk [vmem:[%s695_s17 + $0x2c] sm:$0x7] %vm352_vm1, %v333_v23 }
  0x9d   : > { %362 = vst.msk [vmem:[%s695_s17 + $0x28] sm:$0xf] %vm350_vm0, %v332_v51  ;;  %v265_v28 = vpop.permute.xlu1 %264 }
  0x9e   : > { %v335_v29 = vmax.bf16 %v265_v28, %v597_v40  ;;  %v263_v54 = vpop.permute.xlu0 %262 }
  0x9f   : > { %v334_v55 = vmax.bf16 %v263_v54, %v601_v41 }
  0xa0   : > { %365 = vst.msk [vmem:[%s695_s17 + $0x34] sm:$0x7] %vm352_vm1, %v335_v29 }
  0xa1   : > { %364 = vst.msk [vmem:[%s695_s17 + $0x30] sm:$0xf] %vm350_vm0, %v334_v55  ;;  %v269_v34 = vpop.permute.xlu1 %268 }
  0xa2   : > { %v337_v35 = vmax.bf16 %v269_v34, %v609_v46  ;;  %v267_v56 = vpop.permute.xlu0 %266 }
  0xa3   : > { %v336_v57 = vmax.bf16 %v267_v56, %v613_v47 }
  0xa4   : > { %367 = vst.msk [vmem:[%s695_s17 + $0x3c] sm:$0x7] %vm352_vm1, %v337_v35 }
  0xa5   : > { %366 = vst.msk [vmem:[%s695_s17 + $0x38] sm:$0xf] %vm350_vm0, %v336_v57  ;;  %v273_v40 = vpop.permute.xlu1 %272 }
  0xa6   : > { %v339_v41 = vmax.bf16 %v273_v40, %v621_v52  ;;  %v271_v60 = vpop.permute.xlu0 %270 }
  0xa7   : > { %v338_v61 = vmax.bf16 %v271_v60, %v625_v53 }
  0xa8   : > { %369 = vst.msk [vmem:[%s695_s17 + $0x44] sm:$0x7] %vm352_vm1, %v339_v41 }
  0xa9   : > { %368 = vst.msk [vmem:[%s695_s17 + $0x40] sm:$0xf] %vm350_vm0, %v338_v61  ;;  %v277_v46 = vpop.permute.xlu1 %276 }
  0xaa   : > { %v341_v47 = vmax.bf16 %v277_v46, %v633_v58  ;;  %v275_v62 = vpop.permute.xlu0 %274 }
  0xab   : > { %v340_v63 = vmax.bf16 %v275_v62, %v637_v59 }
  0xac   : > { %371 = vst.msk [vmem:[%s695_s17 + $0x4c] sm:$0x7] %vm352_vm1, %v341_v47 }
  0xad   : > { %370 = vst.msk [vmem:[%s695_s17 + $0x48] sm:$0xf] %vm350_vm0, %v340_v63  ;;  %v281_v52 = vpop.permute.xlu1 %280 }
  0xae   : > { %v343_v53 = vmax.bf16 %v281_v52, %v645_v0  ;;  %v279_v2 = vpop.permute.xlu0 %278 }
  0xaf   : > { %v342_v4 = vmax.bf16 %v279_v2, %v649_v1 }
  0xb0   : > { %373 = vst.msk [vmem:[%s695_s17 + $0x54] sm:$0x7] %vm352_vm1, %v343_v53 }
  0xb1   : > { %372 = vst.msk [vmem:[%s695_s17 + $0x50] sm:$0xf] %vm350_vm0, %v342_v4  ;;  %v285_v58 = vpop.permute.xlu1 %284 }
  0xb2   : > { %v345_v59 = vmax.bf16 %v285_v58, %v657_v8  ;;  %v283_v5 = vpop.permute.xlu0 %282 }
  0xb3   : > { %v344_v6 = vmax.bf16 %v283_v5, %v661_v9 }
  0xb4   : > { %375 = vst.msk [vmem:[%s695_s17 + $0x5c] sm:$0x7] %vm352_vm1, %v345_v59 }
  0xb5   : > { %374 = vst.msk [vmem:[%s695_s17 + $0x58] sm:$0xf] %vm350_vm0, %v344_v6  ;;  %v289_v0 = vpop.permute.xlu1 %288 }
  0xb6   : > { %v347_v12 = vmax.bf16 %v289_v0, %v669_v18  ;;  %v287_v1 = vpop.permute.xlu0 %286 }
  0xb7   : > { %v346_v13 = vmax.bf16 %v287_v1, %v673_v19 }
  0xb8   : > { %377 = vst.msk [vmem:[%s695_s17 + $0x64] sm:$0x7] %vm352_vm1, %v347_v12 }
  0xb9   : > { %376 = vst.msk [vmem:[%s695_s17 + $0x60] sm:$0xf] %vm350_vm0, %v346_v13  ;;  %v293_v14 = vpop.permute.xlu1 %292 }
  0xba   : > { %v349_v8 = vmax.bf16 %v293_v14, %v681_v26  ;;  %v291_v15 = vpop.permute.xlu0 %290 }
  0xbb   : > { %v348_v9 = vmax.bf16 %v291_v15, %v685_v27 }
  0xbc   : > { %379 = vst.msk [vmem:[%s695_s17 + $0x6c] sm:$0x7] %vm352_vm1, %v349_v8 }
  0xbd   : > { %378 = vst.msk [vmem:[%s695_s17 + $0x68] sm:$0xf] %vm350_vm0, %v348_v9 }
  0xbe PF: > { %s11_s6 = sadd.s32 1, %s494_s6  }
  0xbf   : > { %p8_p4 = scmp.ge.s32.totalorder %s11_s6, 4  }
  0xc1   :  { %10 = sbr.rel (!%p8_p4) target bundleno = 1 (0x1), region = 55 }

// kernel: ae_conv28_forward.7
= control target key start
LH: loop header
LB: loop body
LE: loop exit
PB: predicated region body
PF: predicated region fallthrough
CT: control target
= control target key end

     0   :  { %s1514_s12 = smov 0   ;;  %s1822_s0 = inlined_call_operand.vmem [shape: bf16[2,30,84], index: 0, kind: input, shape index: {}]   ;;  %s1823_s1 = inlined_call_operand.vmem [shape: bf16[3,84,448], index: 1, kind: input, shape index: {}]   ;;  %s1824_s2 = inlined_call_operand.vmem [shape: f32[1,448], index: 2, kind: input, shape index: {}]   ;;  %s1825_s3 = inlined_call_operand.vmem [shape: bf16[2,28,448], index: 3, kind: output, shape index: {}]  }
   0x1 LB: > { %s1171_s13 = sadd.s32 4294967295, %s1491_s12   ;;  %p1175_p0 = scmp.ge.s32.totalorder %s1491_s12, 1  ;;  %s1491_s12 = sphi %s1514_s12, %s13_s12  }
   0x2   : > { %p137_p1 = scmp.lt.s32.totalorder %s1491_s12, 3 }
   0x4   : > { %p138_p2 = pnand %p1175_p0, %p137_p1 }
   0x5   : > { %v1379_v0 = vld [vmem:[%s1823_s1 + $0xb4] ss:$16 sps:$4 sm:$0xff] (!%p138_p2)   ;;  %v1381_v1 = vld [vmem:[%s1823_s1 + $0xbc] ss:$16 sps:$4 sm:$0xff] (!%p138_p2)   ;;  %v1493_v2 = vmov (!%p138_p2), 0   ;;  %p161_p3 = scmp.lt.s32.totalorder (!%p138_p2), %s1171_s13, 1 }
   0x6   : > { %141 = sbr.rel (%p138_p2) target bundleno = 309 (0x135), region = 32  ;;  %410 = vmatprep.mubr.bf16.mxu0 (!%p138_p2), %v1493_v2  ;;  %463 = vmatprep.mubr.bf16.mxu1 (!%p138_p2), %v1493_v2  ;;  %v1383_v3 = vld [vmem:[%s1823_s1 + $0xb0] ss:$16 sps:$4 sm:$0xff] (!%p138_p2)   ;;  %v1384_v4 = vld [vmem:[%s1823_s1 + $0xb8] ss:$16 sps:$4 sm:$0xff] (!%p138_p2)   ;;  %vm365_vm0 = vcmask (!%p138_p2), 1041408  }
   0x7   : > { %378 = vmatprep.subr.bf16.mxu0 (!%p138_p2), %v1379_v0  ;;  %431 = vmatprep.subr.bf16.mxu1 (!%p138_p2), %v1381_v1  ;;  %v1385_v5 = vld [vmem:[%s1823_s1 + $0xd4] ss:$16 sps:$4 sm:$0xff] (!%p138_p2)   ;;  %v1387_v6 = vld [vmem:[%s1823_s1 + $0xdc] ss:$16 sps:$4 sm:$0xff] (!%p138_p2)   ;;  %v1389_v7 = vld [vmem:[%s1823_s1 + $0xd0] ss:$16 sps:$4 sm:$0xff] (!%p138_p2)  }
   0x8   : > { %379 = vmatpush1.bf16.msra.mxu0 (!%p138_p2), %v1383_v3  ;;  %432 = vmatpush1.bf16.msra.mxu1 (!%p138_p2), %v1384_v4  ;;  %v1390_v8 = vld [vmem:[%s1823_s1 + $0xd8] ss:$16 sps:$4 sm:$0xff] (!%p138_p2)   ;;  %v1391_v9 = vld [vmem:[%s1823_s1 + $0xf4] ss:$16 sps:$4 sm:$0xff] (!%p138_p2)   ;;  %v1393_v10 = vld [vmem:[%s1823_s1 + $0xfc] ss:$16 sps:$4 sm:$0xff] (!%p138_p2)  }
   0x9   : > { %380 = vmatprep.subr.bf16.mxu0 (!%p138_p2), %v1385_v5  ;;  %433 = vmatprep.subr.bf16.mxu1 (!%p138_p2), %v1387_v6  ;;  %v1395_v11 = vld [vmem:[%s1823_s1 + $0xf0] ss:$16 sps:$4 sm:$0xff] (!%p138_p2)   ;;  %v1396_v12 = vld [vmem:[%s1823_s1 + $0xf8] ss:$16 sps:$4 sm:$0xff] (!%p138_p2)   ;;  %v1397_v13 = vld [vmem:[%s1823_s1 + $0x114] ss:$16 sps:$4 sm:$0xff] (!%p138_p2)  }
   0xa   : > { %v1399_v14 = vld [vmem:[%s1823_s1 + $0x11c] ss:$16 sps:$4 sm:$0xff] (!%p138_p2)   ;;  %v1401_v15 = vld [vmem:[%s1823_s1 + $0x110] ss:$16 sps:$4 sm:$0xff] (!%p138_p2)   ;;  %v1402_v16 = vld [vmem:[%s1823_s1 + $0x118] ss:$16 sps:$4 sm:$0xff] (!%p138_p2)  }
   0xb   : > { %v1403_v17 = vld [vmem:[%s1823_s1 + $0x134] ss:$16 sps:$4 sm:$0xff] (!%p138_p2)   ;;  %v1405_v18 = vld [vmem:[%s1823_s1 + $0x13c] ss:$16 sps:$4 sm:$0xff] (!%p138_p2)   ;;  %v1407_v21 = vld [vmem:[%s1823_s1 + $0x130] ss:$16 sps:$4 sm:$0xff] (!%p138_p2)  }
   0xc   : > { %381 = vmatpush1.bf16.msra.mxu0 (!%p138_p2), %v1389_v7  ;;  %434 = vmatpush1.bf16.msra.mxu1 (!%p138_p2), %v1390_v8  ;;  %v1200_v19 = vld [vmem:[%s1823_s1 + $0x150] sm:$0x33] (!%p138_p2)  ;;  %v1201_v20 = vld [vmem:[%s1823_s1 + $0x158] sm:$0x33] (!%p138_p2)  ;;  %vm232_vm1 = vsmask.f32 (!%p138_p2), 7424 }
   0xd   : > { %s1829_s13 = smov (!%p161_p3, %s1171_s13), 1  ;;  %382 = vmatprep.subr.bf16.mxu0 %v1391_v9  ;;  %435 = vmatprep.subr.bf16.mxu1 %v1393_v10  ;;  %v1408_v22 = vld [vmem:[%s1823_s1 + $0x138] ss:$16 sps:$4 sm:$0xff]   ;;  %v1225_v23 = vcombine.high %v1200_v19, %v1200_v19  ;;  %v1227_v24 = vcombine.high %v1201_v20, %v1201_v20  ;;  %v1224_v25 = vcombine.low %v1200_v19, %v1200_v19  ;;  %v1415_v33 = vld [vmem:[%s1823_s1 + $0x4] ss:$16 sps:$4 sm:$0xff]   ;;  %vm358_vm2 = vcmask 687104  }
   0xe   : > { %s1328_s17 = sshll.u32 %s1829_s13, 4  ;;  %v1226_v26 = vcombine.low %v1201_v20, %v1201_v20  ;;  %v1418_v38 = vld [vmem:[%s1823_s1 + $0xc] ss:$16 sps:$4 sm:$0xff]   ;;  %v1413_v41 = vld [vmem:[%s1823_s1] ss:$16 sps:$4 sm:$0xff]   ;;  %vm747_vm3 = vcmask 1046528  }
   0xf   : > { %s1590_s5 = scalar_lea.vmem %s1822_s0, %s1328_s17  ;;  %v367_v36 = vsel %vm365_vm0, %v1224_v25, 0  ;;  %v1416_v43 = vld [vmem:[%s1823_s1 + $0x8] ss:$16 sps:$4 sm:$0xff]   ;;  %v1423_v45 = vld [vmem:[%s1823_s1 + $0x24] ss:$16 sps:$4 sm:$0xff]   ;;  %s1329_s29 = sshll.u32 %s1829_s13, 6 }
  0x10   : > { %383 = vmatpush1.bf16.msra.mxu0 %v1395_v11  ;;  %436 = vmatpush1.bf16.msra.mxu1 %v1396_v12  ;;  %v172_v27 = vld [vmem:[%s1590_s5] sm:$0xf]  ;;  %v1600_v28 = vld [vmem:[%s1590_s5 + $0x4] sm:$0xf]  ;;  %v1603_v29 = vld [vmem:[%s1590_s5 + $0x8] sm:$0xf]  ;;  %s1796_s13 = scalar_lea.vmem %s1825_s3, %s1329_s29 }
  0x11   : > { %384 = vmatprep.subr.bf16.mxu0 %v1397_v13  ;;  %437 = vmatprep.subr.bf16.mxu1 %v1399_v14  ;;  %v198_v30 = vld [vmem:[%s1590_s5 + $0xc] sm:$0x7]  ;;  %v1607_v31 = vcombine.low %v172_v27, %v1600_v28  ;;  %v373_v37 = vsel %vm365_vm0, %v1226_v26, 0  ;;  %v1421_v49 = vld [vmem:[%s1823_s1 + $0x20] ss:$16 sps:$4 sm:$0xff]   ;;  %vm1104_vm4 = vcmask 1043456  }
  0x12   : > { %v1610_v32 = vcombine.low %v1603_v29, %v198_v30  ;;  %v1426_v46 = vld [vmem:[%s1823_s1 + $0x2c] ss:$16 sps:$4 sm:$0xff]   ;;  %v1424_v50 = vld [vmem:[%s1823_s1 + $0x28] ss:$16 sps:$4 sm:$0xff]   ;;  %v1429_v51 = vld [vmem:[%s1823_s1 + $0x44] ss:$16 sps:$4 sm:$0xff]  }
  0x13   : > { %v234_v34 = vshrl.u32 %v1607_v31, 16  ;;  %v236_v35 = vshll.u32 %v1607_v31, 16  ;;  %v1432_v52 = vld [vmem:[%s1823_s1 + $0x4c] ss:$16 sps:$4 sm:$0xff]   ;;  %v1427_v53 = vld [vmem:[%s1823_s1 + $0x40] ss:$16 sps:$4 sm:$0xff]  }
  0x14   : > { %385 = vmatpush1.bf16.msra.mxu0 %v1401_v15  ;;  %438 = vmatpush1.bf16.msra.mxu1 %v1402_v16  ;;  %v241_v39 = vshll.u32 %v1610_v32, 16  ;;  %v245_v48 = vshrl.u32 %v1610_v32, 16  ;;  %v1430_v55 = vld [vmem:[%s1823_s1 + $0x48] ss:$16 sps:$4 sm:$0xff]   ;;  %v1435_v56 = vld [vmem:[%s1823_s1 + $0x64] ss:$16 sps:$4 sm:$0xff]  }
  0x15   : > { %386 = vmatprep.subr.bf16.mxu0 %v1403_v17  ;;  %439 = vmatprep.subr.bf16.mxu1 %v1405_v18  ;;  %v238_v40 = vrot.slane %v236_v35, 1  ;;  %v1438_v57 = vld [vmem:[%s1823_s1 + $0x6c] ss:$16 sps:$4 sm:$0xff]   ;;  %v1433_v58 = vld [vmem:[%s1823_s1 + $0x60] ss:$16 sps:$4 sm:$0xff]   ;;  %vm1105_vm5 = vcmask 523268  }
  0x16   : > { %v243_v42 = vrot.slane %v241_v39, 1  ;;  %v1436_v59 = vld [vmem:[%s1823_s1 + $0x68] ss:$16 sps:$4 sm:$0xff]   ;;  %v1441_v60 = vld [vmem:[%s1823_s1 + $0x84] ss:$16 sps:$4 sm:$0xff]   ;;  %vm1799_vm6 = vmor %vm1105_vm5, %vm1104_vm4  ;;  %vm1113_vm7 = vcmask 521220  }
  0x17   : > { %v239_v44 = vor.u32 %v238_v40, %v234_v34  ;;  %v1444_v61 = vld [vmem:[%s1823_s1 + $0x8c] ss:$16 sps:$4 sm:$0xff]   ;;  %v196_v62 = vld [vmem:[%s1823_s1 + $0xa0] sm:$0x33]  ;;  %v1442_v1 = vld [vmem:[%s1823_s1 + $0x88] ss:$16 sps:$4 sm:$0xff]  }
  0x18   : > { %387 = vmatpush1.bf16.msra.mxu0 %v1407_v21  ;;  %440 = vmatpush1.bf16.msra.mxu1 %v1408_v22  ;;  %v247_v54 = vor.u32 %v245_v48, %v243_v42  ;;  %v197_v63 = vld [vmem:[%s1823_s1 + $0xa8] sm:$0x33]  ;;  %v1439_v0 = vld [vmem:[%s1823_s1 + $0x80] ss:$16 sps:$4 sm:$0xff]   ;;  %v1256_v3 = vcombine.high %v196_v62, %v196_v62  ;;  %v1255_v5 = vcombine.low %v196_v62, %v196_v62  ;;  %v1451_v9 = vld [vmem:[%s1823_s1 + $0x164] ss:$16 sps:$4 sm:$0xff]  }
  0x19   : > { %1228 = vmatprep.subr.msk.bf16.mxu0 %vm365_vm0, %v1225_v23  ;;  %1231 = vmatprep.subr.msk.bf16.mxu1 %vm365_vm0, %v1227_v24  ;;  %v244_v47 = vsel %vm232_vm1, %v239_v44, %v243_v42  ;;  %v1258_v4 = vcombine.high %v197_v63, %v197_v63  ;;  %v1257_v6 = vcombine.low %v197_v63, %v197_v63  ;;  %v1454_v10 = vld [vmem:[%s1823_s1 + $0x16c] ss:$16 sps:$4 sm:$0xff]   ;;  %v1449_v11 = vld [vmem:[%s1823_s1 + $0x160] ss:$16 sps:$4 sm:$0xff]   ;;  %v1452_v12 = vld [vmem:[%s1823_s1 + $0x168] ss:$16 sps:$4 sm:$0xff]  }
  0x1a   : > { %v603_v7 = vsel %vm365_vm0, %v1255_v5, 0  ;;  %v1457_v13 = vld [vmem:[%s1823_s1 + $0x184] ss:$16 sps:$4 sm:$0xff]   ;;  %v1460_v14 = vld [vmem:[%s1823_s1 + $0x18c] ss:$16 sps:$4 sm:$0xff]   ;;  %v749_v42 = vrot.slane %v1610_v32, 1  ;;  %v1003_v32 = vlaneseq  ;;  %vm1114_vm8 = vmor %vm1113_vm7, %vm365_vm0 }
  0x1b   : > { %v609_v8 = vsel %vm365_vm0, %v1257_v6, 0  ;;  %v1455_v15 = vld [vmem:[%s1823_s1 + $0x180] ss:$16 sps:$4 sm:$0xff]   ;;  %v1458_v16 = vld [vmem:[%s1823_s1 + $0x188] ss:$16 sps:$4 sm:$0xff]  }
  0x1c   : > { %389 = vmatpush1.bf16.msra.mxu0 %v367_v36  ;;  %442 = vmatpush1.bf16.msra.mxu1 %v373_v37  ;;  %v175_v17 = vld [vmem:[%s1590_s5 + $0xc] sm:$0x3]  ;;  %v1463_v18 = vld [vmem:[%s1823_s1 + $0x1a4] ss:$16 sps:$4 sm:$0xff]   ;;  %v1461_v21 = vld [vmem:[%s1823_s1 + $0x1a0] ss:$16 sps:$4 sm:$0xff]  }
  0x1d   : > { %614 = vmatprep.subr.bf16.mxu0 %v1415_v33  ;;  %667 = vmatprep.subr.bf16.mxu1 %v1418_v38  ;;  %v1466_v19 = vld [vmem:[%s1823_s1 + $0x1ac] ss:$16 sps:$4 sm:$0xff]   ;;  %v1234_v20 = vcombine.low %v1603_v29, %v175_v17  ;;  %v1464_v22 = vld [vmem:[%s1823_s1 + $0x1a8] ss:$16 sps:$4 sm:$0xff]   ;;  %v1469_v23 = vld [vmem:[%s1823_s1 + $0x1c4] ss:$16 sps:$4 sm:$0xff]  }
  0x1e   : > { %v1472_v24 = vld [vmem:[%s1823_s1 + $0x1cc] ss:$16 sps:$4 sm:$0xff]   ;;  %v1467_v25 = vld [vmem:[%s1823_s1 + $0x1c0] ss:$16 sps:$4 sm:$0xff]   ;;  %v1470_v26 = vld [vmem:[%s1823_s1 + $0x1c8] ss:$16 sps:$4 sm:$0xff]  }
  0x1f   : > { %1229 = vmatmul.mubr.msk.bf16.vlgmr.msra.gmra.mrb[0].mxu0 %vm358_vm2, %v244_v47  ;;  %1232 = vmatmul.mubr.msk.bf16.vlgmr.msra.gmra.mrb[0].mxu1 %vm358_vm2, %v244_v47  ;;  %v1476_v27 = vld [vmem:[%s1823_s1 + $0x1e4] ss:$16 sps:$4 sm:$0xff]   ;;  %v1479_v29 = vld [vmem:[%s1823_s1 + $0x1ec] ss:$16 sps:$4 sm:$0xff]   ;;  %v1474_v34 = vld [vmem:[%s1823_s1 + $0x1e0] ss:$16 sps:$4 sm:$0xff]  }
  0x20   : > { %615 = vmatpush1.bf16.msra.mxu0 %v1413_v41  ;;  %668 = vmatpush1.bf16.msra.mxu1 %v1416_v43  ;;  %v1285_v30 = vld [vmem:[%s1823_s1 + $0x200] sm:$0x33]  ;;  %v1286_v33 = vld [vmem:[%s1823_s1 + $0x208] sm:$0x33] }
  0x21   : > { %616 = vmatprep.subr.bf16.mxu0 %v1423_v45  ;;  %669 = vmatprep.subr.bf16.mxu1 %v1426_v46  ;;  %v1477_v35 = vld [vmem:[%s1823_s1 + $0x1e8] ss:$16 sps:$4 sm:$0xff]   ;;  %v1309_v36 = vcombine.high %v1285_v30, %v1285_v30  ;;  %v1311_v38 = vcombine.high %v1286_v33, %v1286_v33  ;;  %v1308_v39 = vcombine.low %v1285_v30, %v1285_v30  ;;  %v1004_v45 = vshrl.u32 %v1003_v32, 7  ;;  %v1001_v48 = vld [vmem:[%s1824_s2] sm:$0xf] }
  0x22   : > { %420 = vmatprep.mubr.bf16.mxu0 %v1493_v2  ;;  %473 = vmatprep.mubr.bf16.mxu1 %v1493_v2  ;;  %v1310_v40 = vcombine.low %v1286_v33, %v1286_v33 }
  0x23   : > { %v868_v43 = vsel %vm365_vm0, %v1308_v39, 0  ;;  %v1005_v46 = vsub.s32 0, %v1004_v45  ;;  %v1013_v47 = vsub.s32 2, %v1004_v45 }
  0x24   : > { %617 = vmatpush1.bf16.msra.mxu0 %v1421_v49  ;;  %670 = vmatpush1.bf16.msra.mxu1 %v1424_v50  ;;  %v874_v44 = vsel %vm365_vm0, %v1310_v40, 0  ;;  %v1009_v49 = vsub.s32 1, %v1004_v45  ;;  %v1017_v50 = vsub.s32 3, %v1004_v45 }
  0x25   : > { %618 = vmatprep.subr.bf16.mxu0 %v1429_v51  ;;  %671 = vmatprep.subr.bf16.mxu1 %v1432_v52  ;;  %v1006_v51 = vrot.slane %v1001_v48, %v1005_v46  ;;  %v1014_v52 = vrot.slane %v1001_v48, %v1013_v47 }
  0x27   : > { %1230 = vmatmul.mubr.msk.bf16.gmra.mrb[4].mxu0 %vm358_vm2, %v247_v54  ;;  %1233 = vmatmul.mubr.msk.bf16.gmra.mrb[4].mxu1 %vm358_vm2, %v247_v54  ;;  %v1018_v54 = vrot.slane %v1001_v48, %v1017_v50 }
  0x28   : > { %619 = vmatpush1.bf16.msra.mxu0 %v1427_v53  ;;  %672 = vmatpush1.bf16.msra.mxu1 %v1430_v55  ;;  %v1010_v53 = vrot.slane %v1001_v48, %v1009_v49 }
  0x29   : > { %620 = vmatprep.subr.bf16.mxu0 %v1435_v56  ;;  %673 = vmatprep.subr.bf16.mxu1 %v1438_v57 }
  0x2a   : > { %646 = vmatprep.mubr.bf16.mxu0 %v1493_v2  ;;  %699 = vmatprep.mubr.bf16.mxu1 %v1493_v2 }
  0x2c   : > { %621 = vmatpush1.bf16.msra.mxu0 %v1433_v58  ;;  %674 = vmatpush1.bf16.msra.mxu1 %v1436_v59 }
  0x2d   : > { %622 = vmatprep.subr.bf16.mxu0 %v1441_v60  ;;  %675 = vmatprep.subr.bf16.mxu1 %v1444_v61 }
  0x30   : > { %623 = vmatpush1.bf16.msra.mxu0 %v1439_v0  ;;  %676 = vmatpush1.bf16.msra.mxu1 %v1442_v1 }
  0x31   : > { %1259 = vmatprep.subr.msk.bf16.mxu0 %vm365_vm0, %v1256_v3  ;;  %1262 = vmatprep.subr.msk.bf16.mxu1 %vm365_vm0, %v1258_v4 }
  0x34   : > { %625 = vmatpush1.bf16.msra.mxu0 %v603_v7  ;;  %678 = vmatpush1.bf16.msra.mxu1 %v609_v8 }
  0x35   : > { %879 = vmatprep.subr.bf16.mxu0 %v1451_v9  ;;  %932 = vmatprep.subr.bf16.mxu1 %v1454_v10 }
  0x37   : > { %1260 = vmatmul.mubr.msk.bf16.vlgmr.msra.gmra.mrb[0].mxu0 %vm358_vm2, %v1607_v31  ;;  %1263 = vmatmul.mubr.msk.bf16.vlgmr.msra.gmra.mrb[0].mxu1 %vm358_vm2, %v1607_v31  ;;  %v720_v31 = vld [vmem:[%s1590_s5] sm:$0xe] }
  0x38   : > { %880 = vmatpush1.bf16.msra.mxu0 %v1449_v11  ;;  %933 = vmatpush1.bf16.msra.mxu1 %v1452_v12  ;;  %v1287_v37 = vcombine.low %v720_v31, %v1600_v28 }
  0x39   : > { %881 = vmatprep.subr.bf16.mxu0 %v1457_v13  ;;  %934 = vmatprep.subr.bf16.mxu1 %v1460_v14 }
  0x3a   : > { %656 = vmatprep.mubr.bf16.mxu0 %v1493_v2  ;;  %709 = vmatprep.mubr.bf16.mxu1 %v1493_v2  ;;  %v748_v41 = vrot.slane %v1287_v37, 1 }
  0x3c   : > { %882 = vmatpush1.bf16.msra.mxu0 %v1455_v15  ;;  %935 = vmatpush1.bf16.msra.mxu1 %v1458_v16  ;;  %v750_v28 = vsel %vm747_vm3, %v748_v41, %v749_v42 }
  0x3d   : > { %883 = vmatprep.subr.bf16.mxu0 %v1463_v18  ;;  %936 = vmatprep.subr.bf16.mxu1 %v1466_v19 }
  0x3f   : > { %1261 = vmatmul.mubr.msk.bf16.gmra.mrb[4].mxu0 %vm358_vm2, %v1234_v20  ;;  %1264 = vmatmul.mubr.msk.bf16.gmra.mrb[4].mxu1 %vm358_vm2, %v1234_v20 }
  0x40   : > { %884 = vmatpush1.bf16.msra.mxu0 %v1461_v21  ;;  %937 = vmatpush1.bf16.msra.mxu1 %v1464_v22 }
  0x41   : > { %885 = vmatprep.subr.bf16.mxu0 %v1469_v23  ;;  %938 = vmatprep.subr.bf16.mxu1 %v1472_v24 }
  0x42   : > { %911 = vmatprep.mubr.bf16.mxu0 %v1493_v2  ;;  %964 = vmatprep.mubr.bf16.mxu1 %v1493_v2 }
  0x44   : > { %886 = vmatpush1.bf16.msra.mxu0 %v1467_v25  ;;  %939 = vmatpush1.bf16.msra.mxu1 %v1470_v26 }
  0x45   : > { %887 = vmatprep.subr.bf16.mxu0 %v1476_v27  ;;  %940 = vmatprep.subr.bf16.mxu1 %v1479_v29 }
  0x48   : > { %888 = vmatpush1.bf16.msra.mxu0 %v1474_v34  ;;  %941 = vmatpush1.bf16.msra.mxu1 %v1477_v35 }
  0x49   : > { %1312 = vmatprep.subr.msk.bf16.mxu0 %vm365_vm0, %v1309_v36  ;;  %1315 = vmatprep.subr.msk.bf16.mxu1 %vm365_vm0, %v1311_v38 }
  0x4c   : > { %890 = vmatpush1.bf16.msra.mxu0 %v868_v43  ;;  %943 = vmatpush1.bf16.msra.mxu1 %v874_v44 }
  0x4f   : > { %1313 = vmatmul.mubr.msk.bf16.vlgmr.msra.gmra.mrb[0].mxu0 %vm358_vm2, %v750_v28  ;;  %1316 = vmatmul.mubr.msk.bf16.vlgmr.msra.gmra.mrb[0].mxu1 %vm358_vm2, %v750_v28 }
  0x50   : > { %921 = vmatprep.mubr.bf16.mxu0 %v1493_v2  ;;  %974 = vmatprep.mubr.bf16.mxu1 %v1493_v2 }
  0x57   : > { %1314 = vmatmul.mubr.msk.bf16.gmra.mrb[4].mxu0 %vm358_vm2, %v749_v42  ;;  %1317 = vmatmul.mubr.msk.bf16.gmra.mrb[4].mxu1 %vm358_vm2, %v749_v42 }
 0x122   : > { %v913_v2 = vpop.f32.mrb[0].mxu0  ;;  %v966_v55 = vpop.f32.mrb[0].mxu1 }
 0x123   : > { %v1023_v56 = vadd.f32 %v1006_v51, %v913_v2  ;;  %v1025_v57 = vadd.f32 %v1014_v52, %v966_v55  ;;  %v915_v58 = vpop.f32.mrb[1].mxu0  ;;  %v968_v59 = vpop.f32.mrb[1].mxu1 }
 0x124   : > { %v1024_v60 = vadd.f32 %v1010_v53, %v915_v58  ;;  %v1026_v61 = vadd.f32 %v1018_v54, %v968_v59  ;;  %v917_v62 = vpop.f32.mrb[2].mxu0  ;;  %v970_v63 = vpop.f32.mrb[2].mxu1 }
 0x125   : > { %v1039_v0 = vmax.f32 %v1023_v56, 0.0  ;;  %v1041_v1 = vmax.f32 %v1025_v57, 0.0  ;;  %v1027_v3 = vadd.f32 %v1006_v51, %v917_v62  ;;  %v1029_v4 = vadd.f32 %v1014_v52, %v970_v63  ;;  %v919_v5 = vpop.f32.mrb[3].mxu0  ;;  %v972_v6 = vpop.f32.mrb[3].mxu1 }
 0x126   : > { %v1040_v7 = vmax.f32 %v1024_v60, 0.0  ;;  %v1042_v8 = vmax.f32 %v1026_v61, 0.0  ;;  %v1028_v9 = vadd.f32 %v1010_v53, %v919_v5  ;;  %v1030_v10 = vadd.f32 %v1018_v54, %v972_v6 }
 0x127   : > { %v1043_v12 = vmax.f32 %v1027_v3, 0.0  ;;  %v1045_v13 = vmax.f32 %v1029_v4, 0.0 }
 0x128   : > { %v1330_v14 = vpack.c.bf16 %v1040_v7, %v1039_v0  ;;  %v1331_v15 = vpack.c.bf16 %v1042_v8, %v1041_v1  ;;  %v1044_v16 = vmax.f32 %v1028_v9, 0.0  ;;  %v1046_v17 = vmax.f32 %v1030_v10, 0.0 }
 0x12a   : > { %1103 = vst [vmem:[%s1796_s13] sm:$0xff] %v1330_v14  ;;  %1107 = vst.msk [vmem:[%s1796_s13 + $0x8] sm:$0xff] %vm1799_vm6, %v1331_v15  ;;  %v1332_v18 = vpack.c.bf16 %v1044_v16, %v1043_v12  ;;  %v1333_v19 = vpack.c.bf16 %v1046_v17, %v1045_v13  ;;  %v923_v20 = vpop.f32.mrb[4].mxu0  ;;  %v976_v21 = vpop.f32.mrb[4].mxu1 }
 0x12b   : > { %v1031_v22 = vadd.f32 %v1006_v51, %v923_v20  ;;  %v1033_v23 = vadd.f32 %v1014_v52, %v976_v21  ;;  %v925_v24 = vpop.f32.mrb[5].mxu0  ;;  %v978_v25 = vpop.f32.mrb[5].mxu1 }
 0x12c   : > { %1108 = vst [vmem:[%s1796_s13 + $0x10] sm:$0xff] %v1332_v18  ;;  %1109 = vst.msk [vmem:[%s1796_s13 + $0x18] sm:$0xff] %vm1799_vm6, %v1333_v19  ;;  %v1032_v26 = vadd.f32 %v1010_v53, %v925_v24  ;;  %v1034_v27 = vadd.f32 %v1018_v54, %v978_v25  ;;  %v927_v29 = vpop.f32.mrb[6].mxu0  ;;  %v980_v30 = vpop.f32.mrb[6].mxu1 }
 0x12d   : > { %v1047_v31 = vmax.f32 %v1031_v22, 0.0  ;;  %v1049_v33 = vmax.f32 %v1033_v23, 0.0  ;;  %v1035_v34 = vadd.f32 %v1006_v51, %v927_v29  ;;  %v1037_v35 = vadd.f32 %v1014_v52, %v980_v30  ;;  %v929_v36 = vpop.f32.mrb[7].mxu0  ;;  %v982_v37 = vpop.f32.mrb[7].mxu1 }
 0x12e   : > { %v1048_v38 = vmax.f32 %v1032_v26, 0.0  ;;  %v1050_v39 = vmax.f32 %v1034_v27, 0.0  ;;  %v1036_v40 = vadd.f32 %v1010_v53, %v929_v36  ;;  %v1038_v41 = vadd.f32 %v1018_v54, %v982_v37 }
 0x12f   : > { %v1051_v42 = vmax.f32 %v1035_v34, 0.0  ;;  %v1053_v43 = vmax.f32 %v1037_v35, 0.0 }
 0x130   : > { %v1334_v44 = vpack.c.bf16 %v1048_v38, %v1047_v31  ;;  %v1335_v28 = vpack.c.bf16 %v1050_v39, %v1049_v33  ;;  %v1052_v32 = vmax.f32 %v1036_v40, 0.0  ;;  %v1054_v45 = vmax.f32 %v1038_v41, 0.0 }
 0x132   : > { %1110 = vst [vmem:[%s1796_s13 + $0x20] sm:$0xff] %v1334_v44  ;;  %1111 = vst.msk [vmem:[%s1796_s13 + $0x28] sm:$0xff] %vm1799_vm6, %v1335_v28  ;;  %v1336_v46 = vpack.c.bf16 %v1052_v32, %v1051_v42  ;;  %v1337_v47 = vpack.c.bf16 %v1054_v45, %v1053_v43 }
 0x134   : > { %1112 = vst [vmem:[%s1796_s13 + $0x30] sm:$0x33] %v1336_v46  ;;  %1115 = vst.msk [vmem:[%s1796_s13 + $0x38] sm:$0x33] %vm1114_vm8, %v1337_v47 }
 0x135 PF: > { %s13_s12 = sadd.s32 1, %s1491_s12  }
 0x136   : > { %p10_p4 = scmp.ge.s32.totalorder %s13_s12, 4  }
 0x138   :  { %12 = sbr.rel (!%p10_p4) target bundleno = 1 (0x1), region = 64 }

// kernel: ae_conv28_forward.10
= control target key start
LH: loop header
LB: loop body
LE: loop exit
PB: predicated region body
PF: predicated region fallthrough
CT: control target
= control target key end

     0   :  { %s306_s6 = smov 0   ;;  %s361_s0 = inlined_call_operand.vmem [shape: bf16[14,2,7,64], index: 0, kind: input, shape index: {}]   ;;  %s362_s1 = inlined_call_operand.vmem [shape: bf16[14,7,32], index: 1, kind: output, shape index: {}]  }
   0x1 LB: > { %s260_s7 = sadd.s32 4294967295, %s293_s6   ;;  %p264_p0 = scmp.ge.s32.totalorder %s293_s6, 1  ;;  %s293_s6 = sphi %s306_s6, %s11_s6  }
   0x2   : > { %p89_p1 = scmp.lt.s32.totalorder %s293_s6, 3 }
   0x4   : > { %p90_p2 = pnand %p264_p0, %p89_p1 }
   0x5   : > { %s110_s8 = smul.u32 (!%p90_p2), 7, %s260_s7  ;;  %s295_s13 = smov (!%p90_p2), 96   ;;  %vm180_vm0 = vcmask (!%p90_p2), 257024   ;;  %vm181_vm1 = vsmask.f32 (!%p90_p2), 3328 }
   0x6   : > { %93 = sbr.rel (%p90_p2) target bundleno = 150 (0x96), region = 24  ;;  %vm326_vm2 = vmand (!%p90_p2), %vm180_vm0, %vm181_vm1 }
   0x7   : > { %p111_p3 = scmp.lt.s32.totalorder (!%p90_p2), %s110_s8, 13 }
   0xd   : > { %s366_s8 = smov (!%p111_p3, %s110_s8), 13 }
   0xe   : > { %s277_s9 = sshll.u32 %s366_s8, 3  ;;  %s267_s14 = sshll.u32 %s366_s8, 2 }
   0xf   : > { %s115_s12 = scalar_lea.vmem %s361_s0, %s277_s9  ;;  %s324_s17 = scalar_lea.vmem %s362_s1, %s267_s14 }
  0x10   : > { %v123_v0 = vld [vmem:[%s115_s12] sm:$0xf]  ;;  %v268_v1 = vld [vmem:[%s115_s12 + $0x4] sm:$0xf]  ;;  %v125_v2 = vld [vmem:[%s115_s12 + $0x10] sm:$0xf] }
  0x11   : > { %v138_v3 = vmax.bf16 %v268_v1, %v123_v0  ;;  %v270_v4 = vld [vmem:[%s115_s12 + $0x14] sm:$0xf]  ;;  %v124_v5 = vld [vmem:[%s115_s12 + $0x8] sm:$0xf]  ;;  %v269_v6 = vld [vmem:[%s115_s12 + $0xc] sm:$0xf] }
  0x12   : > { %v140_v7 = vmax.bf16 %v270_v4, %v125_v2  ;;  %v126_v8 = vld [vmem:[%s115_s12 + $0x18] sm:$0xf]  ;;  %v271_v9 = vld [vmem:[%s115_s12 + $0x1c] sm:$0xf]  ;;  %v139_v10 = vmax.bf16 %v269_v6, %v124_v5  ;;  %v127_v12 = vld [vmem:[%s115_s12 + $0x20] sm:$0xf] }
  0x13   : > { %152 = vrot.lane.b32.xlu0 %v138_v3, %s295_s13  ;;  %v141_v11 = vmax.bf16 %v271_v9, %v126_v8  ;;  %v272_v13 = vld [vmem:[%s115_s12 + $0x24] sm:$0xf]  ;;  %v128_v14 = vld [vmem:[%s115_s12 + $0x28] sm:$0xf]  ;;  %v273_v15 = vld [vmem:[%s115_s12 + $0x2c] sm:$0xf] }
  0x14   : > { %156 = vrot.lane.b32.xlu1 %v140_v7, %s295_s13  ;;  %v142_v16 = vmax.bf16 %v272_v13, %v127_v12  ;;  %v143_v17 = vmax.bf16 %v273_v15, %v128_v14  ;;  %v129_v18 = vld [vmem:[%s115_s12 + $0x30] sm:$0xf]  ;;  %v274_v19 = vld [vmem:[%s115_s12 + $0x34] sm:$0xf]  ;;  %v183_v22 = vld [vmem:[%s324_s17] sm:$0xf] }
  0x15   : > { %v144_v20 = vmax.bf16 %v274_v19, %v129_v18  ;;  %v189_v25 = vld [vmem:[%s324_s17 + $0x8] sm:$0xf]  ;;  %v186_v30 = vld [vmem:[%s324_s17 + $0x4] sm:$0xf]  ;;  %v192_v33 = vld [vmem:[%s324_s17 + $0xc] sm:$0xf] }
  0x16   : > { %v195_v38 = vld [vmem:[%s324_s17 + $0x10] sm:$0xf]  ;;  %v198_v41 = vld [vmem:[%s324_s17 + $0x14] sm:$0xf]  ;;  %v201_v46 = vld [vmem:[%s324_s17 + $0x18] sm:$0xf] }
  0x17   : > { %154 = vrot.lane.b32.xlu0 %v139_v10, %s295_s13 }
  0x18   : > { %158 = vrot.lane.b32.xlu1 %v141_v11, %s295_s13 }
  0x1b   : > { %160 = vrot.lane.b32.xlu0 %v142_v16, %s295_s13 }
  0x1c   : > { %162 = vrot.lane.b32.xlu1 %v143_v17, %s295_s13 }
  0x1f   : > { %164 = vrot.lane.b32.xlu0 %v144_v20, %s295_s13 }
  0x85   : > { %v153_v23 = vpop.permute.xlu0 %152 }
  0x86   : > { %v173_v24 = vmax.bf16 %v153_v23, %v138_v3  ;;  %v157_v26 = vpop.permute.xlu1 %156 }
  0x87   : > { %v175_v27 = vmax.bf16 %v157_v26, %v140_v7 }
  0x88   : > { %v184_v28 = vsel %vm326_vm2, %v173_v24, %v183_v22 }
  0x89   : > { %185 = vst [vmem:[%s324_s17] sm:$0xf] %v184_v28  ;;  %v190_v29 = vsel %vm326_vm2, %v175_v27, %v189_v25  ;;  %v155_v31 = vpop.permute.xlu0 %154 }
  0x8a   : > { %191 = vst [vmem:[%s324_s17 + $0x8] sm:$0xf] %v190_v29  ;;  %v174_v32 = vmax.bf16 %v155_v31, %v139_v10  ;;  %v159_v34 = vpop.permute.xlu1 %158 }
  0x8b   : > { %v176_v35 = vmax.bf16 %v159_v34, %v141_v11 }
  0x8c   : > { %v187_v36 = vsel %vm326_vm2, %v174_v32, %v186_v30 }
  0x8d   : > { %188 = vst [vmem:[%s324_s17 + $0x4] sm:$0xf] %v187_v36  ;;  %v193_v37 = vsel %vm326_vm2, %v176_v35, %v192_v33  ;;  %v161_v39 = vpop.permute.xlu0 %160 }
  0x8e   : > { %194 = vst [vmem:[%s324_s17 + $0xc] sm:$0xf] %v193_v37  ;;  %v177_v40 = vmax.bf16 %v161_v39, %v142_v16  ;;  %v163_v42 = vpop.permute.xlu1 %162 }
  0x8f   : > { %v178_v43 = vmax.bf16 %v163_v42, %v143_v17 }
  0x90   : > { %v196_v44 = vsel %vm326_vm2, %v177_v40, %v195_v38 }
  0x91   : > { %197 = vst [vmem:[%s324_s17 + $0x10] sm:$0xf] %v196_v44  ;;  %v199_v45 = vsel %vm326_vm2, %v178_v43, %v198_v41  ;;  %v165_v47 = vpop.permute.xlu0 %164 }
  0x92   : > { %200 = vst [vmem:[%s324_s17 + $0x14] sm:$0xf] %v199_v45  ;;  %v179_v48 = vmax.bf16 %v165_v47, %v144_v20 }
  0x94   : > { %v202_v49 = vsel %vm326_vm2, %v179_v48, %v201_v46 }
  0x95   : > { %203 = vst [vmem:[%s324_s17 + $0x18] sm:$0xf] %v202_v49 }
  0x96 PF: > { %s11_s6 = sadd.s32 1, %s293_s6  }
  0x97   : > { %p8_p4 = scmp.ge.s32.totalorder %s11_s6, 4  }
  0x99   :  { %10 = sbr.rel (!%p8_p4) target bundleno = 1 (0x1), region = 55 }

// kernel: ae_conv28_forward.9
= control target key start
LH: loop header
LB: loop body
LE: loop exit
PB: predicated region body
PF: predicated region fallthrough
CT: control target
= control target key end

     0   :  { %s2249_s12 = smov 0   ;;  %s2817_s0 = inlined_call_operand.vmem [shape: bf16[2,16,224], index: 0, kind: input, shape index: {}]   ;;  %s2818_s1 = inlined_call_operand.vmem [shape: bf16[3,224,448], index: 1, kind: input, shape index: {}]   ;;  %s2819_s2 = inlined_call_operand.vmem [shape: f32[1,448], index: 2, kind: input, shape index: {}]   ;;  %s2820_s3 = inlined_call_operand.vmem [shape: bf16[2,14,448], index: 3, kind: output, shape index: {}]  }
   0x1 LB: > { %s1626_s13 = sadd.s32 4294967295, %s2227_s12   ;;  %p1630_p0 = scmp.ge.s32.totalorder %s2227_s12, 1  ;;  %s2227_s12 = sphi %s2249_s12, %s13_s12  }
   0x2   : > { %p137_p1 = scmp.lt.s32.totalorder %s2227_s12, 3 }
   0x4   : > { %p138_p2 = pnand %p1630_p0, %p137_p1 }
   0x5   : > { %v1963_v0 = vld [vmem:[%s2818_s1 + $0x1c4] ss:$16 sps:$4 sm:$0xff] (!%p138_p2)   ;;  %v1965_v1 = vld [vmem:[%s2818_s1 + $0x1cc] ss:$16 sps:$4 sm:$0xff] (!%p138_p2)   ;;  %v1967_v2 = vld [vmem:[%s2818_s1 + $0x1c0] ss:$16 sps:$4 sm:$0xff] (!%p138_p2)  }
   0x6   : > { %141 = sbr.rel (%p138_p2) target bundleno = 396 (0x18c), region = 32  ;;  %595 = vmatprep.subr.bf16.mxu0 (!%p138_p2), %v1963_v0  ;;  %v1968_v3 = vld [vmem:[%s2818_s1 + $0x1c8] ss:$16 sps:$4 sm:$0xff] (!%p138_p2)   ;;  %638 = vmatprep.subr.bf16.mxu1 (!%p138_p2), %v1965_v1  ;;  %v1969_v4 = vld [vmem:[%s2818_s1 + $0x1e4] ss:$16 sps:$4 sm:$0xff] (!%p138_p2)   ;;  %p161_p3 = scmp.lt.s32.totalorder (!%p138_p2), %s1626_s13, 1 }
   0x7   : > { %596 = vmatpush1.bf16.msra.mxu0 (!%p138_p2), %v1967_v2  ;;  %639 = vmatpush1.bf16.msra.mxu1 (!%p138_p2), %v1968_v3  ;;  %v1971_v5 = vld [vmem:[%s2818_s1 + $0x1ec] ss:$16 sps:$4 sm:$0xff] (!%p138_p2)   ;;  %v1973_v6 = vld [vmem:[%s2818_s1 + $0x1e0] ss:$16 sps:$4 sm:$0xff] (!%p138_p2)   ;;  %v1974_v7 = vld [vmem:[%s2818_s1 + $0x1e8] ss:$16 sps:$4 sm:$0xff] (!%p138_p2)  }
   0x8   : > { %597 = vmatprep.subr.bf16.mxu0 (!%p138_p2), %v1969_v4  ;;  %640 = vmatprep.subr.bf16.mxu1 (!%p138_p2), %v1971_v5  ;;  %v1975_v8 = vld [vmem:[%s2818_s1 + $0x204] ss:$16 sps:$4 sm:$0xff] (!%p138_p2)   ;;  %v1977_v9 = vld [vmem:[%s2818_s1 + $0x20c] ss:$16 sps:$4 sm:$0xff] (!%p138_p2)   ;;  %v1979_v10 = vld [vmem:[%s2818_s1 + $0x200] ss:$16 sps:$4 sm:$0xff] (!%p138_p2)  }
   0x9   : > { %v1980_v11 = vld [vmem:[%s2818_s1 + $0x208] ss:$16 sps:$4 sm:$0xff] (!%p138_p2)   ;;  %v1981_v12 = vld [vmem:[%s2818_s1 + $0x224] ss:$16 sps:$4 sm:$0xff] (!%p138_p2)   ;;  %v1983_v13 = vld [vmem:[%s2818_s1 + $0x22c] ss:$16 sps:$4 sm:$0xff] (!%p138_p2)  }
   0xa   : > { %v1985_v14 = vld [vmem:[%s2818_s1 + $0x220] ss:$16 sps:$4 sm:$0xff] (!%p138_p2)   ;;  %v1986_v15 = vld [vmem:[%s2818_s1 + $0x228] ss:$16 sps:$4 sm:$0xff] (!%p138_p2)   ;;  %v1987_v16 = vld [vmem:[%s2818_s1 + $0x244] ss:$16 sps:$4 sm:$0xff] (!%p138_p2)  }
   0xb   : > { %598 = vmatpush1.bf16.msra.mxu0 (!%p138_p2), %v1973_v6  ;;  %641 = vmatpush1.bf16.msra.mxu1 (!%p138_p2), %v1974_v7  ;;  %v1989_v17 = vld [vmem:[%s2818_s1 + $0x24c] ss:$16 sps:$4 sm:$0xff] (!%p138_p2)   ;;  %v1991_v18 = vld [vmem:[%s2818_s1 + $0x240] ss:$16 sps:$4 sm:$0xff] (!%p138_p2)   ;;  %v1992_v19 = vld [vmem:[%s2818_s1 + $0x248] ss:$16 sps:$4 sm:$0xff] (!%p138_p2)  }
   0xc   : > { %599 = vmatprep.subr.bf16.mxu0 (!%p138_p2), %v1975_v8  ;;  %642 = vmatprep.subr.bf16.mxu1 (!%p138_p2), %v1977_v9  ;;  %v1993_v20 = vld [vmem:[%s2818_s1 + $0x264] ss:$16 sps:$4 sm:$0xff] (!%p138_p2)   ;;  %v1995_v21 = vld [vmem:[%s2818_s1 + $0x26c] ss:$16 sps:$4 sm:$0xff] (!%p138_p2)   ;;  %v1997_v22 = vld [vmem:[%s2818_s1 + $0x260] ss:$16 sps:$4 sm:$0xff] (!%p138_p2)  }
   0xd   : > { %v1998_v23 = vld [vmem:[%s2818_s1 + $0x268] ss:$16 sps:$4 sm:$0xff]   ;;  %v1999_v24 = vld [vmem:[%s2818_s1 + $0x284] ss:$16 sps:$4 sm:$0xff]   ;;  %v2001_v25 = vld [vmem:[%s2818_s1 + $0x28c] ss:$16 sps:$4 sm:$0xff]  }
   0xe   : > { %v2003_v26 = vld [vmem:[%s2818_s1 + $0x280] ss:$16 sps:$4 sm:$0xff]   ;;  %v2004_v27 = vld [vmem:[%s2818_s1 + $0x288] ss:$16 sps:$4 sm:$0xff]   ;;  %v2005_v28 = vld [vmem:[%s2818_s1 + $0x2a4] ss:$16 sps:$4 sm:$0xff]  }
   0xf   : > { %600 = vmatpush1.bf16.msra.mxu0 %v1979_v10  ;;  %643 = vmatpush1.bf16.msra.mxu1 %v1980_v11  ;;  %v2007_v29 = vld [vmem:[%s2818_s1 + $0x2ac] ss:$16 sps:$4 sm:$0xff]   ;;  %v2009_v30 = vld [vmem:[%s2818_s1 + $0x2a0] ss:$16 sps:$4 sm:$0xff]   ;;  %s2822_s13 = smov (!%p161_p3, %s1626_s13), 1  ;;  %vm591_vm0 = vcmask 785408  }
  0x10   : > { %601 = vmatprep.subr.bf16.mxu0 %v1981_v12  ;;  %644 = vmatprep.subr.bf16.mxu1 %v1983_v13  ;;  %v2010_v31 = vld [vmem:[%s2818_s1 + $0x2a8] ss:$16 sps:$4 sm:$0xff]   ;;  %v2011_v32 = vld [vmem:[%s2818_s1 + $0x2c4] ss:$16 sps:$4 sm:$0xff]   ;;  %v2013_v33 = vld [vmem:[%s2818_s1 + $0x2cc] ss:$16 sps:$4 sm:$0xff]  }
  0x11   : > { %v2015_v34 = vld [vmem:[%s2818_s1 + $0x2c0] ss:$16 sps:$4 sm:$0xff]   ;;  %v2016_v35 = vld [vmem:[%s2818_s1 + $0x2c8] ss:$16 sps:$4 sm:$0xff]   ;;  %s1933_s9 = sshll.u32 %s2822_s13, 4  ;;  %vm1562_vm1 = vcmask 1043456  }
  0x12   : > { %v2017_v36 = vld [vmem:[%s2818_s1 + $0x2e4] ss:$16 sps:$4 sm:$0xff]   ;;  %v2019_v37 = vld [vmem:[%s2818_s1 + $0x2ec] ss:$16 sps:$4 sm:$0xff]   ;;  %s2381_s18 = scalar_lea.vmem %s2817_s0, %s1933_s9  ;;  %v2021_v38 = vld [vmem:[%s2818_s1 + $0x2e0] ss:$16 sps:$4 sm:$0xff]  }
  0x13   : > { %602 = vmatpush1.bf16.msra.mxu0 %v1985_v14  ;;  %645 = vmatpush1.bf16.msra.mxu1 %v1986_v15  ;;  %v2022_v39 = vld [vmem:[%s2818_s1 + $0x2e8] ss:$16 sps:$4 sm:$0xff]   ;;  %v2023_v40 = vld [vmem:[%s2818_s1 + $0x304] ss:$16 sps:$4 sm:$0xff]   ;;  %v2025_v41 = vld [vmem:[%s2818_s1 + $0x30c] ss:$16 sps:$4 sm:$0xff]  }
  0x14   : > { %603 = vmatprep.subr.bf16.mxu0 %v1987_v16  ;;  %646 = vmatprep.subr.bf16.mxu1 %v1989_v17  ;;  %v2396_v42 = vld [vmem:[%s2381_s18] sm:$0xff]  ;;  %v2399_v43 = vld [vmem:[%s2381_s18 + $0x8] sm:$0xff]  ;;  %vm1563_vm2 = vcmask 523268   ;;  %s1934_s10 = sshll.u32 %s2822_s13, 5  ;;  %vm1567_vm3 = vcmask 1042432   ;;  %vm1568_vm4 = vcmask 522244  }
  0x15   : > { %v1692_v44 = vcombine.high %v2396_v42, %v2399_v43  ;;  %v2027_v45 = vld [vmem:[%s2818_s1 + $0x300] ss:$16 sps:$4 sm:$0xff]   ;;  %v2028_v46 = vld [vmem:[%s2818_s1 + $0x308] ss:$16 sps:$4 sm:$0xff]   ;;  %v2029_v47 = vld [vmem:[%s2818_s1 + $0x324] ss:$16 sps:$4 sm:$0xff]   ;;  %v1691_v53 = vcombine.low %v2396_v42, %v2399_v43  ;;  %s170_s13 = scalar_lea.vmem %s2820_s3, %s1934_s10 }
  0x16   : > { %v2031_v50 = vld [vmem:[%s2818_s1 + $0x32c] ss:$16 sps:$4 sm:$0xff]   ;;  %v2033_v52 = vld [vmem:[%s2818_s1 + $0x320] ss:$16 sps:$4 sm:$0xff]   ;;  %v2034_v54 = vld [vmem:[%s2818_s1 + $0x328] ss:$16 sps:$4 sm:$0xff]  }
  0x17   : > { %604 = vmatpush1.bf16.msra.mxu0 %v1991_v18  ;;  %647 = vmatpush1.bf16.msra.mxu1 %v1992_v19  ;;  %v304_v48 = vshrl.u32 %v1692_v44, 16  ;;  %v306_v49 = vshll.u32 %v1692_v44, 16  ;;  %v2035_v55 = vld [vmem:[%s2818_s1 + $0x344] ss:$16 sps:$4 sm:$0xff]   ;;  %v2037_v57 = vld [vmem:[%s2818_s1 + $0x34c] ss:$16 sps:$4 sm:$0xff]   ;;  %vm1564_vm5 = vmor %vm1563_vm2, %vm1562_vm1 }
  0x18   : > { %605 = vmatprep.subr.bf16.mxu0 %v1993_v20  ;;  %648 = vmatprep.subr.bf16.mxu1 %v1995_v21  ;;  %v2039_v58 = vld [vmem:[%s2818_s1 + $0x340] ss:$16 sps:$4 sm:$0xff]   ;;  %v299_v59 = vshll.u32 %v1691_v53, 16  ;;  %v2040_v60 = vld [vmem:[%s2818_s1 + $0x348] ss:$16 sps:$4 sm:$0xff]   ;;  %v297_v0 = vshrl.u32 %v1691_v53, 16  ;;  %vm1569_vm6 = vmor %vm1568_vm4, %vm1567_vm3 }
  0x19   : > { %v308_v51 = vrot.slane %v306_v49, 1  ;;  %v2041_v61 = vld [vmem:[%s2818_s1 + $0x364] ss:$16 sps:$4 sm:$0xff]   ;;  %v2043_v62 = vld [vmem:[%s2818_s1 + $0x36c] ss:$16 sps:$4 sm:$0xff]  }
  0x1a   : > { %v2045_v63 = vld [vmem:[%s2818_s1 + $0x360] ss:$16 sps:$4 sm:$0xff]   ;;  %v301_v1 = vrot.slane %v299_v59, 1  ;;  %v2046_v2 = vld [vmem:[%s2818_s1 + $0x368] ss:$16 sps:$4 sm:$0xff]  }
  0x1b   : > { %606 = vmatpush1.bf16.msra.mxu0 %v1997_v22  ;;  %649 = vmatpush1.bf16.msra.mxu1 %v1998_v23  ;;  %v309_v56 = vor.u32 %v308_v51, %v304_v48  ;;  %v2050_v3 = vld [vmem:[%s2818_s1 + $0x4] ss:$16 sps:$4 sm:$0xff]   ;;  %v2053_v4 = vld [vmem:[%s2818_s1 + $0xc] ss:$16 sps:$4 sm:$0xff]   ;;  %v2048_v5 = vld [vmem:[%s2818_s1] ss:$16 sps:$4 sm:$0xff]  }
  0x1c   : > { %607 = vmatprep.subr.bf16.mxu0 %v1999_v24  ;;  %650 = vmatprep.subr.bf16.mxu1 %v2001_v25  ;;  %v302_v6 = vor.u32 %v301_v1, %v297_v0  ;;  %v2051_v7 = vld [vmem:[%s2818_s1 + $0x8] ss:$16 sps:$4 sm:$0xff]   ;;  %v2057_v8 = vld [vmem:[%s2818_s1 + $0x24] ss:$16 sps:$4 sm:$0xff]   ;;  %v2060_v9 = vld [vmem:[%s2818_s1 + $0x2c] ss:$16 sps:$4 sm:$0xff]  }
  0x1d   : > { %1749 = vmatprep.mubr.msk.bf16.mxu0 %vm591_vm0, %v309_v56  ;;  %1750 = vmatprep.mubr.msk.bf16.mxu1 %vm591_vm0, %v309_v56  ;;  %v2055_v10 = vld [vmem:[%s2818_s1 + $0x20] ss:$16 sps:$4 sm:$0xff]   ;;  %v2058_v11 = vld [vmem:[%s2818_s1 + $0x28] ss:$16 sps:$4 sm:$0xff]   ;;  %v2063_v12 = vld [vmem:[%s2818_s1 + $0x44] ss:$16 sps:$4 sm:$0xff]  }
  0x1e   : > { %v2066_v13 = vld [vmem:[%s2818_s1 + $0x4c] ss:$16 sps:$4 sm:$0xff]   ;;  %v2061_v14 = vld [vmem:[%s2818_s1 + $0x40] ss:$16 sps:$4 sm:$0xff]   ;;  %v2064_v15 = vld [vmem:[%s2818_s1 + $0x48] ss:$16 sps:$4 sm:$0xff]  }
  0x1f   : > { %608 = vmatpush1.bf16.msra.mxu0 %v2003_v26  ;;  %651 = vmatpush1.bf16.msra.mxu1 %v2004_v27  ;;  %v2069_v16 = vld [vmem:[%s2818_s1 + $0x64] ss:$16 sps:$4 sm:$0xff]   ;;  %v2072_v17 = vld [vmem:[%s2818_s1 + $0x6c] ss:$16 sps:$4 sm:$0xff]   ;;  %v2067_v18 = vld [vmem:[%s2818_s1 + $0x60] ss:$16 sps:$4 sm:$0xff]  }
  0x20   : > { %609 = vmatprep.subr.bf16.mxu0 %v2005_v28  ;;  %652 = vmatprep.subr.bf16.mxu1 %v2007_v29  ;;  %v2070_v19 = vld [vmem:[%s2818_s1 + $0x68] ss:$16 sps:$4 sm:$0xff]   ;;  %v2075_v20 = vld [vmem:[%s2818_s1 + $0x84] ss:$16 sps:$4 sm:$0xff]   ;;  %v2078_v21 = vld [vmem:[%s2818_s1 + $0x8c] ss:$16 sps:$4 sm:$0xff]  }
  0x21   : > { %v2073_v22 = vld [vmem:[%s2818_s1 + $0x80] ss:$16 sps:$4 sm:$0xff]   ;;  %v2076_v23 = vld [vmem:[%s2818_s1 + $0x88] ss:$16 sps:$4 sm:$0xff]   ;;  %v2081_v24 = vld [vmem:[%s2818_s1 + $0xa4] ss:$16 sps:$4 sm:$0xff]  }
  0x22   : > { %v2084_v25 = vld [vmem:[%s2818_s1 + $0xac] ss:$16 sps:$4 sm:$0xff]   ;;  %v2079_v26 = vld [vmem:[%s2818_s1 + $0xa0] ss:$16 sps:$4 sm:$0xff]   ;;  %v2082_v27 = vld [vmem:[%s2818_s1 + $0xa8] ss:$16 sps:$4 sm:$0xff]  }
  0x23   : > { %610 = vmatpush1.bf16.msra.mxu0 %v2009_v30  ;;  %653 = vmatpush1.bf16.msra.mxu1 %v2010_v31  ;;  %v2522_v28 = vld [vmem:[%s2381_s18 + $0x8] sm:$0x77]  ;;  %v2087_v29 = vld [vmem:[%s2818_s1 + $0xc4] ss:$16 sps:$4 sm:$0xff]  }
  0x24   : > { %611 = vmatprep.subr.bf16.mxu0 %v2011_v32  ;;  %654 = vmatprep.subr.bf16.mxu1 %v2013_v33  ;;  %v1752_v30 = vcombine.high %v2396_v42, %v2522_v28  ;;  %v2090_v31 = vld [vmem:[%s2818_s1 + $0xcc] ss:$16 sps:$4 sm:$0xff]   ;;  %v2085_v32 = vld [vmem:[%s2818_s1 + $0xc0] ss:$16 sps:$4 sm:$0xff]   ;;  %v2088_v33 = vld [vmem:[%s2818_s1 + $0xc8] ss:$16 sps:$4 sm:$0xff]  }
  0x25   : > { %v2105_v44 = vld [vmem:[%s2818_s1 + $0x124] ss:$16 sps:$4 sm:$0xff]   ;;  %v2114_v49 = vld [vmem:[%s2818_s1 + $0x14c] ss:$16 sps:$4 sm:$0xff]   ;;  %v2112_v51 = vld [vmem:[%s2818_s1 + $0x148] ss:$16 sps:$4 sm:$0xff]  }
  0x26   : > { %v2111_v48 = vld [vmem:[%s2818_s1 + $0x144] ss:$16 sps:$4 sm:$0xff]   ;;  %v2120_v53 = vld [vmem:[%s2818_s1 + $0x16c] ss:$16 sps:$4 sm:$0xff]   ;;  %v2124_v59 = vld [vmem:[%s2818_s1 + $0x188] ss:$16 sps:$4 sm:$0xff]  }
  0x27   : > { %612 = vmatpush1.bf16.msra.mxu0 %v2015_v34  ;;  %655 = vmatpush1.bf16.msra.mxu1 %v2016_v35  ;;  %v2093_v34 = vld [vmem:[%s2818_s1 + $0xe4] ss:$16 sps:$4 sm:$0xff]   ;;  %v2096_v35 = vld [vmem:[%s2818_s1 + $0xec] ss:$16 sps:$4 sm:$0xff]  }
  0x28   : > { %613 = vmatprep.subr.bf16.mxu0 %v2017_v36  ;;  %656 = vmatprep.subr.bf16.mxu1 %v2019_v37  ;;  %v2091_v36 = vld [vmem:[%s2818_s1 + $0xe0] ss:$16 sps:$4 sm:$0xff]   ;;  %v2094_v37 = vld [vmem:[%s2818_s1 + $0xe8] ss:$16 sps:$4 sm:$0xff]   ;;  %v2123_v56 = vld [vmem:[%s2818_s1 + $0x184] ss:$16 sps:$4 sm:$0xff]  }
  0x29   : > { %v2136_v0 = vld [vmem:[%s2818_s1 + $0x384] ss:$16 sps:$4 sm:$0xff]   ;;  %v2139_v1 = vld [vmem:[%s2818_s1 + $0x38c] ss:$16 sps:$4 sm:$0xff]  }
  0x2b   : > { %614 = vmatpush1.bf16.msra.mxu0 %v2021_v38  ;;  %657 = vmatpush1.bf16.msra.mxu1 %v2022_v39  ;;  %v2099_v38 = vld [vmem:[%s2818_s1 + $0x104] ss:$16 sps:$4 sm:$0xff]   ;;  %v2102_v39 = vld [vmem:[%s2818_s1 + $0x10c] ss:$16 sps:$4 sm:$0xff]  }
  0x2c   : > { %615 = vmatprep.subr.bf16.mxu0 %v2023_v40  ;;  %658 = vmatprep.subr.bf16.mxu1 %v2025_v41  ;;  %v2097_v40 = vld [vmem:[%s2818_s1 + $0x100] ss:$16 sps:$4 sm:$0xff]   ;;  %v2100_v41 = vld [vmem:[%s2818_s1 + $0x108] ss:$16 sps:$4 sm:$0xff]  }
  0x2f   : > { %616 = vmatpush1.bf16.msra.mxu0 %v2027_v45  ;;  %659 = vmatpush1.bf16.msra.mxu1 %v2028_v46  ;;  %v2108_v45 = vld [vmem:[%s2818_s1 + $0x12c] ss:$16 sps:$4 sm:$0xff]   ;;  %v2103_v46 = vld [vmem:[%s2818_s1 + $0x120] ss:$16 sps:$4 sm:$0xff]  }
  0x30   : > { %617 = vmatprep.subr.bf16.mxu0 %v2029_v47  ;;  %660 = vmatprep.subr.bf16.mxu1 %v2031_v50  ;;  %v2106_v47 = vld [vmem:[%s2818_s1 + $0x128] ss:$16 sps:$4 sm:$0xff]   ;;  %v2109_v50 = vld [vmem:[%s2818_s1 + $0x140] ss:$16 sps:$4 sm:$0xff]  }
  0x33   : > { %618 = vmatpush1.bf16.msra.mxu0 %v2033_v52  ;;  %661 = vmatpush1.bf16.msra.mxu1 %v2034_v54  ;;  %v2117_v52 = vld [vmem:[%s2818_s1 + $0x164] ss:$16 sps:$4 sm:$0xff]   ;;  %v2115_v54 = vld [vmem:[%s2818_s1 + $0x160] ss:$16 sps:$4 sm:$0xff]  }
  0x34   : > { %619 = vmatprep.subr.bf16.mxu0 %v2035_v55  ;;  %662 = vmatprep.subr.bf16.mxu1 %v2037_v57  ;;  %v2118_v55 = vld [vmem:[%s2818_s1 + $0x168] ss:$16 sps:$4 sm:$0xff]   ;;  %v2126_v57 = vld [vmem:[%s2818_s1 + $0x18c] ss:$16 sps:$4 sm:$0xff]  }
  0x37   : > { %620 = vmatpush1.bf16.msra.mxu0 %v2039_v58  ;;  %663 = vmatpush1.bf16.msra.mxu1 %v2040_v60  ;;  %v2121_v58 = vld [vmem:[%s2818_s1 + $0x180] ss:$16 sps:$4 sm:$0xff]   ;;  %v2129_v60 = vld [vmem:[%s2818_s1 + $0x1a4] ss:$16 sps:$4 sm:$0xff]  }
  0x38   : > { %621 = vmatprep.subr.bf16.mxu0 %v2041_v61  ;;  %664 = vmatprep.subr.bf16.mxu1 %v2043_v62  ;;  %v2132_v61 = vld [vmem:[%s2818_s1 + $0x1ac] ss:$16 sps:$4 sm:$0xff]   ;;  %v2127_v62 = vld [vmem:[%s2818_s1 + $0x1a0] ss:$16 sps:$4 sm:$0xff]  }
  0x3b   : > { %622 = vmatpush1.bf16.msra.mxu0 %v2045_v63  ;;  %665 = vmatpush1.bf16.msra.mxu1 %v2046_v2  ;;  %v2130_v63 = vld [vmem:[%s2818_s1 + $0x1a8] ss:$16 sps:$4 sm:$0xff]   ;;  %v2134_v2 = vld [vmem:[%s2818_s1 + $0x380] ss:$16 sps:$4 sm:$0xff]  }
  0x3c   : > { %970 = vmatprep.subr.bf16.mxu0 %v2050_v3  ;;  %1013 = vmatprep.subr.bf16.mxu1 %v2053_v4  ;;  %v1751_v3 = vcombine.low %v2396_v42, %v2522_v28  ;;  %v2137_v4 = vld [vmem:[%s2818_s1 + $0x388] ss:$16 sps:$4 sm:$0xff]   ;;  %v2176_v28 = vld [vmem:[%s2818_s1 + $0x44c] ss:$16 sps:$4 sm:$0xff]  }
  0x3e   : > { %628 = vmatmul.mubr.bf16.vlgmr.msra.gmra.mrb[0].mxu0 %v302_v6  ;;  %671 = vmatmul.mubr.bf16.vlgmr.msra.gmra.mrb[0].mxu1 %v302_v6  ;;  %v2146_v6 = vld [vmem:[%s2818_s1 + $0x3ac] ss:$16 sps:$4 sm:$0xff]  }
  0x3f   : > { %971 = vmatpush1.bf16.msra.mxu0 %v2048_v5  ;;  %1014 = vmatpush1.bf16.msra.mxu1 %v2051_v7  ;;  %v2143_v5 = vld [vmem:[%s2818_s1 + $0x3a4] ss:$16 sps:$4 sm:$0xff]  }
  0x40   : > { %972 = vmatprep.subr.bf16.mxu0 %v2057_v8  ;;  %1015 = vmatprep.subr.bf16.mxu1 %v2060_v9  ;;  %v2645_v7 = vld [vmem:[%s2381_s18] sm:$0xee]  ;;  %v2144_v9 = vld [vmem:[%s2818_s1 + $0x3a8] ss:$16 sps:$4 sm:$0xff]  }
  0x41   : > { %1809 = vmatprep.mubr.msk.bf16.mxu0 %vm591_vm0, %v1752_v30  ;;  %1810 = vmatprep.mubr.msk.bf16.mxu1 %vm591_vm0, %v1752_v30  ;;  %v1868_v42 = vcombine.high %v2645_v7, %v2399_v43  ;;  %v2141_v8 = vld [vmem:[%s2818_s1 + $0x3a0] ss:$16 sps:$4 sm:$0xff]   ;;  %v2174_v30 = vld [vmem:[%s2818_s1 + $0x448] ss:$16 sps:$4 sm:$0xff]  }
  0x43   : > { %973 = vmatpush1.bf16.msra.mxu0 %v2055_v10  ;;  %1016 = vmatpush1.bf16.msra.mxu1 %v2058_v11  ;;  %v1120_v10 = vrot.slane %v1868_v42, 1  ;;  %v2149_v11 = vld [vmem:[%s2818_s1 + $0x3c4] ss:$16 sps:$4 sm:$0xff]  }
  0x44   : > { %974 = vmatprep.subr.bf16.mxu0 %v2063_v12  ;;  %1017 = vmatprep.subr.bf16.mxu1 %v2066_v13  ;;  %v2152_v12 = vld [vmem:[%s2818_s1 + $0x3cc] ss:$16 sps:$4 sm:$0xff]   ;;  %v2147_v13 = vld [vmem:[%s2818_s1 + $0x3c0] ss:$16 sps:$4 sm:$0xff]  }
  0x47   : > { %975 = vmatpush1.bf16.msra.mxu0 %v2061_v14  ;;  %1018 = vmatpush1.bf16.msra.mxu1 %v2064_v15  ;;  %v2150_v14 = vld [vmem:[%s2818_s1 + $0x3c8] ss:$16 sps:$4 sm:$0xff]   ;;  %v2155_v15 = vld [vmem:[%s2818_s1 + $0x3e4] ss:$16 sps:$4 sm:$0xff]  }
  0x48   : > { %976 = vmatprep.subr.bf16.mxu0 %v2069_v16  ;;  %1019 = vmatprep.subr.bf16.mxu1 %v2072_v17  ;;  %v2158_v16 = vld [vmem:[%s2818_s1 + $0x3ec] ss:$16 sps:$4 sm:$0xff]   ;;  %v2153_v17 = vld [vmem:[%s2818_s1 + $0x3e0] ss:$16 sps:$4 sm:$0xff]  }
  0x4b   : > { %977 = vmatpush1.bf16.msra.mxu0 %v2067_v18  ;;  %1020 = vmatpush1.bf16.msra.mxu1 %v2070_v19  ;;  %v2156_v18 = vld [vmem:[%s2818_s1 + $0x3e8] ss:$16 sps:$4 sm:$0xff]   ;;  %v2161_v19 = vld [vmem:[%s2818_s1 + $0x404] ss:$16 sps:$4 sm:$0xff]  }
  0x4c   : > { %978 = vmatprep.subr.bf16.mxu0 %v2075_v20  ;;  %1021 = vmatprep.subr.bf16.mxu1 %v2078_v21  ;;  %v2164_v20 = vld [vmem:[%s2818_s1 + $0x40c] ss:$16 sps:$4 sm:$0xff]   ;;  %v2159_v21 = vld [vmem:[%s2818_s1 + $0x400] ss:$16 sps:$4 sm:$0xff]  }
  0x4f   : > { %979 = vmatpush1.bf16.msra.mxu0 %v2073_v22  ;;  %1022 = vmatpush1.bf16.msra.mxu1 %v2076_v23  ;;  %v2162_v22 = vld [vmem:[%s2818_s1 + $0x408] ss:$16 sps:$4 sm:$0xff]   ;;  %v2167_v23 = vld [vmem:[%s2818_s1 + $0x424] ss:$16 sps:$4 sm:$0xff]  }
  0x50   : > { %980 = vmatprep.subr.bf16.mxu0 %v2081_v24  ;;  %1023 = vmatprep.subr.bf16.mxu1 %v2084_v25  ;;  %v2170_v24 = vld [vmem:[%s2818_s1 + $0x42c] ss:$16 sps:$4 sm:$0xff]   ;;  %v2165_v25 = vld [vmem:[%s2818_s1 + $0x420] ss:$16 sps:$4 sm:$0xff]  }
  0x53   : > { %981 = vmatpush1.bf16.msra.mxu0 %v2079_v26  ;;  %1024 = vmatpush1.bf16.msra.mxu1 %v2082_v27  ;;  %v2168_v26 = vld [vmem:[%s2818_s1 + $0x428] ss:$16 sps:$4 sm:$0xff]   ;;  %v2173_v27 = vld [vmem:[%s2818_s1 + $0x444] ss:$16 sps:$4 sm:$0xff]  }
  0x54   : > { %982 = vmatprep.subr.bf16.mxu0 %v2087_v29  ;;  %1025 = vmatprep.subr.bf16.mxu1 %v2090_v31  ;;  %v2171_v29 = vld [vmem:[%s2818_s1 + $0x440] ss:$16 sps:$4 sm:$0xff]   ;;  %v2179_v31 = vld [vmem:[%s2818_s1 + $0x464] ss:$16 sps:$4 sm:$0xff]  }
  0x57   : > { %983 = vmatpush1.bf16.msra.mxu0 %v2085_v32  ;;  %1026 = vmatpush1.bf16.msra.mxu1 %v2088_v33  ;;  %v2182_v32 = vld [vmem:[%s2818_s1 + $0x46c] ss:$16 sps:$4 sm:$0xff]   ;;  %v2177_v33 = vld [vmem:[%s2818_s1 + $0x460] ss:$16 sps:$4 sm:$0xff]  }
  0x58   : > { %984 = vmatprep.subr.bf16.mxu0 %v2093_v34  ;;  %1027 = vmatprep.subr.bf16.mxu1 %v2096_v35  ;;  %v2180_v34 = vld [vmem:[%s2818_s1 + $0x468] ss:$16 sps:$4 sm:$0xff]   ;;  %v2185_v35 = vld [vmem:[%s2818_s1 + $0x484] ss:$16 sps:$4 sm:$0xff]  }
  0x5b   : > { %985 = vmatpush1.bf16.msra.mxu0 %v2091_v36  ;;  %1028 = vmatpush1.bf16.msra.mxu1 %v2094_v37  ;;  %v2188_v36 = vld [vmem:[%s2818_s1 + $0x48c] ss:$16 sps:$4 sm:$0xff]   ;;  %v2183_v37 = vld [vmem:[%s2818_s1 + $0x480] ss:$16 sps:$4 sm:$0xff]  }
  0x5c   : > { %986 = vmatprep.subr.bf16.mxu0 %v2099_v38  ;;  %1029 = vmatprep.subr.bf16.mxu1 %v2102_v39  ;;  %v2186_v38 = vld [vmem:[%s2818_s1 + $0x488] ss:$16 sps:$4 sm:$0xff]   ;;  %v2191_v39 = vld [vmem:[%s2818_s1 + $0x4a4] ss:$16 sps:$4 sm:$0xff]  }
  0x5f   : > { %987 = vmatpush1.bf16.msra.mxu0 %v2097_v40  ;;  %1030 = vmatpush1.bf16.msra.mxu1 %v2100_v41  ;;  %v2194_v40 = vld [vmem:[%s2818_s1 + $0x4ac] ss:$16 sps:$4 sm:$0xff]   ;;  %v2189_v41 = vld [vmem:[%s2818_s1 + $0x4a0] ss:$16 sps:$4 sm:$0xff]  }
  0x60   : > { %988 = vmatprep.subr.bf16.mxu0 %v2105_v44  ;;  %1031 = vmatprep.subr.bf16.mxu1 %v2108_v45  ;;  %v2192_v44 = vld [vmem:[%s2818_s1 + $0x4a8] ss:$16 sps:$4 sm:$0xff]   ;;  %v2197_v45 = vld [vmem:[%s2818_s1 + $0x4c4] ss:$16 sps:$4 sm:$0xff]  }
  0x63   : > { %989 = vmatpush1.bf16.msra.mxu0 %v2103_v46  ;;  %1032 = vmatpush1.bf16.msra.mxu1 %v2106_v47  ;;  %v2200_v46 = vld [vmem:[%s2818_s1 + $0x4cc] ss:$16 sps:$4 sm:$0xff]   ;;  %v2195_v47 = vld [vmem:[%s2818_s1 + $0x4c0] ss:$16 sps:$4 sm:$0xff]  }
  0x64   : > { %990 = vmatprep.subr.bf16.mxu0 %v2111_v48  ;;  %1033 = vmatprep.subr.bf16.mxu1 %v2114_v49  ;;  %v2198_v48 = vld [vmem:[%s2818_s1 + $0x4c8] ss:$16 sps:$4 sm:$0xff]   ;;  %v2203_v49 = vld [vmem:[%s2818_s1 + $0x4e4] ss:$16 sps:$4 sm:$0xff]  }
  0x67   : > { %991 = vmatpush1.bf16.msra.mxu0 %v2109_v50  ;;  %1034 = vmatpush1.bf16.msra.mxu1 %v2112_v51  ;;  %v2206_v50 = vld [vmem:[%s2818_s1 + $0x4ec] ss:$16 sps:$4 sm:$0xff]   ;;  %v2201_v51 = vld [vmem:[%s2818_s1 + $0x4e0] ss:$16 sps:$4 sm:$0xff]  }
  0x68   : > { %992 = vmatprep.subr.bf16.mxu0 %v2117_v52  ;;  %1035 = vmatprep.subr.bf16.mxu1 %v2120_v53  ;;  %v2204_v52 = vld [vmem:[%s2818_s1 + $0x4e8] ss:$16 sps:$4 sm:$0xff]   ;;  %v2209_v53 = vld [vmem:[%s2818_s1 + $0x504] ss:$16 sps:$4 sm:$0xff]  }
  0x6b   : > { %993 = vmatpush1.bf16.msra.mxu0 %v2115_v54  ;;  %1036 = vmatpush1.bf16.msra.mxu1 %v2118_v55  ;;  %v2212_v54 = vld [vmem:[%s2818_s1 + $0x50c] ss:$16 sps:$4 sm:$0xff]   ;;  %v2207_v55 = vld [vmem:[%s2818_s1 + $0x500] ss:$16 sps:$4 sm:$0xff]  }
  0x6c   : > { %994 = vmatprep.subr.bf16.mxu0 %v2123_v56  ;;  %1037 = vmatprep.subr.bf16.mxu1 %v2126_v57  ;;  %v2210_v56 = vld [vmem:[%s2818_s1 + $0x508] ss:$16 sps:$4 sm:$0xff]   ;;  %v2215_v57 = vld [vmem:[%s2818_s1 + $0x524] ss:$16 sps:$4 sm:$0xff]  }
  0x6f   : > { %995 = vmatpush1.bf16.msra.mxu0 %v2121_v58  ;;  %1038 = vmatpush1.bf16.msra.mxu1 %v2124_v59  ;;  %v2218_v58 = vld [vmem:[%s2818_s1 + $0x52c] ss:$16 sps:$4 sm:$0xff]   ;;  %v1867_v59 = vcombine.low %v2645_v7, %v2399_v43 }
  0x70   : > { %996 = vmatprep.subr.bf16.mxu0 %v2129_v60  ;;  %1039 = vmatprep.subr.bf16.mxu1 %v2132_v61  ;;  %v2213_v60 = vld [vmem:[%s2818_s1 + $0x520] ss:$16 sps:$4 sm:$0xff]   ;;  %v2216_v61 = vld [vmem:[%s2818_s1 + $0x528] ss:$16 sps:$4 sm:$0xff]  }
  0x73   : > { %997 = vmatpush1.bf16.msra.mxu0 %v2127_v62  ;;  %1040 = vmatpush1.bf16.msra.mxu1 %v2130_v63  ;;  %v1119_v62 = vrot.slane %v1867_v59, 1  ;;  %v1501_v63 = vlaneseq }
  0x74   : > { %1405 = vmatprep.subr.bf16.mxu0 %v2136_v0  ;;  %1448 = vmatprep.subr.bf16.mxu1 %v2139_v1 }
  0x75   : > { %v1502_v0 = vshrl.u32 %v1501_v63, 7 }
  0x76   : > { %1003 = vmatmul.mubr.bf16.vlgmr.msra.gmra.mrb[0].mxu0 %v1751_v3  ;;  %1046 = vmatmul.mubr.bf16.vlgmr.msra.gmra.mrb[0].mxu1 %v1751_v3 }
  0x77   : > { %1406 = vmatpush1.bf16.msra.mxu0 %v2134_v2  ;;  %1449 = vmatpush1.bf16.msra.mxu1 %v2137_v4  ;;  %v1503_v43 = vsub.s32 0, %v1502_v0  ;;  %v1511_v1 = vsub.s32 2, %v1502_v0  ;;  %v1499_v2 = vld [vmem:[%s2819_s2] sm:$0xf]  ;;  %v1507_v3 = vsub.s32 1, %v1502_v0  ;;  %v1515_v4 = vsub.s32 3, %v1502_v0 }
  0x78   : > { %1407 = vmatprep.subr.bf16.mxu0 %v2143_v5  ;;  %1450 = vmatprep.subr.bf16.mxu1 %v2146_v6 }
  0x79   : > { %1925 = vmatprep.mubr.msk.bf16.mxu0 %vm591_vm0, %v1120_v10  ;;  %1926 = vmatprep.mubr.msk.bf16.mxu1 %vm591_vm0, %v1120_v10  ;;  %v1504_v5 = vrot.slane %v1499_v2, %v1503_v43  ;;  %v1512_v6 = vrot.slane %v1499_v2, %v1511_v1  ;;  %v1508_v7 = vrot.slane %v1499_v2, %v1507_v3 }
  0x7a   : > { %v1516_v42 = vrot.slane %v1499_v2, %v1515_v4 }
  0x7b   : > { %1408 = vmatpush1.bf16.msra.mxu0 %v2141_v8  ;;  %1451 = vmatpush1.bf16.msra.mxu1 %v2144_v9 }
  0x7c   : > { %1409 = vmatprep.subr.bf16.mxu0 %v2149_v11  ;;  %1452 = vmatprep.subr.bf16.mxu1 %v2152_v12 }
  0x7f   : > { %1410 = vmatpush1.bf16.msra.mxu0 %v2147_v13  ;;  %1453 = vmatpush1.bf16.msra.mxu1 %v2150_v14 }
  0x80   : > { %1411 = vmatprep.subr.bf16.mxu0 %v2155_v15  ;;  %1454 = vmatprep.subr.bf16.mxu1 %v2158_v16 }
  0x83   : > { %1412 = vmatpush1.bf16.msra.mxu0 %v2153_v17  ;;  %1455 = vmatpush1.bf16.msra.mxu1 %v2156_v18 }
  0x84   : > { %1413 = vmatprep.subr.bf16.mxu0 %v2161_v19  ;;  %1456 = vmatprep.subr.bf16.mxu1 %v2164_v20 }
  0x87   : > { %1414 = vmatpush1.bf16.msra.mxu0 %v2159_v21  ;;  %1457 = vmatpush1.bf16.msra.mxu1 %v2162_v22 }
  0x88   : > { %1415 = vmatprep.subr.bf16.mxu0 %v2167_v23  ;;  %1458 = vmatprep.subr.bf16.mxu1 %v2170_v24 }
  0x8b   : > { %1416 = vmatpush1.bf16.msra.mxu0 %v2165_v25  ;;  %1459 = vmatpush1.bf16.msra.mxu1 %v2168_v26 }
  0x8c   : > { %1417 = vmatprep.subr.bf16.mxu0 %v2173_v27  ;;  %1460 = vmatprep.subr.bf16.mxu1 %v2176_v28 }
  0x8f   : > { %1418 = vmatpush1.bf16.msra.mxu0 %v2171_v29  ;;  %1461 = vmatpush1.bf16.msra.mxu1 %v2174_v30 }
  0x90   : > { %1419 = vmatprep.subr.bf16.mxu0 %v2179_v31  ;;  %1462 = vmatprep.subr.bf16.mxu1 %v2182_v32 }
  0x93   : > { %1420 = vmatpush1.bf16.msra.mxu0 %v2177_v33  ;;  %1463 = vmatpush1.bf16.msra.mxu1 %v2180_v34 }
  0x94   : > { %1421 = vmatprep.subr.bf16.mxu0 %v2185_v35  ;;  %1464 = vmatprep.subr.bf16.mxu1 %v2188_v36 }
  0x97   : > { %1422 = vmatpush1.bf16.msra.mxu0 %v2183_v37  ;;  %1465 = vmatpush1.bf16.msra.mxu1 %v2186_v38 }
  0x98   : > { %1423 = vmatprep.subr.bf16.mxu0 %v2191_v39  ;;  %1466 = vmatprep.subr.bf16.mxu1 %v2194_v40 }
  0x9b   : > { %1424 = vmatpush1.bf16.msra.mxu0 %v2189_v41  ;;  %1467 = vmatpush1.bf16.msra.mxu1 %v2192_v44 }
  0x9c   : > { %1425 = vmatprep.subr.bf16.mxu0 %v2197_v45  ;;  %1468 = vmatprep.subr.bf16.mxu1 %v2200_v46 }
  0x9f   : > { %1426 = vmatpush1.bf16.msra.mxu0 %v2195_v47  ;;  %1469 = vmatpush1.bf16.msra.mxu1 %v2198_v48 }
  0xa0   : > { %1427 = vmatprep.subr.bf16.mxu0 %v2203_v49  ;;  %1470 = vmatprep.subr.bf16.mxu1 %v2206_v50 }
  0xa3   : > { %1428 = vmatpush1.bf16.msra.mxu0 %v2201_v51  ;;  %1471 = vmatpush1.bf16.msra.mxu1 %v2204_v52 }
  0xa4   : > { %1429 = vmatprep.subr.bf16.mxu0 %v2209_v53  ;;  %1472 = vmatprep.subr.bf16.mxu1 %v2212_v54 }
  0xa7   : > { %1430 = vmatpush1.bf16.msra.mxu0 %v2207_v55  ;;  %1473 = vmatpush1.bf16.msra.mxu1 %v2210_v56 }
  0xa8   : > { %1431 = vmatprep.subr.bf16.mxu0 %v2215_v57  ;;  %1474 = vmatprep.subr.bf16.mxu1 %v2218_v58 }
  0xab   : > { %1432 = vmatpush1.bf16.msra.mxu0 %v2213_v60  ;;  %1475 = vmatpush1.bf16.msra.mxu1 %v2216_v61 }
  0xae   : > { %1438 = vmatmul.mubr.bf16.vlgmr.msra.gmra.mrb[0].mxu0 %v1119_v62  ;;  %1481 = vmatmul.mubr.bf16.vlgmr.msra.gmra.mrb[0].mxu1 %v1119_v62 }
 0x181   : > { %v1439_v8 = vpop.f32.mrb[0].mxu0  ;;  %v1482_v9 = vpop.f32.mrb[0].mxu1 }
 0x182   : > { %v1521_v10 = vadd.f32 %v1504_v5, %v1439_v8  ;;  %v1523_v11 = vadd.f32 %v1512_v6, %v1482_v9  ;;  %v1441_v12 = vpop.f32.mrb[1].mxu0  ;;  %v1484_v13 = vpop.f32.mrb[1].mxu1 }
 0x183   : > { %v1522_v14 = vadd.f32 %v1508_v7, %v1441_v12  ;;  %v1524_v15 = vadd.f32 %v1516_v42, %v1484_v13  ;;  %v1443_v16 = vpop.f32.mrb[2].mxu0  ;;  %v1486_v17 = vpop.f32.mrb[2].mxu1 }
 0x184   : > { %v1529_v18 = vmax.f32 %v1521_v10, 0.0  ;;  %v1531_v19 = vmax.f32 %v1523_v11, 0.0  ;;  %v1525_v20 = vadd.f32 %v1504_v5, %v1443_v16  ;;  %v1527_v21 = vadd.f32 %v1512_v6, %v1486_v17  ;;  %v1445_v22 = vpop.f32.mrb[3].mxu0  ;;  %v1488_v23 = vpop.f32.mrb[3].mxu1 }
 0x185   : > { %v1530_v24 = vmax.f32 %v1522_v14, 0.0  ;;  %v1532_v25 = vmax.f32 %v1524_v15, 0.0  ;;  %v1526_v26 = vadd.f32 %v1508_v7, %v1445_v22  ;;  %v1528_v27 = vadd.f32 %v1516_v42, %v1488_v23 }
 0x186   : > { %v1533_v28 = vmax.f32 %v1525_v20, 0.0  ;;  %v1535_v29 = vmax.f32 %v1527_v21, 0.0 }
 0x187   : > { %v1935_v30 = vpack.c.bf16 %v1530_v24, %v1529_v18  ;;  %v1936_v31 = vpack.c.bf16 %v1532_v25, %v1531_v19  ;;  %v1534_v32 = vmax.f32 %v1526_v26, 0.0  ;;  %v1536_v33 = vmax.f32 %v1528_v27, 0.0 }
 0x189   : > { %1561 = vst [vmem:[%s170_s13] sm:$0xff] %v1935_v30  ;;  %1565 = vst.msk [vmem:[%s170_s13 + $0x8] sm:$0xff] %vm1564_vm5, %v1936_v31  ;;  %v1937_v34 = vpack.c.bf16 %v1534_v32, %v1533_v28  ;;  %v1938_v35 = vpack.c.bf16 %v1536_v33, %v1535_v29 }
 0x18b   : > { %1566 = vst [vmem:[%s170_s13 + $0x10] sm:$0x77] %v1937_v34  ;;  %1570 = vst.msk [vmem:[%s170_s13 + $0x18] sm:$0x77] %vm1569_vm6, %v1938_v35 }
 0x18c PF: > { %s13_s12 = sadd.s32 1, %s2227_s12  }
 0x18d   : > { %p10_p4 = scmp.ge.s32.totalorder %s13_s12, 4  }
 0x18f   :  { %12 = sbr.rel (!%p10_p4) target bundleno = 1 (0x1), region = 64 }

// kernel: ae_conv28_forward.12
= control target key start
LH: loop header
LB: loop body
LE: loop exit
PB: predicated region body
PF: predicated region fallthrough
CT: control target
= control target key end

     0   :  { %s1260_s12 = smov 0   ;;  %s1579_s0 = inlined_call_operand.vmem [shape: bf16[2,8,224], index: 0, kind: input, shape index: {}]   ;;  %s1580_s1 = inlined_call_operand.vmem [shape: bf16[3,224,224], index: 1, kind: input, shape index: {}]   ;;  %s1581_s2 = inlined_call_operand.vmem [shape: f32[1,224], index: 2, kind: input, shape index: {}]   ;;  %s1582_s3 = inlined_call_operand.vmem [shape: bf16[2,2,7,224], index: 3, kind: output, shape index: {}]  }
   0x1 LB: > { %s932_s13 = sadd.s32 4294967295, %s1238_s12   ;;  %p936_p0 = scmp.ge.s32.totalorder %s1238_s12, 1  ;;  %s1238_s12 = sphi %s1260_s12, %s13_s12  }
   0x2   : > { %p137_p1 = scmp.lt.s32.totalorder %s1238_s12, 3 }
   0x4   : > { %p138_p2 = pnand %p936_p0, %p137_p1 }
   0x5   : > { %v1104_v0 = vld [vmem:[%s1580_s1 + $0xe4] ss:$8 sps:$4 sm:$0xff] (!%p138_p2)   ;;  %v1106_v1 = vld [vmem:[%s1580_s1 + $0xe0] ss:$8 sps:$4 sm:$0xff] (!%p138_p2)   ;;  %v1107_v2 = vld [vmem:[%s1580_s1 + $0xf4] ss:$8 sps:$4 sm:$0xff] (!%p138_p2)  }
   0x6   : > { %141 = sbr.rel (%p138_p2) target bundleno = 341 (0x155), region = 32  ;;  %364 = vmatprep.subr.bf16.mxu0 (!%p138_p2), %v1104_v0  ;;  %v1109_v3 = vld [vmem:[%s1580_s1 + $0xf0] ss:$8 sps:$4 sm:$0xff] (!%p138_p2)   ;;  %v1110_v4 = vld [vmem:[%s1580_s1 + $0x104] ss:$8 sps:$4 sm:$0xff] (!%p138_p2)   ;;  %p161_p3 = scmp.lt.s32.totalorder (!%p138_p2), %s932_s13, 1 }
   0x7   : > { %365 = vmatpush1.bf16.msra.mxu0 (!%p138_p2), %v1106_v1  ;;  %v1112_v5 = vld [vmem:[%s1580_s1 + $0x100] ss:$8 sps:$4 sm:$0xff] (!%p138_p2)   ;;  %v1113_v6 = vld [vmem:[%s1580_s1 + $0x114] ss:$8 sps:$4 sm:$0xff] (!%p138_p2)   ;;  %v1115_v7 = vld [vmem:[%s1580_s1 + $0x110] ss:$8 sps:$4 sm:$0xff] (!%p138_p2)  }
   0x8   : > { %366 = vmatprep.subr.bf16.mxu0 (!%p138_p2), %v1107_v2  ;;  %v1116_v8 = vld [vmem:[%s1580_s1 + $0x124] ss:$8 sps:$4 sm:$0xff] (!%p138_p2)   ;;  %v1118_v9 = vld [vmem:[%s1580_s1 + $0x120] ss:$8 sps:$4 sm:$0xff] (!%p138_p2)   ;;  %v1119_v10 = vld [vmem:[%s1580_s1 + $0x134] ss:$8 sps:$4 sm:$0xff] (!%p138_p2)  }
   0x9   : > { %v1121_v11 = vld [vmem:[%s1580_s1 + $0x130] ss:$8 sps:$4 sm:$0xff] (!%p138_p2)   ;;  %v1122_v12 = vld [vmem:[%s1580_s1 + $0x144] ss:$8 sps:$4 sm:$0xff] (!%p138_p2)   ;;  %v1148_v14 = vld [vmem:[%s1580_s1 + $0x1c0] ss:$8 sps:$4 sm:$0xff] (!%p138_p2)  }
   0xa   : > { %v1146_v13 = vld [vmem:[%s1580_s1 + $0x1c4] ss:$8 sps:$4 sm:$0xff] (!%p138_p2)   ;;  %vm360_vm0 = vcmask (!%p138_p2), 785408   ;;  %v1154_v17 = vld [vmem:[%s1580_s1 + $0x1d4] ss:$8 sps:$4 sm:$0xff] (!%p138_p2)   ;;  %vm855_vm1 = vcmask (!%p138_p2), 1043456  }
   0xb   : > { %367 = vmatpush1.bf16.msra.mxu0 (!%p138_p2), %v1109_v3  ;;  %602 = vmatprep.subr.bf16.mxu1 (!%p138_p2), %v1146_v13  ;;  %v1156_v18 = vld [vmem:[%s1580_s1 + $0x1d0] ss:$8 sps:$4 sm:$0xff] (!%p138_p2)   ;;  %v1124_v19 = vld [vmem:[%s1580_s1 + $0x140] ss:$8 sps:$4 sm:$0xff] (!%p138_p2)   ;;  %v1125_v20 = vld [vmem:[%s1580_s1 + $0x154] ss:$8 sps:$4 sm:$0xff] (!%p138_p2)  }
   0xc   : > { %368 = vmatprep.subr.bf16.mxu0 (!%p138_p2), %v1110_v4  ;;  %603 = vmatpush1.bf16.msra.mxu1 (!%p138_p2), %v1148_v14  ;;  %v1160_v21 = vld [vmem:[%s1580_s1 + $0x1e4] ss:$8 sps:$4 sm:$0xff] (!%p138_p2)   ;;  %v1127_v22 = vld [vmem:[%s1580_s1 + $0x150] ss:$8 sps:$4 sm:$0xff] (!%p138_p2)   ;;  %v1162_v23 = vld [vmem:[%s1580_s1 + $0x1e0] ss:$8 sps:$4 sm:$0xff] (!%p138_p2)  }
   0xd   : > { %s1588_s13 = smov (!%p161_p3, %s932_s13), 1  ;;  %604 = vmatprep.subr.bf16.mxu1 %v1154_v17  ;;  %v1166_v24 = vld [vmem:[%s1580_s1 + $0x1f4] ss:$8 sps:$4 sm:$0xff]   ;;  %v1128_v25 = vld [vmem:[%s1580_s1 + $0x164] ss:$8 sps:$4 sm:$0xff]   ;;  %vm858_vm3 = vcmask 785412  }
   0xe   : > { %s1092_s5 = sshll.u32 %s1588_s13, 3  ;;  %v1130_v26 = vld [vmem:[%s1580_s1 + $0x160] ss:$8 sps:$4 sm:$0xff]   ;;  %v1168_v27 = vld [vmem:[%s1580_s1 + $0x1f0] ss:$8 sps:$4 sm:$0xff]   ;;  %s1093_s11 = sshll.u32 %s1588_s13, 4 }
   0xf   : > { %369 = vmatpush1.bf16.msra.mxu0 %v1112_v5  ;;  %s165_s14 = scalar_lea.vmem %s1579_s0, %s1092_s5  ;;  %v1172_v28 = vld [vmem:[%s1580_s1 + $0x204] ss:$8 sps:$4 sm:$0xff]   ;;  %v1131_v29 = vld [vmem:[%s1580_s1 + $0x174] ss:$8 sps:$4 sm:$0xff]   ;;  %v1133_v30 = vld [vmem:[%s1580_s1 + $0x170] ss:$8 sps:$4 sm:$0xff]   ;;  %s170_s16 = scalar_lea.vmem %s1582_s3, %s1093_s11 }
  0x10   : > { %370 = vmatprep.subr.bf16.mxu0 %v1113_v6  ;;  %v1319_v15 = vld [vmem:[%s165_s14] sm:$0xff]  ;;  %605 = vmatpush1.bf16.msra.mxu1 %v1156_v18  ;;  %v1178_v32 = vld [vmem:[%s1580_s1 + $0x214] ss:$8 sps:$4 sm:$0xff]   ;;  %v1180_v35 = vld [vmem:[%s1580_s1 + $0x210] ss:$8 sps:$4 sm:$0xff]  }
  0x11   : > { %v1323_v16 = vcombine.high %v1319_v15, %v1319_v15  ;;  %606 = vmatprep.subr.bf16.mxu1 %v1160_v21  ;;  %v1174_v31 = vld [vmem:[%s1580_s1 + $0x200] ss:$8 sps:$4 sm:$0xff]   ;;  %v1134_v33 = vld [vmem:[%s1580_s1 + $0x184] ss:$8 sps:$4 sm:$0xff]   ;;  %v1137_v37 = vld [vmem:[%s1580_s1 + $0x194] ss:$8 sps:$4 sm:$0xff]   ;;  %v1432_v53 = vcombine.low %v1319_v15, %v1319_v15 }
  0x12   : > { %v1136_v34 = vld [vmem:[%s1580_s1 + $0x180] ss:$8 sps:$4 sm:$0xff]   ;;  %v1184_v36 = vld [vmem:[%s1580_s1 + $0x224] ss:$8 sps:$4 sm:$0xff]   ;;  %v1139_v38 = vld [vmem:[%s1580_s1 + $0x190] ss:$8 sps:$4 sm:$0xff]  }
  0x13   : > { %371 = vmatpush1.bf16.msra.mxu0 %v1115_v7  ;;  %999 = vmatprep.mubr.msk.bf16.mxu0 %vm360_vm0, %v1323_v16  ;;  %v1186_v39 = vld [vmem:[%s1580_s1 + $0x220] ss:$8 sps:$4 sm:$0xff]   ;;  %v1190_v40 = vld [vmem:[%s1580_s1 + $0x234] ss:$8 sps:$4 sm:$0xff]   ;;  %v1140_v41 = vld [vmem:[%s1580_s1 + $0x1a4] ss:$8 sps:$4 sm:$0xff]  }
  0x14   : > { %372 = vmatprep.subr.bf16.mxu0 %v1116_v8  ;;  %1056 = vmatprep.mubr.msk.bf16.mxu1 %vm360_vm0, %v1323_v16  ;;  %v1142_v42 = vld [vmem:[%s1580_s1 + $0x1a0] ss:$8 sps:$4 sm:$0xff]   ;;  %v1192_v43 = vld [vmem:[%s1580_s1 + $0x230] ss:$8 sps:$4 sm:$0xff]   ;;  %v1196_v44 = vld [vmem:[%s1580_s1 + $0x244] ss:$8 sps:$4 sm:$0xff]  }
  0x15   : > { %607 = vmatpush1.bf16.msra.mxu1 %v1162_v23  ;;  %v1143_v45 = vld [vmem:[%s1580_s1 + $0x1b4] ss:$8 sps:$4 sm:$0xff]   ;;  %v652_v46 = vshll.u32 %v1323_v16, 16  ;;  %v1145_v47 = vld [vmem:[%s1580_s1 + $0x1b0] ss:$8 sps:$4 sm:$0xff]   ;;  %v650_v51 = vshrl.u32 %v1323_v16, 16 }
  0x16   : > { %608 = vmatprep.subr.bf16.mxu1 %v1166_v24  ;;  %v1198_v48 = vld [vmem:[%s1580_s1 + $0x240] ss:$8 sps:$4 sm:$0xff]   ;;  %v1202_v49 = vld [vmem:[%s1580_s1 + $0x254] ss:$8 sps:$4 sm:$0xff]   ;;  %v1153_v50 = vld [vmem:[%s1580_s1 + $0x4] ss:$8 sps:$4 sm:$0xff]  }
  0x17   : > { %373 = vmatpush1.bf16.msra.mxu0 %v1118_v9  ;;  %v654_v52 = vrot.slane %v652_v46, 1  ;;  %v1151_v54 = vld [vmem:[%s1580_s1] ss:$8 sps:$4 sm:$0xff]   ;;  %v1204_v55 = vld [vmem:[%s1580_s1 + $0x250] ss:$8 sps:$4 sm:$0xff]   ;;  %v646_v24 = vshll.u32 %v1432_v53, 16 }
  0x18   : > { %374 = vmatprep.subr.bf16.mxu0 %v1119_v10  ;;  %v1208_v56 = vld [vmem:[%s1580_s1 + $0x264] ss:$8 sps:$4 sm:$0xff]   ;;  %v1159_v57 = vld [vmem:[%s1580_s1 + $0x14] ss:$8 sps:$4 sm:$0xff]   ;;  %v1210_v59 = vld [vmem:[%s1580_s1 + $0x260] ss:$8 sps:$4 sm:$0xff]  }
  0x19   : > { %609 = vmatpush1.bf16.msra.mxu1 %v1168_v27  ;;  %v655_v58 = vor.u32 %v654_v52, %v650_v51  ;;  %v1157_v60 = vld [vmem:[%s1580_s1 + $0x10] ss:$8 sps:$4 sm:$0xff]   ;;  %v1214_v61 = vld [vmem:[%s1580_s1 + $0x274] ss:$8 sps:$4 sm:$0xff]   ;;  %v1165_v62 = vld [vmem:[%s1580_s1 + $0x24] ss:$8 sps:$4 sm:$0xff]  }
  0x1a   : > { %610 = vmatprep.subr.bf16.mxu1 %v1172_v28  ;;  %v1216_v63 = vld [vmem:[%s1580_s1 + $0x270] ss:$8 sps:$4 sm:$0xff]   ;;  %v1163_v0 = vld [vmem:[%s1580_s1 + $0x20] ss:$8 sps:$4 sm:$0xff]   ;;  %v1220_v1 = vld [vmem:[%s1580_s1 + $0x284] ss:$8 sps:$4 sm:$0xff]  }
  0x1b   : > { %375 = vmatpush1.bf16.msra.mxu0 %v1121_v11  ;;  %v1171_v2 = vld [vmem:[%s1580_s1 + $0x34] ss:$8 sps:$4 sm:$0xff]   ;;  %v1222_v3 = vld [vmem:[%s1580_s1 + $0x280] ss:$8 sps:$4 sm:$0xff]   ;;  %v1169_v4 = vld [vmem:[%s1580_s1 + $0x30] ss:$8 sps:$4 sm:$0xff]  }
  0x1c   : > { %376 = vmatprep.subr.bf16.mxu0 %v1122_v12  ;;  %v1226_v5 = vld [vmem:[%s1580_s1 + $0x294] ss:$8 sps:$4 sm:$0xff]   ;;  %v1177_v6 = vld [vmem:[%s1580_s1 + $0x44] ss:$8 sps:$4 sm:$0xff]   ;;  %v1228_v7 = vld [vmem:[%s1580_s1 + $0x290] ss:$8 sps:$4 sm:$0xff]  }
  0x1d   : > { %611 = vmatpush1.bf16.msra.mxu1 %v1174_v31  ;;  %v1175_v8 = vld [vmem:[%s1580_s1 + $0x40] ss:$8 sps:$4 sm:$0xff]   ;;  %v1183_v9 = vld [vmem:[%s1580_s1 + $0x54] ss:$8 sps:$4 sm:$0xff]   ;;  %v1181_v10 = vld [vmem:[%s1580_s1 + $0x50] ss:$8 sps:$4 sm:$0xff]   ;;  %v204_v31 = vlaneseq }
  0x1e   : > { %612 = vmatprep.subr.bf16.mxu1 %v1178_v32  ;;  %v1189_v11 = vld [vmem:[%s1580_s1 + $0x64] ss:$8 sps:$4 sm:$0xff]   ;;  %v1187_v12 = vld [vmem:[%s1580_s1 + $0x60] ss:$8 sps:$4 sm:$0xff]   ;;  %v1195_v13 = vld [vmem:[%s1580_s1 + $0x74] ss:$8 sps:$4 sm:$0xff]  }
  0x1f   : > { %377 = vmatpush1.bf16.msra.mxu0 %v1124_v19  ;;  %v1193_v14 = vld [vmem:[%s1580_s1 + $0x70] ss:$8 sps:$4 sm:$0xff]   ;;  %v1201_v15 = vld [vmem:[%s1580_s1 + $0x84] ss:$8 sps:$4 sm:$0xff]   ;;  %v1199_v16 = vld [vmem:[%s1580_s1 + $0x80] ss:$8 sps:$4 sm:$0xff]  }
  0x20   : > { %378 = vmatprep.subr.bf16.mxu0 %v1125_v20  ;;  %v1207_v17 = vld [vmem:[%s1580_s1 + $0x94] ss:$8 sps:$4 sm:$0xff]   ;;  %v1205_v18 = vld [vmem:[%s1580_s1 + $0x90] ss:$8 sps:$4 sm:$0xff]   ;;  %v1213_v19 = vld [vmem:[%s1580_s1 + $0xa4] ss:$8 sps:$4 sm:$0xff]  }
  0x21   : > { %613 = vmatpush1.bf16.msra.mxu1 %v1180_v35  ;;  %v1211_v20 = vld [vmem:[%s1580_s1 + $0xa0] ss:$8 sps:$4 sm:$0xff]   ;;  %v1219_v21 = vld [vmem:[%s1580_s1 + $0xb4] ss:$8 sps:$4 sm:$0xff]   ;;  %v1225_v23 = vld [vmem:[%s1580_s1 + $0xc4] ss:$8 sps:$4 sm:$0xff]  }
  0x22   : > { %614 = vmatprep.subr.bf16.mxu1 %v1184_v36  ;;  %v644_v27 = vshrl.u32 %v1432_v53, 16  ;;  %v648_v28 = vrot.slane %v646_v24, 1  ;;  %v205_v32 = vshrl.u32 %v204_v31, 7  ;;  %vm856_vm2 = vsmask.f32 3328 }
  0x23   : > { %379 = vmatpush1.bf16.msra.mxu0 %v1127_v22  ;;  %v1217_v22 = vld [vmem:[%s1580_s1 + $0xb0] ss:$8 sps:$4 sm:$0xff]   ;;  %vm859_vm4 = vsmask.f32 7424  ;;  %vm1551_vm5 = vmand %vm855_vm1, %vm856_vm2 }
  0x24   : > { %380 = vmatprep.subr.bf16.mxu0 %v1128_v25  ;;  %v1223_v25 = vld [vmem:[%s1580_s1 + $0xc0] ss:$8 sps:$4 sm:$0xff]   ;;  %v210_v35 = vsub.s32 1, %v205_v32  ;;  %vm1558_vm6 = vmand %vm858_vm3, %vm859_vm4 }
  0x25   : > { %615 = vmatpush1.bf16.msra.mxu1 %v1186_v39  ;;  %vm861_vm7 = vmor %vm1558_vm6, %vm1551_vm5 }
  0x26   : > { %616 = vmatprep.subr.bf16.mxu1 %v1190_v40 }
  0x27   : > { %381 = vmatpush1.bf16.msra.mxu0 %v1130_v26  ;;  %v1231_v26 = vld [vmem:[%s1580_s1 + $0xd4] ss:$8 sps:$4 sm:$0xff]  }
  0x28   : > { %382 = vmatprep.subr.bf16.mxu0 %v1131_v29  ;;  %v1229_v29 = vld [vmem:[%s1580_s1 + $0xd0] ss:$8 sps:$4 sm:$0xff]  }
  0x29   : > { %617 = vmatpush1.bf16.msra.mxu1 %v1192_v43 }
  0x2a   : > { %618 = vmatprep.subr.bf16.mxu1 %v1196_v44 }
  0x2b   : > { %383 = vmatpush1.bf16.msra.mxu0 %v1133_v30  ;;  %v649_v30 = vor.u32 %v648_v28, %v644_v27 }
  0x2c   : > { %384 = vmatprep.subr.bf16.mxu0 %v1134_v33  ;;  %v206_v33 = vsub.s32 0, %v205_v32 }
  0x2d   : > { %619 = vmatpush1.bf16.msra.mxu1 %v1198_v48  ;;  %v862_v48 = vld [vmem:[%s170_s16] sm:$0xff] }
  0x2e   : > { %620 = vmatprep.subr.bf16.mxu1 %v1202_v49 }
  0x2f   : > { %385 = vmatpush1.bf16.msra.mxu0 %v1136_v34  ;;  %v173_v34 = vld [vmem:[%s1581_s2] sm:$0x3] }
  0x30   : > { %386 = vmatprep.subr.bf16.mxu0 %v1137_v37  ;;  %v207_v36 = vrot.slane %v173_v34, %v206_v33  ;;  %v211_v37 = vrot.slane %v173_v34, %v210_v35 }
  0x31   : > { %621 = vmatpush1.bf16.msra.mxu1 %v1204_v55 }
  0x32   : > { %622 = vmatprep.subr.bf16.mxu1 %v1208_v56 }
  0x33   : > { %387 = vmatpush1.bf16.msra.mxu0 %v1139_v38 }
  0x34   : > { %388 = vmatprep.subr.bf16.mxu0 %v1140_v41 }
  0x35   : > { %623 = vmatpush1.bf16.msra.mxu1 %v1210_v59 }
  0x36   : > { %624 = vmatprep.subr.bf16.mxu1 %v1214_v61 }
  0x37   : > { %389 = vmatpush1.bf16.msra.mxu0 %v1142_v42 }
  0x38   : > { %390 = vmatprep.subr.bf16.mxu0 %v1143_v45 }
  0x39   : > { %625 = vmatpush1.bf16.msra.mxu1 %v1216_v63 }
  0x3a   : > { %626 = vmatprep.subr.bf16.mxu1 %v1220_v1  ;;  %v1088_v1 = vld [vmem:[%s170_s16 + $0x8] sm:$0xff] }
  0x3b   : > { %391 = vmatpush1.bf16.msra.mxu0 %v1145_v47 }
  0x3c   : > { %800 = vmatprep.subr.bf16.mxu0 %v1153_v50 }
  0x3d   : > { %627 = vmatpush1.bf16.msra.mxu1 %v1222_v3 }
  0x3e   : > { %397 = vmatmul.mubr.bf16.vlgmr.msra.gmra.mrb[0].mxu0 %v1432_v53  ;;  %628 = vmatprep.subr.bf16.mxu1 %v1226_v5 }
  0x3f   : > { %801 = vmatpush1.bf16.msra.mxu0 %v1151_v54  ;;  %1085 = vmatprep.mubr.msk.bf16.mxu0 %vm360_vm0, %v655_v58 }
  0x40   : > { %802 = vmatprep.subr.bf16.mxu0 %v1159_v57 }
  0x41   : > { %629 = vmatpush1.bf16.msra.mxu1 %v1228_v7 }
  0x43   : > { %803 = vmatpush1.bf16.msra.mxu0 %v1157_v60 }
  0x44   : > { %804 = vmatprep.subr.bf16.mxu0 %v1165_v62  ;;  %635 = vmatmul.mubr.bf16.vlgmr.msra.gmra.mrb[0].mxu1 %v1432_v53 }
  0x47   : > { %805 = vmatpush1.bf16.msra.mxu0 %v1163_v0 }
  0x48   : > { %806 = vmatprep.subr.bf16.mxu0 %v1171_v2 }
  0x4b   : > { %807 = vmatpush1.bf16.msra.mxu0 %v1169_v4 }
  0x4c   : > { %808 = vmatprep.subr.bf16.mxu0 %v1177_v6 }
  0x4f   : > { %809 = vmatpush1.bf16.msra.mxu0 %v1175_v8 }
  0x50   : > { %810 = vmatprep.subr.bf16.mxu0 %v1183_v9 }
  0x53   : > { %811 = vmatpush1.bf16.msra.mxu0 %v1181_v10 }
  0x54   : > { %812 = vmatprep.subr.bf16.mxu0 %v1189_v11 }
  0x57   : > { %813 = vmatpush1.bf16.msra.mxu0 %v1187_v12 }
  0x58   : > { %814 = vmatprep.subr.bf16.mxu0 %v1195_v13 }
  0x5b   : > { %815 = vmatpush1.bf16.msra.mxu0 %v1193_v14 }
  0x5c   : > { %816 = vmatprep.subr.bf16.mxu0 %v1201_v15 }
  0x5f   : > { %817 = vmatpush1.bf16.msra.mxu0 %v1199_v16 }
  0x60   : > { %818 = vmatprep.subr.bf16.mxu0 %v1207_v17 }
  0x63   : > { %819 = vmatpush1.bf16.msra.mxu0 %v1205_v18 }
  0x64   : > { %820 = vmatprep.subr.bf16.mxu0 %v1213_v19 }
  0x67   : > { %821 = vmatpush1.bf16.msra.mxu0 %v1211_v20 }
  0x68   : > { %822 = vmatprep.subr.bf16.mxu0 %v1219_v21 }
  0x6b   : > { %823 = vmatpush1.bf16.msra.mxu0 %v1217_v22 }
  0x6c   : > { %824 = vmatprep.subr.bf16.mxu0 %v1225_v23 }
  0x6f   : > { %825 = vmatpush1.bf16.msra.mxu0 %v1223_v25 }
  0x70   : > { %826 = vmatprep.subr.bf16.mxu0 %v1231_v26 }
  0x73   : > { %827 = vmatpush1.bf16.msra.mxu0 %v1229_v29 }
  0x76   : > { %833 = vmatmul.mubr.bf16.vlgmr.msra.gmra.mrb[4].mxu0 %v649_v30 }
 0x111   : > { %v398_v38 = vpop.f32.mrb[0].mxu0 }
 0x112   : > { %v399_v39 = vadd.f32 %v398_v38, %v207_v36  ;;  %v400_v40 = vpop.f32.mrb[1].mxu0 }
 0x113   : > { %v401_v42 = vadd.f32 %v400_v40, %v211_v37  ;;  %v402_v44 = vpop.f32.mrb[2].mxu0 }
 0x114   : > { %v843_v45 = vmax.f32 %v399_v39, 0.0  ;;  %v403_v46 = vpop.f32.mrb[3].mxu0 }
 0x115   : > { %v844_v47 = vmax.f32 %v401_v42, 0.0 }
 0x117   : > { %v1094_v49 = vpack.c.bf16 %v844_v47, %v843_v45  ;;  %v636_v51 = vpop.f32.mrb[0].mxu1 }
 0x118   : > { %v638_v52 = vpop.f32.mrb[1].mxu1 }
 0x119   : > { %v863_v50 = vsel %vm861_vm7, %v1094_v49, %v862_v48  ;;  %v640_v53 = vpop.f32.mrb[2].mxu1 }
 0x11a   : > { %864 = vst [vmem:[%s170_s16] sm:$0xff] %v863_v50  ;;  %v641_v54 = vpop.f32.mrb[3].mxu1 }
 0x149   : > { %v834_v55 = vpop.f32.mrb[4].mxu0 }
 0x14a   : > { %v835_v56 = vadd.f32 %v834_v55, %v636_v51  ;;  %v836_v57 = vpop.f32.mrb[5].mxu0 }
 0x14b   : > { %v837_v58 = vadd.f32 %v836_v57, %v638_v52  ;;  %v838_v59 = vpop.f32.mrb[6].mxu0 }
 0x14c   : > { %v841_v60 = vadd.f32 %v835_v56, %v207_v36  ;;  %v839_v61 = vpop.f32.mrb[7].mxu0 }
 0x14d   : > { %v842_v62 = vadd.f32 %v837_v58, %v211_v37 }
 0x14e   : > { %v845_v63 = vmax.f32 %v841_v60, 0.0 }
 0x14f   : > { %v846_v0 = vmax.f32 %v842_v62, 0.0 }
 0x151   : > { %v1095_v2 = vpack.c.bf16 %v846_v0, %v845_v63 }
 0x153   : > { %v875_v3 = vsel %vm861_vm7, %v1095_v2, %v1088_v1 }
 0x154   : > { %1089 = vst [vmem:[%s170_s16 + $0x8] sm:$0xff] %v875_v3 }
 0x155 PF: > { %s13_s12 = sadd.s32 1, %s1238_s12  }
 0x156   : > { %p10_p4 = scmp.ge.s32.totalorder %s13_s12, 4  }
 0x158   :  { %12 = sbr.rel (!%p10_p4) target bundleno = 1 (0x1), region = 65 }

// kernel: ae_conv28_forward.11
= control target key start
LH: loop header
LB: loop body
LE: loop exit
PB: predicated region body
PF: predicated region fallthrough
CT: control target
= control target key end

     0   :  { %v2480_v22 = vmov 1966171168   ;;  %v244_v24 = vlaneseq  ;;  %vm2482_vm0 = vmmov 0   ;;  %vm928_vm1 = vcmask 261120   ;;  %s3025_s1 = inlined_call_operand.vmem [shape: bf16[1568,32], index: 1, kind: input, shape index: {}]   ;;  %s3026_s0 = inlined_call_operand.vmem [shape: bf16[2,1568], index: 0, kind: input, shape index: {}]   ;;  %s3027_s3 = inlined_call_operand.vmem [shape: bf16[32,32], index: 3, kind: input, shape index: {}]   ;;  %s3028_s5 = inlined_call_operand.vmem [shape: bf16[32,32], index: 5, kind: input, shape index: {}]   ;;  %s3029_s2 = inlined_call_operand.vmem [shape: f32[1,32], index: 2, kind: input, shape index: {}]   ;;  %s3030_s7 = inlined_call_operand.vmem [shape: bf16[32,1568], index: 7, kind: input, shape index: {}]   ;;  %s3031_s4 = inlined_call_operand.vmem [shape: f32[1,32], index: 4, kind: input, shape index: {}]   ;;  %s3032_s6 = inlined_call_operand.vmem [shape: f32[1,32], index: 6, kind: input, shape index: {}]   ;;  %s3033_s8 = inlined_call_operand.vmem [shape: f32[1,1568], index: 8, kind: input, shape index: {}]   ;;  %s3034_s9 = inlined_call_operand.vmem [shape: bf16[2,1568], index: 9, kind: output, shape index: {}]  }
   0x1   :  { %v2338_v0 = vld [vmem:[%s3025_s1 + $0x40] sm:$0xff]   ;;  %v2342_v4 = vld [vmem:[%s3025_s1 + $0x48] sm:$0xff]   ;;  %v2346_v8 = vld [vmem:[%s3025_s1 + $0x50] sm:$0xff]   ;;  %v242_v23 = vunpack.c.l.s4 %v2480_v22  ;;  %vm1997_vm2 = vcmask 1040384   ;;  %vm1998_vm3 = vcmask 1041409   ;;  %vm2000_vm5 = vcmask 1042434  }
   0x2   :  { %v2339_v1 = vld [vmem:[%s3025_s1] sm:$0xff]   ;;  %2158 = vmatprep.subr.bf16.mxu0 %v2338_v0  ;;  %v2343_v5 = vld [vmem:[%s3025_s1 + $0x8] sm:$0xff]   ;;  %v2347_v9 = vld [vmem:[%s3025_s1 + $0x10] sm:$0xff]   ;;  %v2612_v30 = vshrl.u32 %v244_v24, 7  ;;  %vm2002_vm7 = vcmask 1043459   ;;  %vm2004_vm9 = vcmask 258052  }
   0x3   :  { %v2340_v2 = vld [vmem:[%s3025_s1 + $0xc0] sm:$0xff]   ;;  %2159 = vmatpush3.bf16.msra.mxu0 %v2339_v1  ;;  %v2344_v6 = vld [vmem:[%s3025_s1 + $0xc8] sm:$0xff]   ;;  %v2348_v10 = vld [vmem:[%s3025_s1 + $0xd0] sm:$0xff]   ;;  %v243_v29 = vunpack.c.0.s8 %v242_v23 }
   0x4   :  { %v2341_v3 = vld [vmem:[%s3025_s1 + $0x80] sm:$0xff]   ;;  %2180 = vmatprep.subr.bf16.mxu1 %v2340_v2  ;;  %2160 = vmatprep.subr.bf16.mxu0 %v2342_v4  ;;  %v2345_v7 = vld [vmem:[%s3025_s1 + $0x88] sm:$0xff]   ;;  %v2349_v11 = vld [vmem:[%s3025_s1 + $0x90] sm:$0xff]  }
   0x5   :  { %2181 = vmatpush3.bf16.msra.mxu1 %v2341_v3  ;;  %v2350_v12 = vld [vmem:[%s3025_s1 + $0x58] sm:$0xff]   ;;  %v2354_v16 = vld [vmem:[%s3025_s1 + $0x60] sm:$0xff]   ;;  %v2358_v20 = vld [vmem:[%s3025_s1 + $0x68] sm:$0xff]   ;;  %v2627_v35 = vsub.s32 %v243_v29, %v2612_v30 }
   0x6   :  { %2182 = vmatprep.subr.bf16.mxu1 %v2344_v6  ;;  %v2351_v13 = vld [vmem:[%s3025_s1 + $0x18] sm:$0xff]   ;;  %v2355_v17 = vld [vmem:[%s3025_s1 + $0x20] sm:$0xff]   ;;  %v2359_v21 = vld [vmem:[%s3025_s1 + $0x28] sm:$0xff]  }
   0x7   :  { %2161 = vmatpush3.bf16.msra.mxu0 %v2343_v5  ;;  %v2352_v14 = vld [vmem:[%s3025_s1 + $0xd8] sm:$0xff]   ;;  %v2356_v18 = vld [vmem:[%s3025_s1 + $0xe0] sm:$0xff]   ;;  %v2360_v25 = vld [vmem:[%s3025_s1 + $0xe8] sm:$0xff]  }
   0x8   :  { %2162 = vmatprep.subr.bf16.mxu0 %v2346_v8  ;;  %v2353_v15 = vld [vmem:[%s3025_s1 + $0x98] sm:$0xff]   ;;  %v2357_v19 = vld [vmem:[%s3025_s1 + $0xa0] sm:$0xff]   ;;  %v2361_v26 = vld [vmem:[%s3025_s1 + $0xa8] sm:$0xff]  }
   0x9   :  { %2183 = vmatpush3.bf16.msra.mxu1 %v2345_v7  ;;  %v2362_v27 = vld [vmem:[%s3025_s1 + $0x70] sm:$0xff]   ;;  %v2366_v33 = vld [vmem:[%s3025_s1 + $0x78] sm:$0xff]   ;;  %v33_v38 = vld [vmem:[%s3026_s0] sm:$0xff] }
   0xa   :  { %2184 = vmatprep.subr.bf16.mxu1 %v2348_v10  ;;  %v2363_v28 = vld [vmem:[%s3025_s1 + $0x30] sm:$0xff]   ;;  %v2367_v34 = vld [vmem:[%s3025_s1 + $0x38] sm:$0xff]   ;;  %v240_v39 = vcombine.high %v33_v38, %v33_v38  ;;  %v247_v40 = vrot.slane %v33_v38, %v2627_v35  ;;  %v2372_v41 = vld [vmem:[%s3025_s1 + $0x140] sm:$0xff]  }
   0xb   :  { %2163 = vmatpush3.bf16.msra.mxu0 %v2347_v9  ;;  %v2364_v31 = vld [vmem:[%s3025_s1 + $0xf0] sm:$0xff]   ;;  %v2368_v36 = vld [vmem:[%s3025_s1 + $0xf8] sm:$0xff]   ;;  %v2374_v44 = vld [vmem:[%s3025_s1 + $0x1c0] sm:$0xff]  }
   0xc   :  { %2164 = vmatprep.subr.bf16.mxu0 %v2350_v12  ;;  %v2365_v32 = vld [vmem:[%s3025_s1 + $0xb0] sm:$0xff]   ;;  %v2369_v37 = vld [vmem:[%s3025_s1 + $0xb8] sm:$0xff]   ;;  %v255_v42 = vcombine.high %v247_v40, %v247_v40  ;;  %v263_v43 = vrot.slane %v247_v40, %v2627_v35  ;;  %v2647_v45 = vrot.slane %v240_v39, %v2627_v35  ;;  %v2373_v47 = vld [vmem:[%s3025_s1 + $0x100] sm:$0xff]  }
   0xd   :  { %2185 = vmatpush3.bf16.msra.mxu1 %v2349_v11  ;;  %v2376_v50 = vld [vmem:[%s3025_s1 + $0x148] sm:$0xff]   ;;  %v2375_v52 = vld [vmem:[%s3025_s1 + $0x180] sm:$0xff]   ;;  %v2380_v57 = vld [vmem:[%s3025_s1 + $0x150] sm:$0xff]  }
   0xe   :  { %2186 = vmatprep.subr.bf16.mxu1 %v2352_v14  ;;  %v277_v46 = vrot.slane %v255_v42, %v2627_v35  ;;  %v256_v48 = vcombine.high %v2647_v45, %v2647_v45  ;;  %v285_v49 = vcombine.high %v263_v43, %v263_v43  ;;  %v2378_v54 = vld [vmem:[%s3025_s1 + $0x1c8] sm:$0xff]   ;;  %v2382_v59 = vld [vmem:[%s3025_s1 + $0x1d0] sm:$0xff]   ;;  %v2384_v61 = vld [vmem:[%s3025_s1 + $0x158] sm:$0xff]  }
   0xf   :  { %2165 = vmatpush3.bf16.msra.mxu0 %v2351_v13  ;;  %v2377_v55 = vld [vmem:[%s3025_s1 + $0x108] sm:$0xff]   ;;  %v2381_v60 = vld [vmem:[%s3025_s1 + $0x110] sm:$0xff]   ;;  %v2386_v63 = vld [vmem:[%s3025_s1 + $0x1d8] sm:$0xff]  }
  0x10   :  { %2166 = vmatprep.subr.bf16.mxu0 %v2354_v16  ;;  %964 = vmatprep.mubr.bf16.mxu0 %v277_v46  ;;  %v287_v51 = vcombine.high %v277_v46, %v277_v46  ;;  %v284_v53 = vrot.slane %v256_v48, %v2627_v35  ;;  %v2379_v58 = vld [vmem:[%s3025_s1 + $0x188] sm:$0xff]   ;;  %v2383_v62 = vld [vmem:[%s3025_s1 + $0x190] sm:$0xff]   ;;  %v2385_v0 = vld [vmem:[%s3025_s1 + $0x118] sm:$0xff]  }
  0x11   :  { %2187 = vmatpush3.bf16.msra.mxu1 %v2353_v15  ;;  %v2388_v1 = vld [vmem:[%s3025_s1 + $0x160] sm:$0xff]   ;;  %v2387_v2 = vld [vmem:[%s3025_s1 + $0x198] sm:$0xff]   ;;  %v2707_v5 = vld [vmem:[%s3026_s0 + $0x8] sm:$0x1f] }
  0x12   :  { %2188 = vmatprep.subr.bf16.mxu1 %v2356_v18  ;;  %1004 = vmatprep.mubr.bf16.mxu1 %v287_v51  ;;  %v288_v56 = vcombine.high %v284_v53, %v284_v53  ;;  %v2390_v3 = vld [vmem:[%s3025_s1 + $0x1e0] sm:$0xff]   ;;  %v2392_v6 = vld [vmem:[%s3025_s1 + $0x168] sm:$0xff]   ;;  %v2396_v10 = vld [vmem:[%s3025_s1 + $0x170] sm:$0xff]   ;;  %v2729_v12 = vrot.slane %v2707_v5, %v2627_v35 }
  0x13   :  { %2167 = vmatpush3.bf16.msra.mxu0 %v2355_v17  ;;  %v2389_v4 = vld [vmem:[%s3025_s1 + $0x120] sm:$0xff]   ;;  %v2394_v8 = vld [vmem:[%s3025_s1 + $0x1e8] sm:$0xff]   ;;  %v2398_v13 = vld [vmem:[%s3025_s1 + $0x1f0] sm:$0xff]  }
  0x14   :  { %2168 = vmatprep.subr.bf16.mxu0 %v2358_v20  ;;  %v2391_v7 = vld [vmem:[%s3025_s1 + $0x1a0] sm:$0xff]   ;;  %v2393_v9 = vld [vmem:[%s3025_s1 + $0x128] sm:$0xff]   ;;  %v2397_v14 = vld [vmem:[%s3025_s1 + $0x130] sm:$0xff]   ;;  %v304_v17 = vcombine.high %v2729_v12, %v2729_v12  ;;  %v270_v20 = vrot.slane %v2647_v45, %v2627_v35 }
  0x15   :  { %2189 = vmatpush3.bf16.msra.mxu1 %v2357_v19  ;;  %v2395_v11 = vld [vmem:[%s3025_s1 + $0x1a8] sm:$0xff]   ;;  %v2400_v15 = vld [vmem:[%s3025_s1 + $0x178] sm:$0xff]   ;;  %v2399_v16 = vld [vmem:[%s3025_s1 + $0x1b0] sm:$0xff]  }
  0x16   :  { %2190 = vmatprep.subr.bf16.mxu1 %v2360_v25  ;;  %v2402_v18 = vld [vmem:[%s3025_s1 + $0x1f8] sm:$0xff]   ;;  %v325_v23 = vrot.slane %v304_v17, %v2627_v35  ;;  %v2406_v24 = vld [vmem:[%s3025_s1 + $0x2c0] sm:$0xff]   ;;  %v2415_v39 = vld [vmem:[%s3025_s1 + $0x290] sm:$0xff]  }
  0x17   :  { %2169 = vmatpush3.bf16.msra.mxu0 %v2359_v21  ;;  %v2401_v19 = vld [vmem:[%s3025_s1 + $0x138] sm:$0xff]   ;;  %v2404_v21 = vld [vmem:[%s3025_s1 + $0x240] sm:$0xff]   ;;  %v2424_v46 = vld [vmem:[%s3025_s1 + $0x268] sm:$0xff]  }
  0x18   :  { %2170 = vmatprep.subr.bf16.mxu0 %v2362_v27  ;;  %v2403_v22 = vld [vmem:[%s3025_s1 + $0x1b8] sm:$0xff]   ;;  %v2405_v25 = vld [vmem:[%s3025_s1 + $0x200] sm:$0xff]   ;;  %v2408_v27 = vld [vmem:[%s3025_s1 + $0x248] sm:$0xff]   ;;  %v327_v29 = vcombine.high %v325_v23, %v325_v23 }
  0x19   :  { %2191 = vmatpush3.bf16.msra.mxu1 %v2361_v26  ;;  %v286_v26 = vcombine.high %v270_v20, %v270_v20  ;;  %v2416_v38 = vld [vmem:[%s3025_s1 + $0x258] sm:$0xff]   ;;  %v2420_v42 = vld [vmem:[%s3025_s1 + $0x260] sm:$0xff]   ;;  %v2426_v48 = vld [vmem:[%s3025_s1 + $0x2e8] sm:$0xff]  }
  0x1a   :  { %2192 = vmatprep.subr.bf16.mxu1 %v2364_v31  ;;  %v2410_v31 = vld [vmem:[%s3025_s1 + $0x2c8] sm:$0xff]   ;;  %v2418_v40 = vld [vmem:[%s3025_s1 + $0x2d8] sm:$0xff]   ;;  %v2421_v45 = vld [vmem:[%s3025_s1 + $0x220] sm:$0xff]  }
  0x1b   :  { %2171 = vmatpush3.bf16.msra.mxu0 %v2363_v28  ;;  %v2407_v28 = vld [vmem:[%s3025_s1 + $0x280] sm:$0xff]   ;;  %v2427_v51 = vld [vmem:[%s3025_s1 + $0x2a8] sm:$0xff]   ;;  %vm1999_vm4 = vmor %vm1998_vm3, %vm1997_vm2 }
  0x1c   :  { %2172 = vmatprep.subr.bf16.mxu0 %v2366_v33  ;;  %v2412_v33 = vld [vmem:[%s3025_s1 + $0x250] sm:$0xff]   ;;  %vm2001_vm6 = vmor %vm2000_vm5, %vm1999_vm4 }
  0x1d   :  { %2193 = vmatpush3.bf16.msra.mxu1 %v2365_v32  ;;  %v2409_v32 = vld [vmem:[%s3025_s1 + $0x208] sm:$0xff]   ;;  %vm2003_vm8 = vmor %vm2002_vm7, %vm2001_vm6 }
  0x1e   :  { %2194 = vmatprep.subr.bf16.mxu1 %v2368_v36  ;;  %v2414_v36 = vld [vmem:[%s3025_s1 + $0x2d0] sm:$0xff]   ;;  %vm2005_vm10 = vmor %vm2004_vm9, %vm2003_vm8 }
  0x1f   :  { %2173 = vmatpush3.bf16.msra.mxu0 %v2367_v34  ;;  %v2411_v34 = vld [vmem:[%s3025_s1 + $0x288] sm:$0xff]  }
  0x20   :  { %2202 = vmatprep.subr.bf16.mxu0 %v2372_v41  ;;  %v2417_v41 = vld [vmem:[%s3025_s1 + $0x218] sm:$0xff]  }
  0x21   :  { %2195 = vmatpush3.bf16.msra.mxu1 %v2369_v37  ;;  %v2413_v37 = vld [vmem:[%s3025_s1 + $0x210] sm:$0xff]  }
  0x22   :  { %2224 = vmatprep.subr.bf16.mxu1 %v2374_v44  ;;  %965 = vmatmul.mubr.bf16.vlgmr.msra.gmra.mrb[0].mxu0 %v263_v43  ;;  %v2419_v43 = vld [vmem:[%s3025_s1 + $0x298] sm:$0xff]   ;;  %v2422_v44 = vld [vmem:[%s3025_s1 + $0x2e0] sm:$0xff]  }
  0x23   :  { %2203 = vmatpush3.bf16.msra.mxu0 %v2373_v47  ;;  %1044 = vmatprep.mubr.bf16.mxu0 %v284_v53  ;;  %v2423_v47 = vld [vmem:[%s3025_s1 + $0x2a0] sm:$0xff]   ;;  %v2429_v53 = vld [vmem:[%s3025_s1 + $0x230] sm:$0xff]  }
  0x24   :  { %1005 = vmatmul.mubr.bf16.vlgmr.msra.gmra.mrb[0].mxu1 %v285_v49  ;;  %2204 = vmatprep.subr.bf16.mxu0 %v2376_v50  ;;  %v2425_v49 = vld [vmem:[%s3025_s1 + $0x228] sm:$0xff]   ;;  %v2428_v50 = vld [vmem:[%s3025_s1 + $0x270] sm:$0xff]  }
  0x25   :  { %2225 = vmatpush3.bf16.msra.mxu1 %v2375_v52  ;;  %1084 = vmatprep.mubr.bf16.mxu1 %v288_v56  ;;  %v2430_v52 = vld [vmem:[%s3025_s1 + $0x2f0] sm:$0xff]   ;;  %v2434_v56 = vld [vmem:[%s3025_s1 + $0x2f8] sm:$0xff]  }
  0x26   :  { %2226 = vmatprep.subr.bf16.mxu1 %v2378_v54  ;;  %v2432_v54 = vld [vmem:[%s3025_s1 + $0x278] sm:$0xff]  }
  0x27   :  { %2205 = vmatpush3.bf16.msra.mxu0 %v2377_v55  ;;  %v2431_v55 = vld [vmem:[%s3025_s1 + $0x2b0] sm:$0xff]  }
  0x28   :  { %2206 = vmatprep.subr.bf16.mxu0 %v2380_v57  ;;  %v2433_v57 = vld [vmem:[%s3025_s1 + $0x238] sm:$0xff]  }
  0x29   :  { %2227 = vmatpush3.bf16.msra.mxu1 %v2379_v58  ;;  %v311_v58 = vrot.slane %v2729_v12, %v2627_v35 }
  0x2a   :  { %2228 = vmatprep.subr.bf16.mxu1 %v2382_v59  ;;  %v2435_v59 = vld [vmem:[%s3025_s1 + $0x2b8] sm:$0xff]  }
  0x2b   :  { %2207 = vmatpush3.bf16.msra.mxu0 %v2381_v60  ;;  %v289_v60 = vcombine.high %v2707_v5, %v2707_v5  ;;  %v2440_v5 = vld [vmem:[%s3028_s5] sm:$0xff]  }
  0x2c   :  { %2208 = vmatprep.subr.bf16.mxu0 %v2384_v61  ;;  %v2436_v61 = vld [vmem:[%s3025_s1 + $0x300] sm:$0xff]  }
  0x2d   :  { %2229 = vmatpush3.bf16.msra.mxu1 %v2383_v62  ;;  %v2481_v62 = vmov 0.0  }
  0x2e   :  { %2230 = vmatprep.subr.bf16.mxu1 %v2386_v63  ;;  %v326_v63 = vcombine.high %v311_v58, %v311_v58 }
  0x2f   :  { %2209 = vmatpush3.bf16.msra.mxu0 %v2385_v0  ;;  %v303_v0 = vrot.slane %v289_v60, %v2627_v35 }
  0x30   :  { %2210 = vmatprep.subr.bf16.mxu0 %v2388_v1  ;;  %v2437_v1 = vld [vmem:[%s3025_s1 + $0x308] sm:$0xff]  }
  0x31   :  { %2231 = vmatpush3.bf16.msra.mxu1 %v2387_v2  ;;  %v318_v2 = vrot.slane %v303_v0, %v2627_v35 }
  0x32   :  { %2232 = vmatprep.subr.bf16.mxu1 %v2390_v3  ;;  %v2438_v3 = vld [vmem:[%s3027_s3] sm:$0xff]  }
  0x33   :  { %2211 = vmatpush3.bf16.msra.mxu0 %v2389_v4  ;;  %v2439_v4 = vld [vmem:[%s3027_s3 + $0x8] sm:$0xff]  }
  0x34   :  { %2212 = vmatprep.subr.bf16.mxu0 %v2392_v6 }
  0x35   :  { %2233 = vmatpush3.bf16.msra.mxu1 %v2391_v7  ;;  %v2011_v7 = vld [vmem:[%s3029_s2] ss:$0 sm:$0xff] }
  0x36   :  { %2234 = vmatprep.subr.bf16.mxu1 %v2394_v8 }
  0x37   :  { %2213 = vmatpush3.bf16.msra.mxu0 %v2393_v9 }
  0x38   :  { %2214 = vmatprep.subr.bf16.mxu0 %v2396_v10 }
  0x39   :  { %2235 = vmatpush3.bf16.msra.mxu1 %v2395_v11 }
  0x3a   :  { %2236 = vmatprep.subr.bf16.mxu1 %v2398_v13 }
  0x3b   :  { %2215 = vmatpush3.bf16.msra.mxu0 %v2397_v14 }
  0x3c   :  { %2216 = vmatprep.subr.bf16.mxu0 %v2400_v15 }
  0x3d   :  { %2237 = vmatpush3.bf16.msra.mxu1 %v2399_v16 }
  0x3e   :  { %2238 = vmatprep.subr.bf16.mxu1 %v2402_v18 }
  0x3f   :  { %2217 = vmatpush3.bf16.msra.mxu0 %v2401_v19 }
  0x40   :  { %2246 = vmatprep.subr.bf16.mxu0 %v2404_v21 }
  0x41   :  { %2239 = vmatpush3.bf16.msra.mxu1 %v2403_v22 }
  0x42   :  { %1045 = vmatmul.mubr.bf16.vlgmr.msra.gmra.mrb[4].mxu0 %v270_v20  ;;  %2268 = vmatprep.subr.bf16.mxu1 %v2406_v24 }
  0x43   :  { %2247 = vmatpush3.bf16.msra.mxu0 %v2405_v25  ;;  %1124 = vmatprep.mubr.bf16.mxu0 %v325_v23 }
  0x44   :  { %1085 = vmatmul.mubr.bf16.vlgmr.msra.gmra.mrb[4].mxu1 %v286_v26  ;;  %2248 = vmatprep.subr.bf16.mxu0 %v2408_v27 }
  0x45   :  { %2269 = vmatpush3.bf16.msra.mxu1 %v2407_v28  ;;  %1164 = vmatprep.mubr.bf16.mxu1 %v327_v29 }
  0x46   :  { %2270 = vmatprep.subr.bf16.mxu1 %v2410_v31 }
  0x47   :  { %2249 = vmatpush3.bf16.msra.mxu0 %v2409_v32 }
  0x48   :  { %2250 = vmatprep.subr.bf16.mxu0 %v2412_v33 }
  0x49   :  { %2271 = vmatpush3.bf16.msra.mxu1 %v2411_v34 }
  0x4a   :  { %2272 = vmatprep.subr.bf16.mxu1 %v2414_v36 }
  0x4b   :  { %2251 = vmatpush3.bf16.msra.mxu0 %v2413_v37 }
  0x4c   :  { %2252 = vmatprep.subr.bf16.mxu0 %v2416_v38 }
  0x4d   :  { %2273 = vmatpush3.bf16.msra.mxu1 %v2415_v39 }
  0x4e   :  { %2274 = vmatprep.subr.bf16.mxu1 %v2418_v40 }
  0x4f   :  { %2253 = vmatpush3.bf16.msra.mxu0 %v2417_v41 }
  0x50   :  { %2254 = vmatprep.subr.bf16.mxu0 %v2420_v42 }
  0x51   :  { %2275 = vmatpush3.bf16.msra.mxu1 %v2419_v43 }
  0x52   :  { %2276 = vmatprep.subr.bf16.mxu1 %v2422_v44 }
  0x53   :  { %2255 = vmatpush3.bf16.msra.mxu0 %v2421_v45 }
  0x54   :  { %2256 = vmatprep.subr.bf16.mxu0 %v2424_v46 }
  0x55   :  { %2277 = vmatpush3.bf16.msra.mxu1 %v2423_v47 }
  0x56   :  { %2278 = vmatprep.subr.bf16.mxu1 %v2426_v48 }
  0x57   :  { %2257 = vmatpush3.bf16.msra.mxu0 %v2425_v49 }
  0x58   :  { %2258 = vmatprep.subr.bf16.mxu0 %v2428_v50 }
  0x59   :  { %2279 = vmatpush3.bf16.msra.mxu1 %v2427_v51 }
  0x5a   :  { %2280 = vmatprep.subr.bf16.mxu1 %v2430_v52  ;;  %v2441_v52 = vld [vmem:[%s3028_s5 + $0x8] sm:$0xff]  }
  0x5b   :  { %2259 = vmatpush3.bf16.msra.mxu0 %v2429_v53  ;;  %v2442_v53 = vld [vmem:[%s3030_s7] ss:$52 sps:$4 sm:$0xff]  }
  0x5c   :  { %2260 = vmatprep.subr.bf16.mxu0 %v2432_v54  ;;  %v2444_v54 = vld [vmem:[%s3030_s7 + $0x4] ss:$52 sps:$4 sm:$0xff]  }
  0x5d   :  { %2281 = vmatpush3.bf16.msra.mxu1 %v2431_v55  ;;  %v2447_v55 = vld [vmem:[%s3030_s7 + $0xc] ss:$52 sps:$4 sm:$0xff]  }
  0x5e   :  { %2282 = vmatprep.subr.bf16.mxu1 %v2434_v56  ;;  %v2111_v56 = vld [vmem:[%s3031_s4] ss:$0 sm:$0xff] }
  0x5f   :  { %2261 = vmatpush3.bf16.msra.mxu0 %v2433_v57 }
  0x60   :  { %2302 = vmatprep.subr.bf16.mxu0 %v2481_v62 }
  0x61   :  { %2283 = vmatpush3.bf16.msra.mxu1 %v2435_v59 }
  0x62   :  { %1125 = vmatmul.mubr.bf16.vlgmr.msra.gmra.mrb[8].mxu0 %v311_v58  ;;  %2310 = vmatprep.subr.bf16.mxu1 %v2481_v62 }
  0x63   :  { %2303 = vmatpush3.bf16.msra.mxu0 %v2436_v61  ;;  %2306 = vmatprep.mubr.msk.bf16.mxu0 %vm2482_vm0, %v2481_v62  ;;  %v2445_v61 = vld [vmem:[%s3030_s7 + $0x8] ss:$52 sps:$4 sm:$0xff]  }
  0x64   :  { %1165 = vmatmul.mubr.bf16.vlgmr.msra.gmra.mrb[8].mxu1 %v326_v63  ;;  %2304 = vmatprep.subr.bf16.mxu0 %v2481_v62 }
  0x65   :  { %2314 = vmatprep.mubr.msk.bf16.mxu1 %vm2482_vm0, %v2481_v62  ;;  %2311 = vmatpush3.bf16.msra.mxu1 %v2438_v3  ;;  %v2448_v3 = vld [vmem:[%s3030_s7 + $0x68] ss:$52 sps:$4 sm:$0xff]  }
  0x66   :  { %2312 = vmatprep.subr.bf16.mxu1 %v2481_v62 }
  0x67   :  { %2305 = vmatpush3.bf16.msra.mxu0 %v2437_v1  ;;  %v2450_v1 = vld [vmem:[%s3030_s7 + $0x6c] ss:$52 sps:$4 sm:$0xff]  }
  0x68   :  { %2318 = vmatprep.subr.bf16.mxu0 %v2481_v62 }
  0x69   :  { %2313 = vmatpush3.bf16.msra.mxu1 %v2439_v4  ;;  %v2451_v4 = vld [vmem:[%s3030_s7 + $0x70] ss:$52 sps:$4 sm:$0xff]  }
  0x6a   :  { %2307 = vmatmul.mubr.msk.bf16.vlgmr.msra.gmra.mrb[12].mxu0 %vm928_vm1, %v318_v2  ;;  %1581 = vmatprep.subr.bf16.mxu1 %v2444_v54  ;;  %v2453_v2 = vld [vmem:[%s3030_s7 + $0x74] ss:$52 sps:$4 sm:$0xff]   ;;  %v1403_v54 = vsub.s32 5, %v2612_v30 }
  0x6b   :  { %2322 = vmatprep.mubr.msk.bf16.mxu0 %vm2482_vm0, %v2481_v62  ;;  %2319 = vmatpush3.bf16.msra.mxu0 %v2440_v5  ;;  %v2483_v5 = vmov 0  }
  0x6c   :  { %2320 = vmatprep.subr.bf16.mxu0 %v2481_v62 }
  0x6f   :  { %2321 = vmatpush3.bf16.msra.mxu0 %v2441_v52 }
  0x70   :  { %1622 = vmatprep.subr.bf16.mxu0 %v2447_v55  ;;  %v1411_v55 = vsub.s32 7, %v2612_v30 }
  0xf5   :  { %v2174_v6 = vpop.f32.mrb[0].mxu0 }
  0xf6   :  { %v2175_v8 = vpop.f32.mrb[1].mxu0 }
  0xf7   :  { %v2176_v9 = vadd.f32 %v2175_v8, %v2174_v6  ;;  %v2177_v10 = vpop.f32.mrb[2].mxu0  ;;  %v2196_v11 = vpop.f32.mrb[0].mxu1  ;;  %v2456_v6 = vld [vmem:[%s3030_s7 + $0x14] ss:$52 sps:$4 sm:$0xff]   ;;  %v2115_v8 = vld [vmem:[%s3032_s6] ss:$0 sm:$0xff] }
  0xf8   :  { %v2178_v12 = vpop.f32.mrb[3].mxu0  ;;  %v2197_v13 = vpop.f32.mrb[1].mxu1 }
  0xf9   :  { %v967_v14 = vadd.f32 %v2176_v9, %v2011_v7  ;;  %v2198_v15 = vadd.f32 %v2197_v13, %v2196_v11  ;;  %v2199_v16 = vpop.f32.mrb[2].mxu1  ;;  %v2459_v7 = vld [vmem:[%s3030_s7 + $0x1c] ss:$52 sps:$4 sm:$0xff]  }
  0xfa   :  { %v2200_v17 = vpop.f32.mrb[3].mxu1  ;;  %v2457_v16 = vld [vmem:[%s3030_s7 + $0x18] ss:$52 sps:$4 sm:$0xff]  }
  0xfb   :  { %v1007_v18 = vadd.f32 %v2198_v15, %v967_v14  ;;  %v2454_v15 = vld [vmem:[%s3030_s7 + $0x10] ss:$52 sps:$4 sm:$0xff]  }
 0x115   :  { %v2218_v19 = vpop.f32.mrb[4].mxu0 }
 0x116   :  { %v2219_v20 = vpop.f32.mrb[5].mxu0 }
 0x117   :  { %v2220_v21 = vadd.f32 %v2219_v20, %v2218_v19  ;;  %v2221_v22 = vpop.f32.mrb[6].mxu0  ;;  %v2240_v23 = vpop.f32.mrb[4].mxu1  ;;  %v2465_v19 = vld [vmem:[%s3030_s7 + $0x84] ss:$52 sps:$4 sm:$0xff]  }
 0x118   :  { %v2222_v24 = vpop.f32.mrb[7].mxu0  ;;  %v2241_v25 = vpop.f32.mrb[5].mxu1  ;;  %v2460_v20 = vld [vmem:[%s3030_s7 + $0x78] ss:$52 sps:$4 sm:$0xff]  }
 0x119   :  { %v1047_v26 = vadd.f32 %v2220_v21, %v1007_v18  ;;  %v2242_v27 = vadd.f32 %v2241_v25, %v2240_v23  ;;  %v2243_v28 = vpop.f32.mrb[6].mxu1  ;;  %v2462_v18 = vld [vmem:[%s3030_s7 + $0x7c] ss:$52 sps:$4 sm:$0xff]   ;;  %v2463_v21 = vld [vmem:[%s3030_s7 + $0x80] ss:$52 sps:$4 sm:$0xff]  }
 0x11a   :  { %v2244_v29 = vpop.f32.mrb[7].mxu1  ;;  %v2468_v22 = vld [vmem:[%s3030_s7 + $0x24] ss:$52 sps:$4 sm:$0xff]   ;;  %v2471_v23 = vld [vmem:[%s3030_s7 + $0x2c] ss:$52 sps:$4 sm:$0xff]  }
 0x11b   :  { %v1087_v31 = vadd.f32 %v2242_v27, %v1047_v26  ;;  %v2466_v24 = vld [vmem:[%s3030_s7 + $0x20] ss:$52 sps:$4 sm:$0xff]   ;;  %v2469_v25 = vld [vmem:[%s3030_s7 + $0x28] ss:$52 sps:$4 sm:$0xff]   ;;  %v2475_v29 = vld [vmem:[%s3030_s7 + $0x90] ss:$52 sps:$4 sm:$0xff]  }
 0x11c   :  { %v2474_v26 = vld [vmem:[%s3030_s7 + $0x8c] ss:$52 sps:$4 sm:$0xff]   ;;  %v2477_v27 = vld [vmem:[%s3030_s7 + $0x94] ss:$52 sps:$4 sm:$0xff]  }
 0x11d   :  { %v2472_v28 = vld [vmem:[%s3030_s7 + $0x88] ss:$52 sps:$4 sm:$0xff]  }
 0x135   :  { %v2262_v32 = vpop.f32.mrb[8].mxu0 }
 0x136   :  { %v2263_v33 = vpop.f32.mrb[9].mxu0 }
 0x137   :  { %v2264_v34 = vadd.f32 %v2263_v33, %v2262_v32  ;;  %v2284_v36 = vpop.f32.mrb[8].mxu1  ;;  %v2265_v37 = vpop.f32.mrb[10].mxu0  ;;  %v2479_v32 = vld [vmem:[%s3030_s7 + $0x98] ss:$52 sps:$4 sm:$0xff]   ;;  %v1383_v33 = vsub.s32 0, %v2612_v30 }
 0x138   :  { %v2285_v38 = vpop.f32.mrb[9].mxu1  ;;  %v2266_v39 = vpop.f32.mrb[11].mxu0  ;;  %v1387_v37 = vsub.s32 1, %v2612_v30 }
 0x139   :  { %v1127_v40 = vadd.f32 %v2264_v34, %v1087_v31  ;;  %v2286_v41 = vadd.f32 %v2285_v38, %v2284_v36  ;;  %v2287_v42 = vpop.f32.mrb[10].mxu1  ;;  %v2478_v31 = vld [vmem:[%s3030_s7 + $0x30] ss:$52 sps:$4 sm:$0xff]   ;;  %v1391_v34 = vsub.s32 2, %v2612_v30  ;;  %v1395_v38 = vsub.s32 3, %v2612_v30 }
 0x13a   :  { %v2288_v43 = vpop.f32.mrb[11].mxu1  ;;  %v1377_v36 = vld [vmem:[%s3033_s8] sm:$0xff] }
 0x13b   :  { %v1167_v44 = vadd.f32 %v2286_v41, %v1127_v40  ;;  %v1384_v39 = vrot.slane %v1377_v36, %v1383_v33  ;;  %v1392_v40 = vrot.slane %v1377_v36, %v1391_v34  ;;  %v1388_v41 = vrot.slane %v1377_v36, %v1387_v37 }
 0x13c   :  { %v1396_v42 = vrot.slane %v1377_v36, %v1395_v38 }
 0x13d   :  { %v1206_v45 = vpop.f32.mrb[12].mxu0 }
 0x13e   :  { %v1207_v46 = vadd.f32 %v1206_v45, %v1167_v44  ;;  %v2308_v47 = vpop.f32.mrb[13].mxu0 }
 0x13f   :  { %v1209_v48 = vpop.f32.mrb[14].mxu0 }
 0x140   :  { %v1212_v49 = vmax.f32 %v1207_v46, 0.0  ;;  %v2309_v50 = vpop.f32.mrb[15].mxu0  ;;  %v1399_v48 = vsub.s32 4, %v2612_v30 }
 0x142   :  { %v1213_v51 = vpack.c.bf16 %v1212_v49, %v1212_v49  ;;  %v1407_v49 = vsub.s32 6, %v2612_v30 }
 0x144   :  { %2315 = vmatmul.mubr.msk.bf16.vlgmr.msra.gmra.mrb[12].mxu1 %vm928_vm1, %v1213_v51 }
 0x145   :  { %1582 = vmatpush1.bf16.msra.mxu1 %v2442_v53  ;;  %1613 = vmatprep.mubr.bf16.mxu1 %v2483_v5 }
 0x146   :  { %1583 = vmatprep.subr.bf16.mxu1 %v2450_v1 }
 0x149   :  { %1584 = vmatpush1.bf16.msra.mxu1 %v2448_v3  ;;  %v1404_v3 = vrot.slane %v1377_v36, %v1403_v54 }
 0x14a   :  { %1663 = vmatprep.subr.bf16.mxu1 %v2456_v6 }
 0x217   :  { %v1274_v57 = vpop.f32.mrb[12].mxu1 }
 0x218   :  { %v1275_v58 = vadd.f32 %v2111_v56, %v1274_v57  ;;  %v2316_v59 = vpop.f32.mrb[13].mxu1 }
 0x219   :  { %v1277_v60 = vpop.f32.mrb[14].mxu1 }
 0x21a   :  { %v1280_v63 = vpack.c.bf16 %v1275_v58, %v1275_v58  ;;  %v2317_v0 = vpop.f32.mrb[15].mxu1 }
 0x21b   :  { %v1408_v0 = vrot.slane %v1377_v36, %v1407_v49 }
 0x21c   :  { %2323 = vmatmul.mubr.msk.bf16.vlgmr.msra.gmra.mrb[16].mxu0 %vm928_vm1, %v1280_v63  ;;  %v1400_v63 = vrot.slane %v1377_v36, %v1399_v48 }
 0x21d   :  { %1623 = vmatpush1.bf16.msra.mxu0 %v2445_v61  ;;  %1654 = vmatprep.mubr.bf16.mxu0 %v2483_v5 }
 0x21e   :  { %1624 = vmatprep.subr.bf16.mxu0 %v2453_v2 }
 0x221   :  { %1625 = vmatpush1.bf16.msra.mxu0 %v2451_v4  ;;  %v1412_v4 = vrot.slane %v1377_v36, %v1411_v55 }
 0x222   :  { %1704 = vmatprep.subr.bf16.mxu0 %v2459_v7 }
 0x2ef   :  { %v1341_v9 = vpop.f32.mrb[16].mxu0 }
 0x2f0   :  { %v1342_v10 = vadd.f32 %v2115_v8, %v1341_v9  ;;  %v2324_v11 = vpop.f32.mrb[17].mxu0 }
 0x2f1   :  { %v1344_v12 = vpop.f32.mrb[18].mxu0 }
 0x2f2   :  { %v1347_v13 = vmax.f32 %v1342_v10, 0.0  ;;  %v2325_v14 = vpop.f32.mrb[19].mxu0 }
 0x2f4   :  { %v1348_v17 = vpack.c.bf16 %v1347_v13, %v1347_v13 }
 0x2f6   :  { %2145 = vmatmul.mubr.msk.bf16.vlgmr.msra.gmra.mrb[16].mxu1 %vm928_vm1, %v1348_v17  ;;  %2146 = vmatmul.mubr.msk.bf16.vlgmr.msra.gmra.mrb[20].mxu0 %vm928_vm1, %v1348_v17 }
 0x2f7   :  { %1664 = vmatpush1.bf16.msra.mxu1 %v2454_v15  ;;  %1705 = vmatpush1.bf16.msra.mxu0 %v2457_v16 }
 0x2f8   :  { %1665 = vmatprep.subr.bf16.mxu1 %v2462_v18  ;;  %1706 = vmatprep.subr.bf16.mxu0 %v2465_v19  ;;  %v1378_v18 = vld [vmem:[%s3033_s8 + $0x8] sm:$0x1f] }
 0x2f9   :  { %1695 = vmatprep.mubr.bf16.mxu1 %v2483_v5  ;;  %1736 = vmatprep.mubr.bf16.mxu0 %v2483_v5  ;;  %v1432_v54 = vrot.slane %v1378_v18, %v1399_v48 }
 0x2fb   :  { %1666 = vmatpush1.bf16.msra.mxu1 %v2460_v20  ;;  %1707 = vmatpush1.bf16.msra.mxu0 %v2463_v21 }
 0x2fc   :  { %1745 = vmatprep.subr.bf16.mxu1 %v2468_v22  ;;  %1786 = vmatprep.subr.bf16.mxu0 %v2471_v23 }
 0x2fe   :  { %2147 = vmatmul.mubr.msk.bf16.vlgmr.msra.gmra.mrb[20].mxu1 %vm928_vm1, %v1348_v17  ;;  %2148 = vmatmul.mubr.msk.bf16.vlgmr.msra.gmra.mrb[24].mxu0 %vm928_vm1, %v1348_v17 }
 0x2ff   :  { %1746 = vmatpush1.bf16.msra.mxu1 %v2466_v24  ;;  %1787 = vmatpush1.bf16.msra.mxu0 %v2469_v25  ;;  %v1416_v25 = vrot.slane %v1378_v18, %v1383_v33 }
 0x300   :  { %1747 = vmatprep.subr.bf16.mxu1 %v2474_v26  ;;  %1788 = vmatprep.subr.bf16.mxu0 %v2477_v27  ;;  %v1424_v26 = vrot.slane %v1378_v18, %v1391_v34 }
 0x301   :  { %1777 = vmatprep.mubr.bf16.mxu1 %v2483_v5  ;;  %1818 = vmatprep.mubr.bf16.mxu0 %v2483_v5 }
 0x303   :  { %1748 = vmatpush1.bf16.msra.mxu1 %v2472_v28  ;;  %1789 = vmatpush1.bf16.msra.mxu0 %v2475_v29  ;;  %v1420_v29 = vrot.slane %v1378_v18, %v1387_v37 }
 0x304   :  { %2326 = vmatprep.subr.bf16.mxu1 %v2481_v62 }
 0x306   :  { %2149 = vmatmul.mubr.msk.bf16.vlgmr.msra.gmra.mrb[24].mxu1 %vm928_vm1, %v1348_v17  ;;  %2150 = vmatmul.mubr.msk.bf16.vlgmr.msra.gmra.mrb[28].mxu0 %vm928_vm1, %v1348_v17 }
 0x307   :  { %2327 = vmatpush3.bf16.msra.mxu1 %v2478_v31  ;;  %2330 = vmatprep.mubr.msk.bf16.mxu1 %vm2482_vm0, %v2481_v62  ;;  %v1428_v31 = vrot.slane %v1378_v18, %v1395_v38 }
 0x308   :  { %2328 = vmatprep.subr.bf16.mxu1 %v2481_v62 }
 0x30b   :  { %2329 = vmatpush3.bf16.msra.mxu1 %v2479_v32 }
 0x30e   :  { %2331 = vmatmul.mubr.msk.bf16.vlgmr.msra.gmra.mrb[28].mxu1 %vm928_vm1, %v1348_v17 }
 0x3c9   :  { %v1615_v62 = vpop.f32.mrb[16].mxu1  ;;  %v1656_v43 = vpop.f32.mrb[20].mxu0 }
 0x3ca   :  { %v1616_v44 = vadd.f32 %v1615_v62, %v1384_v39  ;;  %v1657_v45 = vadd.f32 %v1656_v43, %v1392_v40  ;;  %v1617_v46 = vpop.f32.mrb[17].mxu1  ;;  %v1658_v47 = vpop.f32.mrb[21].mxu0 }
 0x3cb   :  { %v1618_v50 = vadd.f32 %v1617_v46, %v1388_v41  ;;  %v1659_v51 = vadd.f32 %v1658_v47, %v1396_v42  ;;  %v1619_v52 = vpop.f32.mrb[18].mxu1  ;;  %v1660_v53 = vpop.f32.mrb[22].mxu0 }
 0x3cc   :  { %v1867_v56 = vmax.f32 %v1616_v44, 0.0  ;;  %v1869_v57 = vmax.f32 %v1657_v45, 0.0  ;;  %v1620_v58 = vpop.f32.mrb[19].mxu1  ;;  %v1661_v59 = vpop.f32.mrb[23].mxu0 }
 0x3cd   :  { %v1868_v60 = vmax.f32 %v1618_v50, 0.0  ;;  %v1870_v61 = vmax.f32 %v1659_v51, 0.0 }
 0x3cf   :  { %v2152_v1 = vpack.c.bf16 %v1868_v60, %v1867_v56  ;;  %v2153_v2 = vpack.c.bf16 %v1870_v61, %v1869_v57 }
 0x3d1   :  { %v1916_v5 = vrot.slane %v2152_v1, %v2627_v35  ;;  %v1923_v6 = vrot.slane %v2153_v2, %v2627_v35  ;;  %v1697_v7 = vpop.f32.mrb[20].mxu1  ;;  %v1738_v8 = vpop.f32.mrb[24].mxu0 }
 0x3d2   :  { %v1698_v9 = vadd.f32 %v1697_v7, %v1400_v63  ;;  %v1739_v10 = vadd.f32 %v1738_v8, %v1408_v0  ;;  %v1699_v11 = vpop.f32.mrb[21].mxu1  ;;  %v1740_v12 = vpop.f32.mrb[25].mxu0 }
 0x3d3   :  { %v1938_v13 = vcombine.low %v1916_v5, %v1923_v6  ;;  %v1700_v14 = vadd.f32 %v1699_v11, %v1404_v3  ;;  %v1741_v15 = vadd.f32 %v1740_v12, %v1412_v4  ;;  %v1701_v16 = vpop.f32.mrb[22].mxu1  ;;  %v1742_v17 = vpop.f32.mrb[26].mxu0 }
 0x3d4   :  { %v1871_v19 = vmax.f32 %v1698_v9, 0.0  ;;  %v1873_v20 = vmax.f32 %v1739_v10, 0.0  ;;  %v1702_v21 = vpop.f32.mrb[23].mxu1  ;;  %v1743_v22 = vpop.f32.mrb[27].mxu0 }
 0x3d5   :  { %v1872_v23 = vmax.f32 %v1700_v14, 0.0  ;;  %v1874_v24 = vmax.f32 %v1741_v15, 0.0  ;;  %v1946_v38 = vrot.slane %v1938_v13, %v2627_v35 }
 0x3d7   :  { %v2154_v27 = vpack.c.bf16 %v1872_v23, %v1871_v19  ;;  %v2155_v28 = vpack.c.bf16 %v1874_v24, %v1873_v20 }
 0x3d9   :  { %v1930_v32 = vrot.slane %v2154_v27, %v2627_v35  ;;  %v1937_v36 = vrot.slane %v2155_v28, %v2627_v35  ;;  %v1779_v39 = vpop.f32.mrb[24].mxu1  ;;  %v1820_v40 = vpop.f32.mrb[28].mxu0 }
 0x3da   :  { %v1780_v41 = vadd.f32 %v1779_v39, %v1416_v25  ;;  %v1821_v42 = vadd.f32 %v1820_v40, %v1424_v26  ;;  %v1781_v62 = vpop.f32.mrb[25].mxu1  ;;  %v1822_v43 = vpop.f32.mrb[29].mxu0 }
 0x3db   :  { %v1939_v44 = vcombine.low %v1930_v32, %v1937_v36  ;;  %v1782_v45 = vadd.f32 %v1781_v62, %v1420_v29  ;;  %v1823_v46 = vadd.f32 %v1822_v43, %v1428_v31  ;;  %v1783_v47 = vpop.f32.mrb[26].mxu1  ;;  %v1824_v33 = vpop.f32.mrb[30].mxu0 }
 0x3dc   :  { %v1875_v34 = vmax.f32 %v1780_v41, 0.0  ;;  %v1877_v49 = vmax.f32 %v1821_v42, 0.0  ;;  %v1784_v50 = vpop.f32.mrb[27].mxu1  ;;  %v1825_v37 = vpop.f32.mrb[31].mxu0 }
 0x3dd   :  { %v1953_v51 = vrot.slane %v1939_v44, %v2627_v35  ;;  %v1876_v52 = vmax.f32 %v1782_v45, 0.0  ;;  %v1878_v53 = vmax.f32 %v1823_v46, 0.0 }
 0x3df   :  { %v1954_v55 = vcombine.low %v1946_v38, %v1953_v51  ;;  %v2156_v56 = vpack.c.bf16 %v1876_v52, %v1875_v34  ;;  %v2157_v57 = vpack.c.bf16 %v1878_v53, %v1877_v49 }
 0x3e1   :  { %1996 = vst [vmem:[%s3034_s9] sm:$0xff] %v1954_v55  ;;  %v1963_v58 = vrot.slane %v2156_v56, %v2627_v35  ;;  %v1970_v59 = vrot.slane %v2157_v57, %v2627_v35  ;;  %v1861_v60 = vpop.f32.mrb[28].mxu1 }
 0x3e2   :  { %v1862_v61 = vadd.f32 %v1861_v60, %v1432_v54  ;;  %v2332_v63 = vpop.f32.mrb[29].mxu1 }
 0x3e3   :  { %v1978_v30 = vcombine.low %v1963_v58, %v1970_v59  ;;  %v1864_v48 = vpop.f32.mrb[30].mxu1 }
 0x3e4   :  { %v1879_v0 = vmax.f32 %v1862_v61, 0.0  ;;  %v2333_v1 = vpop.f32.mrb[31].mxu1 }
 0x3e5   :  { %v1985_v4 = vrot.slane %v1978_v30, %v2627_v35 }
 0x3e6   :  { %v1892_v2 = vpack.c.bf16 %v1879_v0, %v1879_v0 }
 0x3e8   :  { %v1977_v3 = vrot.slane %v1892_v2, %v2627_v35 }
 0x3ea   :  { %v1992_v5 = vrot.slane %v1977_v3, %v2627_v35 }
 0x3ec   :  { %v1993_v6 = vcombine.low %v1985_v4, %v1992_v5 }
 0x3ee   :  { %2006 = vst.msk [vmem:[%s3034_s9 + $0x8] sm:$0x1f] %vm2005_vm10, %v1993_v6 }

// kernel: ae_conv28_forward.13
= control target key start
LH: loop header
LB: loop body
LE: loop exit
PB: predicated region body
PF: predicated region fallthrough
CT: control target
= control target key end

     0   :  { %s948_s12 = smov 0   ;;  %s1166_s0 = inlined_call_operand.vmem [shape: bf16[2,15,224], index: 0, kind: input, shape index: {}]   ;;  %s1167_s1 = inlined_call_operand.vmem [shape: bf16[3,224,84], index: 1, kind: input, shape index: {}]   ;;  %s1168_s2 = inlined_call_operand.vmem [shape: f32[1,84], index: 2, kind: input, shape index: {}]   ;;  %s1169_s3 = inlined_call_operand.vmem [shape: f32[2,2,14,84], index: 3, kind: output, shape index: {}]  }
   0x1 LB: > { %s743_s13 = sadd.s32 4294967295, %s925_s12   ;;  %p747_p0 = scmp.ge.s32.totalorder %s925_s12, 1  ;;  %s925_s12 = sphi %s948_s12, %s13_s12  }
   0x2   : > { %p137_p1 = scmp.lt.s32.totalorder %s925_s12, 3 }
   0x4   : > { %p138_p2 = pnand %p747_p0, %p137_p1 }
   0x5   : > { %v873_v0 = vld [vmem:[%s1167_s1 + $0x70] sm:$0xff] (!%p138_p2)   ;;  %v927_v1 = vmov (!%p138_p2), 0   ;;  %p161_p3 = scmp.lt.s32.totalorder (!%p138_p2), %s743_s13, 1  ;;  %v874_v2 = vld [vmem:[%s1167_s1 + $0x78] sm:$0xff] (!%p138_p2)   ;;  %v875_v3 = vld [vmem:[%s1167_s1 + $0x80] sm:$0xff] (!%p138_p2)   ;;  %vm304_vm0 = vcmask (!%p138_p2), 785408  }
   0x6   : > { %141 = sbr.rel (%p138_p2) target bundleno = 337 (0x151), region = 32  ;;  %308 = vmatprep.subr.bf16.mxu0 (!%p138_p2), %v927_v1  ;;  %490 = vmatprep.subr.bf16.mxu1 (!%p138_p2), %v927_v1  ;;  %v876_v4 = vld [vmem:[%s1167_s1 + $0x88] sm:$0xff] (!%p138_p2)   ;;  %v877_v5 = vld [vmem:[%s1167_s1 + $0x90] sm:$0xff] (!%p138_p2)   ;;  %v887_v6 = vld [vmem:[%s1167_s1 + $0xe0] sm:$0xff] (!%p138_p2)   ;;  %vm681_vm1 = vcmask (!%p138_p2), 687104   ;;  %vm683_vm2 = vcmask (!%p138_p2), 685056  }
   0x7   : > { %309 = vmatpush1.bf16.msra.mxu0 (!%p138_p2), %v873_v0  ;;  %491 = vmatpush1.bf16.msra.mxu1 (!%p138_p2), %v887_v6  ;;  %v893_v10 = vld [vmem:[%s1167_s1 + $0xe8] sm:$0xff] (!%p138_p2)   ;;  %v878_v11 = vld [vmem:[%s1167_s1 + $0x98] sm:$0xff] (!%p138_p2)   ;;  %v895_v12 = vld [vmem:[%s1167_s1 + $0xf0] sm:$0xff] (!%p138_p2)  }
   0x8   : > { %310 = vmatprep.subr.bf16.mxu0 (!%p138_p2), %v927_v1  ;;  %492 = vmatprep.subr.bf16.mxu1 (!%p138_p2), %v927_v1  ;;  %v879_v13 = vld [vmem:[%s1167_s1 + $0xa0] sm:$0xff] (!%p138_p2)   ;;  %v897_v14 = vld [vmem:[%s1167_s1 + $0xf8] sm:$0xff] (!%p138_p2)   ;;  %v880_v15 = vld [vmem:[%s1167_s1 + $0xa8] sm:$0xff] (!%p138_p2)  }
   0x9   : > { %v899_v16 = vld [vmem:[%s1167_s1 + $0x100] sm:$0xff] (!%p138_p2)   ;;  %v881_v17 = vld [vmem:[%s1167_s1 + $0xb0] sm:$0xff] (!%p138_p2)   ;;  %v901_v18 = vld [vmem:[%s1167_s1 + $0x108] sm:$0xff] (!%p138_p2)  }
   0xa   : > { %v882_v19 = vld [vmem:[%s1167_s1 + $0xb8] sm:$0xff] (!%p138_p2)   ;;  %v903_v20 = vld [vmem:[%s1167_s1 + $0x110] sm:$0xff] (!%p138_p2)   ;;  %v883_v21 = vld [vmem:[%s1167_s1 + $0xc0] sm:$0xff] (!%p138_p2)  }
   0xb   : > { %311 = vmatpush1.bf16.msra.mxu0 (!%p138_p2), %v874_v2  ;;  %493 = vmatpush1.bf16.msra.mxu1 (!%p138_p2), %v893_v10  ;;  %v905_v23 = vld [vmem:[%s1167_s1 + $0x118] sm:$0xff] (!%p138_p2)   ;;  %v884_v24 = vld [vmem:[%s1167_s1 + $0xc8] sm:$0xff] (!%p138_p2)   ;;  %v907_v26 = vld [vmem:[%s1167_s1 + $0x120] sm:$0xff] (!%p138_p2)  }
   0xc   : > { %312 = vmatprep.subr.bf16.mxu0 (!%p138_p2), %v927_v1  ;;  %494 = vmatprep.subr.bf16.mxu1 (!%p138_p2), %v927_v1  ;;  %v885_v27 = vld [vmem:[%s1167_s1 + $0xd0] sm:$0xff] (!%p138_p2)   ;;  %v909_v29 = vld [vmem:[%s1167_s1 + $0x128] sm:$0xff] (!%p138_p2)   ;;  %v886_v30 = vld [vmem:[%s1167_s1 + $0xd8] sm:$0xff] (!%p138_p2)  }
   0xd   : > { %s1171_s13 = smov (!%p161_p3, %s743_s13), 1  ;;  %v911_v33 = vld [vmem:[%s1167_s1 + $0x130] sm:$0xff]   ;;  %v892_v35 = vld [vmem:[%s1167_s1] sm:$0xff]   ;;  %v913_v37 = vld [vmem:[%s1167_s1 + $0x138] sm:$0xff]  }
   0xe   : > { %s862_s20 = sshll.u32 %s1171_s13, 4  ;;  %v894_v38 = vld [vmem:[%s1167_s1 + $0x8] sm:$0xff]   ;;  %v915_v39 = vld [vmem:[%s1167_s1 + $0x140] sm:$0xff]   ;;  %v896_v40 = vld [vmem:[%s1167_s1 + $0x10] sm:$0xff]   ;;  %s863_s28 = sshll.u32 %s1171_s13, 5 }
   0xf   : > { %313 = vmatpush1.bf16.msra.mxu0 %v875_v3  ;;  %s979_s25 = scalar_lea.vmem %s1166_s0, %s862_s20  ;;  %495 = vmatpush1.bf16.msra.mxu1 %v895_v12  ;;  %v917_v41 = vld [vmem:[%s1167_s1 + $0x148] sm:$0xff]   ;;  %v898_v42 = vld [vmem:[%s1167_s1 + $0x18] sm:$0xff]   ;;  %v900_v43 = vld [vmem:[%s1167_s1 + $0x20] sm:$0xff]   ;;  %s170_s6 = scalar_lea.vmem %s1169_s3, %s863_s28 }
  0x10   : > { %314 = vmatprep.subr.bf16.mxu0 %v927_v1  ;;  %v989_v7 = vld [vmem:[%s979_s25] sm:$0xff]  ;;  %v992_v8 = vld [vmem:[%s979_s25 + $0x8] sm:$0x77]  ;;  %496 = vmatprep.subr.bf16.mxu1 %v927_v1  ;;  %v904_v45 = vld [vmem:[%s1167_s1 + $0x30] sm:$0xff]  }
  0x11   : > { %v782_v9 = vcombine.high %v989_v7, %v992_v8  ;;  %v1047_v22 = vld [vmem:[%s979_s25 + $0x8] sm:$0xff]  ;;  %v781_v34 = vcombine.low %v989_v7, %v992_v8  ;;  %v906_v46 = vld [vmem:[%s1167_s1 + $0x38] sm:$0xff]   ;;  %v908_v47 = vld [vmem:[%s1167_s1 + $0x40] sm:$0xff]  }
  0x12   : > { %v842_v25 = vcombine.high %v989_v7, %v1047_v22  ;;  %v902_v44 = vld [vmem:[%s1167_s1 + $0x28] sm:$0xff]   ;;  %v912_v49 = vld [vmem:[%s1167_s1 + $0x50] sm:$0xff]   ;;  %v841_v50 = vcombine.low %v989_v7, %v1047_v22  ;;  %v914_v51 = vld [vmem:[%s1167_s1 + $0x58] sm:$0xff]  }
  0x13   : > { %315 = vmatpush1.bf16.msra.mxu0 %v876_v4  ;;  %797 = vmatprep.mubr.msk.bf16.mxu0 %vm304_vm0, %v782_v9  ;;  %v910_v48 = vld [vmem:[%s1167_s1 + $0x48] sm:$0xff]   ;;  %v916_v53 = vld [vmem:[%s1167_s1 + $0x60] sm:$0xff]  }
  0x14   : > { %316 = vmatprep.subr.bf16.mxu0 %v927_v1  ;;  %840 = vmatprep.mubr.msk.bf16.mxu1 %vm304_vm0, %v782_v9  ;;  %v546_v28 = vshll.u32 %v842_v25, 16  ;;  %v544_v31 = vshrl.u32 %v842_v25, 16  ;;  %v539_v52 = vshll.u32 %v841_v50, 16  ;;  %v537_v54 = vshrl.u32 %v841_v50, 16  ;;  %v918_v56 = vld [vmem:[%s1167_s1 + $0x68] sm:$0xff]  }
  0x15   : > { %497 = vmatpush1.bf16.msra.mxu1 %v897_v14  ;;  %v780_v58 = vld [vmem:[%s1168_s2] ss:$0 sm:$0xff] }
  0x16   : > { %498 = vmatprep.subr.bf16.mxu1 %v927_v1  ;;  %v548_v32 = vrot.slane %v546_v28, 1  ;;  %v541_v55 = vrot.slane %v539_v52, 1 }
  0x17   : > { %317 = vmatpush1.bf16.msra.mxu0 %v877_v5 }
  0x18   : > { %318 = vmatprep.subr.bf16.mxu0 %v927_v1  ;;  %v549_v36 = vor.u32 %v548_v32, %v544_v31  ;;  %v542_v57 = vor.u32 %v541_v55, %v537_v54 }
  0x19   : > { %499 = vmatpush1.bf16.msra.mxu1 %v899_v16 }
  0x1a   : > { %500 = vmatprep.subr.bf16.mxu1 %v927_v1 }
  0x1b   : > { %319 = vmatpush1.bf16.msra.mxu0 %v878_v11 }
  0x1c   : > { %320 = vmatprep.subr.bf16.mxu0 %v927_v1 }
  0x1d   : > { %501 = vmatpush1.bf16.msra.mxu1 %v901_v18 }
  0x1e   : > { %502 = vmatprep.subr.bf16.mxu1 %v927_v1 }
  0x1f   : > { %321 = vmatpush1.bf16.msra.mxu0 %v879_v13 }
  0x20   : > { %322 = vmatprep.subr.bf16.mxu0 %v927_v1 }
  0x21   : > { %503 = vmatpush1.bf16.msra.mxu1 %v903_v20 }
  0x22   : > { %504 = vmatprep.subr.bf16.mxu1 %v927_v1 }
  0x23   : > { %323 = vmatpush1.bf16.msra.mxu0 %v880_v15 }
  0x24   : > { %324 = vmatprep.subr.bf16.mxu0 %v927_v1 }
  0x25   : > { %505 = vmatpush1.bf16.msra.mxu1 %v905_v23 }
  0x26   : > { %506 = vmatprep.subr.bf16.mxu1 %v927_v1 }
  0x27   : > { %325 = vmatpush1.bf16.msra.mxu0 %v881_v17 }
  0x28   : > { %326 = vmatprep.subr.bf16.mxu0 %v927_v1 }
  0x29   : > { %507 = vmatpush1.bf16.msra.mxu1 %v907_v26 }
  0x2a   : > { %508 = vmatprep.subr.bf16.mxu1 %v927_v1 }
  0x2b   : > { %327 = vmatpush1.bf16.msra.mxu0 %v882_v19 }
  0x2c   : > { %328 = vmatprep.subr.bf16.mxu0 %v927_v1 }
  0x2d   : > { %509 = vmatpush1.bf16.msra.mxu1 %v909_v29 }
  0x2e   : > { %510 = vmatprep.subr.bf16.mxu1 %v927_v1 }
  0x2f   : > { %329 = vmatpush1.bf16.msra.mxu0 %v883_v21 }
  0x30   : > { %330 = vmatprep.subr.bf16.mxu0 %v927_v1 }
  0x31   : > { %511 = vmatpush1.bf16.msra.mxu1 %v911_v33 }
  0x32   : > { %512 = vmatprep.subr.bf16.mxu1 %v927_v1 }
  0x33   : > { %331 = vmatpush1.bf16.msra.mxu0 %v884_v24 }
  0x34   : > { %332 = vmatprep.subr.bf16.mxu0 %v927_v1 }
  0x35   : > { %513 = vmatpush1.bf16.msra.mxu1 %v913_v37 }
  0x36   : > { %514 = vmatprep.subr.bf16.mxu1 %v927_v1 }
  0x37   : > { %333 = vmatpush1.bf16.msra.mxu0 %v885_v27 }
  0x38   : > { %334 = vmatprep.subr.bf16.mxu0 %v927_v1 }
  0x39   : > { %515 = vmatpush1.bf16.msra.mxu1 %v915_v39 }
  0x3a   : > { %516 = vmatprep.subr.bf16.mxu1 %v927_v1 }
  0x3b   : > { %335 = vmatpush1.bf16.msra.mxu0 %v886_v30 }
  0x3c   : > { %638 = vmatprep.subr.bf16.mxu0 %v927_v1 }
  0x3d   : > { %517 = vmatpush1.bf16.msra.mxu1 %v917_v41 }
  0x3e   : > { %341 = vmatmul.mubr.bf16.vlgmr.msra.gmra.mrb[0].mxu0 %v781_v34 }
  0x3f   : > { %639 = vmatpush1.bf16.msra.mxu0 %v892_v35  ;;  %857 = vmatprep.mubr.msk.bf16.mxu0 %vm304_vm0, %v549_v36 }
  0x40   : > { %640 = vmatprep.subr.bf16.mxu0 %v927_v1  ;;  %523 = vmatmul.mubr.bf16.vlgmr.msra.gmra.mrb[0].mxu1 %v781_v34 }
  0x43   : > { %641 = vmatpush1.bf16.msra.mxu0 %v894_v38 }
  0x44   : > { %642 = vmatprep.subr.bf16.mxu0 %v927_v1 }
  0x47   : > { %643 = vmatpush1.bf16.msra.mxu0 %v896_v40 }
  0x48   : > { %644 = vmatprep.subr.bf16.mxu0 %v927_v1 }
  0x4b   : > { %645 = vmatpush1.bf16.msra.mxu0 %v898_v42 }
  0x4c   : > { %646 = vmatprep.subr.bf16.mxu0 %v927_v1 }
  0x4f   : > { %647 = vmatpush1.bf16.msra.mxu0 %v900_v43 }
  0x50   : > { %648 = vmatprep.subr.bf16.mxu0 %v927_v1 }
  0x53   : > { %649 = vmatpush1.bf16.msra.mxu0 %v902_v44 }
  0x54   : > { %650 = vmatprep.subr.bf16.mxu0 %v927_v1 }
  0x57   : > { %651 = vmatpush1.bf16.msra.mxu0 %v904_v45 }
  0x58   : > { %652 = vmatprep.subr.bf16.mxu0 %v927_v1 }
  0x5b   : > { %653 = vmatpush1.bf16.msra.mxu0 %v906_v46 }
  0x5c   : > { %654 = vmatprep.subr.bf16.mxu0 %v927_v1 }
  0x5f   : > { %655 = vmatpush1.bf16.msra.mxu0 %v908_v47 }
  0x60   : > { %656 = vmatprep.subr.bf16.mxu0 %v927_v1 }
  0x63   : > { %657 = vmatpush1.bf16.msra.mxu0 %v910_v48 }
  0x64   : > { %658 = vmatprep.subr.bf16.mxu0 %v927_v1 }
  0x67   : > { %659 = vmatpush1.bf16.msra.mxu0 %v912_v49 }
  0x68   : > { %660 = vmatprep.subr.bf16.mxu0 %v927_v1 }
  0x6b   : > { %661 = vmatpush1.bf16.msra.mxu0 %v914_v51 }
  0x6c   : > { %662 = vmatprep.subr.bf16.mxu0 %v927_v1 }
  0x6f   : > { %663 = vmatpush1.bf16.msra.mxu0 %v916_v53 }
  0x70   : > { %664 = vmatprep.subr.bf16.mxu0 %v927_v1 }
  0x73   : > { %665 = vmatpush1.bf16.msra.mxu0 %v918_v56 }
  0x76   : > { %671 = vmatmul.mubr.bf16.vlgmr.msra.gmra.mrb[4].mxu0 %v542_v57 }
 0x111   : > { %v342_v59 = vpop.f32.mrb[0].mxu0 }
 0x112   : > { %v343_v60 = vadd.f32 %v780_v58, %v342_v59  ;;  %v344_v61 = vpop.f32.mrb[1].mxu0 }
 0x113   : > { %v345_v62 = vpop.f32.mrb[2].mxu0  ;;  %v524_v1 = vpop.f32.mrb[0].mxu1 }
 0x114   : > { %682 = vst.msk [vmem:[%s170_s6] sm:$0xff] %vm681_vm1, %v343_v60  ;;  %v346_v63 = vadd.f32 %v780_v58, %v345_v62  ;;  %v347_v0 = vpop.f32.mrb[3].mxu0  ;;  %v526_v2 = vpop.f32.mrb[1].mxu1 }
 0x115   : > { %v527_v3 = vpop.f32.mrb[2].mxu1 }
 0x116   : > { %684 = vst.msk [vmem:[%s170_s6 + $0x8] sm:$0x3f] %vm683_vm2, %v346_v63  ;;  %v529_v4 = vpop.f32.mrb[3].mxu1 }
 0x149   : > { %v672_v5 = vpop.f32.mrb[4].mxu0 }
 0x14a   : > { %v673_v6 = vadd.f32 %v672_v5, %v524_v1  ;;  %v674_v7 = vpop.f32.mrb[5].mxu0 }
 0x14b   : > { %v675_v8 = vpop.f32.mrb[6].mxu0 }
 0x14c   : > { %v679_v9 = vadd.f32 %v780_v58, %v673_v6  ;;  %v676_v10 = vadd.f32 %v675_v8, %v527_v3  ;;  %v677_v11 = vpop.f32.mrb[7].mxu0 }
 0x14e   : > { %858 = vst.msk [vmem:[%s170_s6 + $0x10] sm:$0xff] %vm681_vm1, %v679_v9  ;;  %v680_v12 = vadd.f32 %v780_v58, %v676_v10 }
 0x150   : > { %859 = vst.msk [vmem:[%s170_s6 + $0x18] sm:$0x3f] %vm683_vm2, %v680_v12 }
 0x151 PF: > { %s13_s12 = sadd.s32 1, %s925_s12  }
 0x152   : > { %p10_p4 = scmp.ge.s32.totalorder %s13_s12, 4  }
 0x154   :  { %12 = sbr.rel (!%p10_p4) target bundleno = 1 (0x1), region = 65 }

</bundles_post_ra>
